<compile_context>
chip_gen: v5e
topology: v5e:2x2
jax: 0.10.0
libtpu: 0.0.40
codegen_flags: <defaults>
</compile_context>

<pallas_src>
import functools

import jax
import jax.numpy as jnp
from jax.experimental import pallas as pl
from jax.experimental.pallas import tpu as pltpu

# ----- module hyper-parameters (match the PyTorch __init__ defaults) -------------------------
INPUT_CHANNELS = 1
CNN_OUT = 16
KERNEL = 25
POOL = 10
HIDDEN = 32
FC1_DIMS = [64, 32, 32, 13]
FC2_DIMS = [16, 16, 16, 1]


def _cnn_bilstm_kernel(xcol_ref, meta_ref,
                       convw_ref, convb_ref,
                       wihf_ref, whhf_ref, bf_ref,
                       wihb_ref, bb_ref,
                       *rest, B, T):
    # rest = 16 fc refs (w, b interleaved: fc1 x4, fc2 x4), out_ref, gates scratch
    fc_refs = rest[:16]
    out_ref = rest[16]
    gates_ref = rest[17]                                  # VMEM scratch (T, B, 4H) f32
    C = CNN_OUT
    H = HIDDEN

    # --- Conv1d (im2col matmul, bf16 operands -> f32 acc) + ReLU ------------------------------
    # xcol rows are TIME-major: row = l * B + b.
    y = jnp.dot(xcol_ref[...], convw_ref[...],
                preferred_element_type=jnp.float32) + convb_ref[...]
    y = jnp.maximum(y, 0.0)                               # (Lc*B, C) f32

    # --- MaxPool1d(kernel=POOL, stride=POOL): single fused reduction (tail drop = floor) ------
    y = y[: T * POOL * B, :]
    pooled = jnp.max(y.reshape(T, POOL, B, C), axis=1)    # (T, B, C)

    # --- BiLSTM forward direction (PyTorch gate order: i, f, g, o) -----------------------------
    # Hoisted input projection + bias: ONE matmul for all T steps, stored to VMEM scratch.
    gates_x = (jnp.dot(pooled.reshape(T * B, C).astype(jnp.bfloat16), wihf_ref[...],
                       preferred_element_type=jnp.float32) + bf_ref[...])    # (T*B, 4H)
    gates_ref[...] = gates_x.reshape(T, B, 4 * H)

    whhf = whhf_ref[...]                                  # (H, 4H) f32, loaded once

    def lstm_step(t, carry):
        h, c = carry
        gates = gates_ref[t] + jnp.dot(h, whhf, preferred_element_type=jnp.float32)
        sig = jax.nn.sigmoid(gates)                       # one EUP pass over full (B, 4H)
        tnh = jnp.tanh(gates)                             # one EUP pass over full (B, 4H)
        i = sig[:, 0 * H:1 * H]
        f = sig[:, 1 * H:2 * H]
        g = tnh[:, 2 * H:3 * H]
        o = sig[:, 3 * H:4 * H]
        c_new = f * c + i * g
        h_new = o * jnp.tanh(c_new)
        return h_new, c_new

    h0 = jnp.zeros((B, H), jnp.float32)
    c0 = jnp.zeros((B, H), jnp.float32)
    h_fwd, _ = jax.lax.fori_loop(0, T, lstm_step, (h0, c0), unroll=True)

    # Backward direction: only lstm_out[:, -1, :] is consumed downstream, which for the
    # reverse LSTM is its *first* step from a zero state, so the W_hh_reverse contribution
    # (and f_b * c0) is exactly zero.  Exact simplification, not an approximation.
    gates_b = (jnp.dot(pooled[T - 1].astype(jnp.bfloat16), wihb_ref[...],
                       preferred_element_type=jnp.float32) + bb_ref[...])
    sig_b = jax.nn.sigmoid(gates_b)
    tnh_b = jnp.tanh(gates_b)
    i_b = sig_b[:, 0 * H:1 * H]
    g_b = tnh_b[:, 2 * H:3 * H]
    o_b = sig_b[:, 3 * H:4 * H]
    h_bwd = o_b * jnp.tanh(i_b * g_b)

    feat = jnp.concatenate([h_fwd, h_bwd], axis=1)        # (B, 2H)

    def linear(x, w_ref, b_ref):
        return jnp.dot(x.astype(jnp.bfloat16), w_ref[...],
                       preferred_element_type=jnp.float32) + b_ref[...]

    # --- fc1: (Linear -> ReLU) x 4 -------------------------------------------------------------
    x1 = feat
    for li in range(4):
        x1 = jnp.maximum(linear(x1, fc_refs[2 * li], fc_refs[2 * li + 1]), 0.0)

    # --- concat meta, fc2: (Linear -> ReLU) x 3, then final Linear (ReLU popped) ---------------
    x2 = jnp.concatenate([x1, meta_ref[...]], axis=1)     # (B, 13 + 3)
    for li in range(3):
        x2 = jnp.maximum(linear(x2, fc_refs[8 + 2 * li], fc_refs[8 + 2 * li + 1]), 0.0)
    out_ref[...] = linear(x2, fc_refs[14], fc_refs[15])   # (B, 1), no final ReLU


def init_params(key):
    """Deterministic synthetic f32 parameters; weights stored pre-transposed (in, out)."""
    keys = jax.random.split(key, 32)
    it = iter(keys)

    def u(shape, scale=0.1):
        return jax.random.uniform(next(it), shape, jnp.float32, -1.0, 1.0) * scale

    params = {
        "conv_w": u((KERNEL, CNN_OUT)),       # Conv1d weight (C_out, 1, K) -> (K, C_out)
        "conv_b": u((1, CNN_OUT)),
        "wih_f": u((CNN_OUT, 4 * HIDDEN)),    # weight_ih_l0.T
        "whh_f": u((HIDDEN, 4 * HIDDEN)),     # weight_hh_l0.T
        "b_f":   u((1, 4 * HIDDEN)),          # bias_ih_l0 + bias_hh_l0
        "wih_b": u((CNN_OUT, 4 * HIDDEN)),    # weight_ih_l0_reverse.T
        "b_b":   u((1, 4 * HIDDEN)),          # bias_ih_l0_reverse + bias_hh_l0_reverse
        # weight_hh_l0_reverse is not needed: the consumed reverse output is the first
        # reverse step from a zero hidden state (exact).
    }
    fc = []
    in_dim = 2 * HIDDEN
    for d in FC1_DIMS:
        fc.append(u((in_dim, d)))
        fc.append(u((1, d)))
        in_dim = d
    in_dim = FC1_DIMS[-1] + 3
    for d in FC2_DIMS:
        fc.append(u((in_dim, d)))
        fc.append(u((1, d)))
        in_dim = d
    params["fc"] = fc
    return params


@jax.jit
def cnn_bilstm_forward(params, b_waveform, bm, freq, temp):
    B, Cin, L = b_waveform.shape
    assert Cin == INPUT_CHANNELS
    x = b_waveform[:, 0, :].astype(jnp.float32)              # (B, L)
    Lc = L - KERNEL + 1                                      # conv output length (no padding)
    T = Lc // POOL                                           # pooled sequence length (floor)

    # im2col patches, TIME-major rows (row = l*B + b) so the kernel needs no transpose.
    # TODO(synk): for production-scale L on v5e, build patches in-kernel to avoid the
    # KERNEL-x im2col HBM expansion; negligible at these shapes.
    gather_idx = jnp.arange(Lc)[:, None] + jnp.arange(KERNEL)[None, :]
    patches = x[:, gather_idx]                               # (B, Lc, K)
    xcol = (jnp.transpose(patches, (1, 0, 2))
            .reshape(Lc * B, KERNEL).astype(jnp.bfloat16))   # (Lc*B, K) bf16

    meta = jnp.stack([bm, freq, temp], axis=1).astype(jnp.float32)   # (B, 3)

    # Matmul operands in bf16 (MXU-native); biases and the recurrent W_hh stay f32.
    bf16 = lambda a: a.astype(jnp.bfloat16)
    fc = [bf16(p) if i % 2 == 0 else p for i, p in enumerate(params["fc"])]
    inputs = [xcol, meta,
              bf16(params["conv_w"]), params["conv_b"],
              bf16(params["wih_f"]), params["whh_f"], params["b_f"],
              bf16(params["wih_b"]), params["b_b"],
              *fc]

    kernel = functools.partial(_cnn_bilstm_kernel, B=B, T=T)
    vmem = pl.BlockSpec(memory_space=pltpu.MemorySpace.VMEM)
    out = pl.pallas_call(
        kernel,
        out_shape=jax.ShapeDtypeStruct((B, FC2_DIMS[-1]), jnp.float32),
        in_specs=[vmem] * len(inputs),
        out_specs=vmem,
        scratch_shapes=[pltpu.VMEM((T, B, 4 * HIDDEN), jnp.float32)],
    )(*inputs)
    return out


if __name__ == "__main__":
    key = jax.random.PRNGKey(0)
    k_param, k_x, k_bm, k_fr, k_tp = jax.random.split(key, 5)

    params = init_params(k_param)

    B, L = 2, 224                                            # conv len 200, pooled T = 20
    b_waveform = jax.random.normal(k_x, (B, INPUT_CHANNELS, L), jnp.float32)
    bm = jax.random.normal(k_bm, (B,), jnp.float32)
    freq = jax.random.normal(k_fr, (B,), jnp.float32)
    temp = jax.random.normal(k_tp, (B,), jnp.float32)

    out = cnn_bilstm_forward(params, b_waveform, bm, freq, temp)
    jax.block_until_ready(out)
    assert out.shape == (B, 1)
    print("KERNEL_OK")
</pallas_src>

<mosaic_0001>
module attributes {stable_mosaic.version = 11 : i64} {
  func.func @_cnn_bilstm_kernel(%arg0: memref<400x25xbf16, #tpu.memory_space<vmem>>, %arg1: memref<2x3xf32, #tpu.memory_space<vmem>>, %arg2: memref<25x16xbf16, #tpu.memory_space<vmem>>, %arg3: memref<1x16xf32, #tpu.memory_space<vmem>>, %arg4: memref<16x128xbf16, #tpu.memory_space<vmem>>, %arg5: memref<32x128xf32, #tpu.memory_space<vmem>>, %arg6: memref<1x128xf32, #tpu.memory_space<vmem>>, %arg7: memref<16x128xbf16, #tpu.memory_space<vmem>>, %arg8: memref<1x128xf32, #tpu.memory_space<vmem>>, %arg9: memref<64x64xbf16, #tpu.memory_space<vmem>>, %arg10: memref<1x64xf32, #tpu.memory_space<vmem>>, %arg11: memref<64x32xbf16, #tpu.memory_space<vmem>>, %arg12: memref<1x32xf32, #tpu.memory_space<vmem>>, %arg13: memref<32x32xbf16, #tpu.memory_space<vmem>>, %arg14: memref<1x32xf32, #tpu.memory_space<vmem>>, %arg15: memref<32x13xbf16, #tpu.memory_space<vmem>>, %arg16: memref<1x13xf32, #tpu.memory_space<vmem>>, %arg17: memref<16x16xbf16, #tpu.memory_space<vmem>>, %arg18: memref<1x16xf32, #tpu.memory_space<vmem>>, %arg19: memref<16x16xbf16, #tpu.memory_space<vmem>>, %arg20: memref<1x16xf32, #tpu.memory_space<vmem>>, %arg21: memref<16x16xbf16, #tpu.memory_space<vmem>>, %arg22: memref<1x16xf32, #tpu.memory_space<vmem>>, %arg23: memref<16x1xbf16, #tpu.memory_space<vmem>>, %arg24: memref<1x1xf32, #tpu.memory_space<vmem>>, %arg25: memref<2x1xf32, #tpu.memory_space<vmem>>, %arg26: memref<20x2x128xf32, #tpu.memory_space<vmem>>) attributes {dimension_semantics = [], scalar_prefetch = 0 : i64, scratch_operands = 1 : i64, tpu.core_type = #tpu.core_type<tc>} {
    %c0 = arith.constant 0 : index
    %c0_0 = arith.constant 0 : index
    %0 = vector.load %arg0[%c0, %c0_0] : memref<400x25xbf16, #tpu.memory_space<vmem>>, vector<400x25xbf16>
    %c0_1 = arith.constant 0 : index
    %c0_2 = arith.constant 0 : index
    %1 = vector.load %arg2[%c0_1, %c0_2] : memref<25x16xbf16, #tpu.memory_space<vmem>>, vector<25x16xbf16>
    %cst = arith.constant dense<0.000000e+00> : vector<400x16xf32>
    %2 = tpu.matmul %0, %1, %cst {dimension_numbers = #tpu.dot_dimension_numbers<[1], [0], [0], [1], [0, 0, 1, 1], [], []>} : vector<400x25xbf16>, vector<25x16xbf16>, vector<400x16xf32> -> vector<400x16xf32>
    %c0_3 = arith.constant 0 : index
    %c0_4 = arith.constant 0 : index
    %3 = vector.load %arg3[%c0_3, %c0_4] : memref<1x16xf32, #tpu.memory_space<vmem>>, vector<1x16xf32>
    %4 = vector.broadcast %3 : vector<1x16xf32> to vector<400x16xf32>
    %5 = arith.addf %2, %4 : vector<400x16xf32>
    %cst_5 = arith.constant 0.000000e+00 : f32
    %6 = vector.broadcast %cst_5 : f32 to vector<400x16xf32>
    %7 = arith.maximumf %5, %6 : vector<400x16xf32>
    %8 = vector.shape_cast %7 : vector<400x16xf32> to vector<20x10x2x16xf32>
    %cst_6 = arith.constant dense<0xFF800000> : vector<20x2x16xf32>
    %9 = vector.multi_reduction <maximumf>, %8, %cst_6 [1] : vector<20x10x2x16xf32> to vector<20x2x16xf32>
    %10 = vector.shape_cast %9 : vector<20x2x16xf32> to vector<40x16xf32>
    %11 = arith.truncf %10 : vector<40x16xf32> to vector<40x16xbf16>
    %c0_7 = arith.constant 0 : index
    %c0_8 = arith.constant 0 : index
    %12 = vector.load %arg4[%c0_7, %c0_8] : memref<16x128xbf16, #tpu.memory_space<vmem>>, vector<16x128xbf16>
    %cst_9 = arith.constant dense<0.000000e+00> : vector<40x128xf32>
    %13 = tpu.matmul %11, %12, %cst_9 {dimension_numbers = #tpu.dot_dimension_numbers<[1], [0], [0], [1], [0, 0, 1, 1], [], []>} : vector<40x16xbf16>, vector<16x128xbf16>, vector<40x128xf32> -> vector<40x128xf32>
    %c0_10 = arith.constant 0 : index
    %c0_11 = arith.constant 0 : index
    %14 = vector.load %arg6[%c0_10, %c0_11] : memref<1x128xf32, #tpu.memory_space<vmem>>, vector<1x128xf32>
    %15 = vector.broadcast %14 : vector<1x128xf32> to vector<40x128xf32>
    %16 = arith.addf %13, %15 : vector<40x128xf32>
    %17 = vector.shape_cast %16 : vector<40x128xf32> to vector<20x2x128xf32>
    %c0_12 = arith.constant 0 : index
    %c0_13 = arith.constant 0 : index
    %c0_14 = arith.constant 0 : index
    %18 = vector.load %arg26[%c0_12, %c0_13, %c0_14] : memref<20x2x128xf32, #tpu.memory_space<vmem>>, vector<20x2x128xf32>
    tpu.vector_store %arg26[%c0_12, %c0_13, %c0_14], %17 {strides = array<i32>} : memref<20x2x128xf32, #tpu.memory_space<vmem>>, vector<20x2x128xf32>,
    %c0_15 = arith.constant 0 : index
    %c0_16 = arith.constant 0 : index
    %19 = vector.load %arg5[%c0_15, %c0_16] : memref<32x128xf32, #tpu.memory_space<vmem>>, vector<32x128xf32>
    %cst_17 = arith.constant 0.000000e+00 : f32
    %20 = vector.broadcast %cst_17 : f32 to vector<2x32xf32>
    %cst_18 = arith.constant 0.000000e+00 : f32
    %21 = vector.broadcast %cst_18 : f32 to vector<2x32xf32>
    %c0_i32 = arith.constant 0 : i32
    %22 = arith.index_cast %c0_i32 : i32 to index
    %c0_19 = arith.constant 0 : index
    %c0_20 = arith.constant 0 : index
    %23 = vector.load %arg26[%22, %c0_19, %c0_20] : memref<20x2x128xf32, #tpu.memory_space<vmem>>, vector<1x2x128xf32>
    %24 = vector.shape_cast %23 : vector<1x2x128xf32> to vector<2x128xf32>
    %cst_21 = arith.constant dense<0.000000e+00> : vector<2x128xf32>
    %25 = tpu.matmul %20, %19, %cst_21 {dimension_numbers = #tpu.dot_dimension_numbers<[1], [0], [0], [1], [0, 0, 1, 1], [], []>} : vector<2x32xf32>, vector<32x128xf32>, vector<2x128xf32> -> vector<2x128xf32>
    %26 = arith.addf %24, %25 : vector<2x128xf32>
    %27 = arith.negf %26 : vector<2x128xf32>
    %28 = math.exp %27 : vector<2x128xf32>
    %cst_22 = arith.constant 1.000000e+00 : f32
    %29 = vector.broadcast %cst_22 : f32 to vector<2x128xf32>
    %30 = arith.addf %29, %28 : vector<2x128xf32>
    %31 = arith.divf %29, %30 : vector<2x128xf32>
    %32 = math.tanh %26 : vector<2x128xf32>
    %33 = vector.extract_strided_slice %31 {offsets = [0, 0], sizes = [2, 32], strides = [1, 1]} : vector<2x128xf32> to vector<2x32xf32>
    %34 = vector.extract_strided_slice %31 {offsets = [0, 32], sizes = [2, 32], strides = [1, 1]} : vector<2x128xf32> to vector<2x32xf32>
    %35 = vector.extract_strided_slice %32 {offsets = [0, 64], sizes = [2, 32], strides = [1, 1]} : vector<2x128xf32> to vector<2x32xf32>
    %36 = vector.extract_strided_slice %31 {offsets = [0, 96], sizes = [2, 32], strides = [1, 1]} : vector<2x128xf32> to vector<2x32xf32>
    %37 = arith.mulf %34, %21 : vector<2x32xf32>
    %38 = arith.mulf %33, %35 : vector<2x32xf32>
    %39 = arith.addf %37, %38 : vector<2x32xf32>
    %40 = math.tanh %39 : vector<2x32xf32>
    %41 = arith.mulf %36, %40 : vector<2x32xf32>
    %c1_i32 = arith.constant 1 : i32
    %42 = arith.index_cast %c1_i32 : i32 to index
    %c0_23 = arith.constant 0 : index
    %c0_24 = arith.constant 0 : index
    %43 = vector.load %arg26[%42, %c0_23, %c0_24] : memref<20x2x128xf32, #tpu.memory_space<vmem>>, vector<1x2x128xf32>
    %44 = vector.shape_cast %43 : vector<1x2x128xf32> to vector<2x128xf32>
    %cst_25 = arith.constant dense<0.000000e+00> : vector<2x128xf32>
    %45 = tpu.matmul %41, %19, %cst_25 {dimension_numbers = #tpu.dot_dimension_numbers<[1], [0], [0], [1], [0, 0, 1, 1], [], []>} : vector<2x32xf32>, vector<32x128xf32>, vector<2x128xf32> -> vector<2x128xf32>
    %46 = arith.addf %44, %45 : vector<2x128xf32>
    %47 = arith.negf %46 : vector<2x128xf32>
    %48 = math.exp %47 : vector<2x128xf32>
    %cst_26 = arith.constant 1.000000e+00 : f32
    %49 = vector.broadcast %cst_26 : f32 to vector<2x128xf32>
    %50 = arith.addf %49, %48 : vector<2x128xf32>
    %51 = arith.divf %49, %50 : vector<2x128xf32>
    %52 = math.tanh %46 : vector<2x128xf32>
    %53 = vector.extract_strided_slice %51 {offsets = [0, 0], sizes = [2, 32], strides = [1, 1]} : vector<2x128xf32> to vector<2x32xf32>
    %54 = vector.extract_strided_slice %51 {offsets = [0, 32], sizes = [2, 32], strides = [1, 1]} : vector<2x128xf32> to vector<2x32xf32>
    %55 = vector.extract_strided_slice %52 {offsets = [0, 64], sizes = [2, 32], strides = [1, 1]} : vector<2x128xf32> to vector<2x32xf32>
    %56 = vector.extract_strided_slice %51 {offsets = [0, 96], sizes = [2, 32], strides = [1, 1]} : vector<2x128xf32> to vector<2x32xf32>
    %57 = arith.mulf %54, %39 : vector<2x32xf32>
    %58 = arith.mulf %53, %55 : vector<2x32xf32>
    %59 = arith.addf %57, %58 : vector<2x32xf32>
    %60 = math.tanh %59 : vector<2x32xf32>
    %61 = arith.mulf %56, %60 : vector<2x32xf32>
    %c2_i32 = arith.constant 2 : i32
    %62 = arith.index_cast %c2_i32 : i32 to index
    %c0_27 = arith.constant 0 : index
    %c0_28 = arith.constant 0 : index
    %63 = vector.load %arg26[%62, %c0_27, %c0_28] : memref<20x2x128xf32, #tpu.memory_space<vmem>>, vector<1x2x128xf32>
    %64 = vector.shape_cast %63 : vector<1x2x128xf32> to vector<2x128xf32>
    %cst_29 = arith.constant dense<0.000000e+00> : vector<2x128xf32>
    %65 = tpu.matmul %61, %19, %cst_29 {dimension_numbers = #tpu.dot_dimension_numbers<[1], [0], [0], [1], [0, 0, 1, 1], [], []>} : vector<2x32xf32>, vector<32x128xf32>, vector<2x128xf32> -> vector<2x128xf32>
    %66 = arith.addf %64, %65 : vector<2x128xf32>
    %67 = arith.negf %66 : vector<2x128xf32>
    %68 = math.exp %67 : vector<2x128xf32>
    %cst_30 = arith.constant 1.000000e+00 : f32
    %69 = vector.broadcast %cst_30 : f32 to vector<2x128xf32>
    %70 = arith.addf %69, %68 : vector<2x128xf32>
    %71 = arith.divf %69, %70 : vector<2x128xf32>
    %72 = math.tanh %66 : vector<2x128xf32>
    %73 = vector.extract_strided_slice %71 {offsets = [0, 0], sizes = [2, 32], strides = [1, 1]} : vector<2x128xf32> to vector<2x32xf32>
    %74 = vector.extract_strided_slice %71 {offsets = [0, 32], sizes = [2, 32], strides = [1, 1]} : vector<2x128xf32> to vector<2x32xf32>
    %75 = vector.extract_strided_slice %72 {offsets = [0, 64], sizes = [2, 32], strides = [1, 1]} : vector<2x128xf32> to vector<2x32xf32>
    %76 = vector.extract_strided_slice %71 {offsets = [0, 96], sizes = [2, 32], strides = [1, 1]} : vector<2x128xf32> to vector<2x32xf32>
    %77 = arith.mulf %74, %59 : vector<2x32xf32>
    %78 = arith.mulf %73, %75 : vector<2x32xf32>
    %79 = arith.addf %77, %78 : vector<2x32xf32>
    %80 = math.tanh %79 : vector<2x32xf32>
    %81 = arith.mulf %76, %80 : vector<2x32xf32>
    %c3_i32 = arith.constant 3 : i32
    %82 = arith.index_cast %c3_i32 : i32 to index
    %c0_31 = arith.constant 0 : index
    %c0_32 = arith.constant 0 : index
    %83 = vector.load %arg26[%82, %c0_31, %c0_32] : memref<20x2x128xf32, #tpu.memory_space<vmem>>, vector<1x2x128xf32>
    %84 = vector.shape_cast %83 : vector<1x2x128xf32> to vector<2x128xf32>
    %cst_33 = arith.constant dense<0.000000e+00> : vector<2x128xf32>
    %85 = tpu.matmul %81, %19, %cst_33 {dimension_numbers = #tpu.dot_dimension_numbers<[1], [0], [0], [1], [0, 0, 1, 1], [], []>} : vector<2x32xf32>, vector<32x128xf32>, vector<2x128xf32> -> vector<2x128xf32>
    %86 = arith.addf %84, %85 : vector<2x128xf32>
    %87 = arith.negf %86 : vector<2x128xf32>
    %88 = math.exp %87 : vector<2x128xf32>
    %cst_34 = arith.constant 1.000000e+00 : f32
    %89 = vector.broadcast %cst_34 : f32 to vector<2x128xf32>
    %90 = arith.addf %89, %88 : vector<2x128xf32>
    %91 = arith.divf %89, %90 : vector<2x128xf32>
    %92 = math.tanh %86 : vector<2x128xf32>
    %93 = vector.extract_strided_slice %91 {offsets = [0, 0], sizes = [2, 32], strides = [1, 1]} : vector<2x128xf32> to vector<2x32xf32>
    %94 = vector.extract_strided_slice %91 {offsets = [0, 32], sizes = [2, 32], strides = [1, 1]} : vector<2x128xf32> to vector<2x32xf32>
    %95 = vector.extract_strided_slice %92 {offsets = [0, 64], sizes = [2, 32], strides = [1, 1]} : vector<2x128xf32> to vector<2x32xf32>
    %96 = vector.extract_strided_slice %91 {offsets = [0, 96], sizes = [2, 32], strides = [1, 1]} : vector<2x128xf32> to vector<2x32xf32>
    %97 = arith.mulf %94, %79 : vector<2x32xf32>
    %98 = arith.mulf %93, %95 : vector<2x32xf32>
    %99 = arith.addf %97, %98 : vector<2x32xf32>
    %100 = math.tanh %99 : vector<2x32xf32>
    %101 = arith.mulf %96, %100 : vector<2x32xf32>
    %c4_i32 = arith.constant 4 : i32
    %102 = arith.index_cast %c4_i32 : i32 to index
    %c0_35 = arith.constant 0 : index
    %c0_36 = arith.constant 0 : index
    %103 = vector.load %arg26[%102, %c0_35, %c0_36] : memref<20x2x128xf32, #tpu.memory_space<vmem>>, vector<1x2x128xf32>
    %104 = vector.shape_cast %103 : vector<1x2x128xf32> to vector<2x128xf32>
    %cst_37 = arith.constant dense<0.000000e+00> : vector<2x128xf32>
    %105 = tpu.matmul %101, %19, %cst_37 {dimension_numbers = #tpu.dot_dimension_numbers<[1], [0], [0], [1], [0, 0, 1, 1], [], []>} : vector<2x32xf32>, vector<32x128xf32>, vector<2x128xf32> -> vector<2x128xf32>
    %106 = arith.addf %104, %105 : vector<2x128xf32>
    %107 = arith.negf %106 : vector<2x128xf32>
    %108 = math.exp %107 : vector<2x128xf32>
    %cst_38 = arith.constant 1.000000e+00 : f32
    %109 = vector.broadcast %cst_38 : f32 to vector<2x128xf32>
    %110 = arith.addf %109, %108 : vector<2x128xf32>
    %111 = arith.divf %109, %110 : vector<2x128xf32>
    %112 = math.tanh %106 : vector<2x128xf32>
    %113 = vector.extract_strided_slice %111 {offsets = [0, 0], sizes = [2, 32], strides = [1, 1]} : vector<2x128xf32> to vector<2x32xf32>
    %114 = vector.extract_strided_slice %111 {offsets = [0, 32], sizes = [2, 32], strides = [1, 1]} : vector<2x128xf32> to vector<2x32xf32>
    %115 = vector.extract_strided_slice %112 {offsets = [0, 64], sizes = [2, 32], strides = [1, 1]} : vector<2x128xf32> to vector<2x32xf32>
    %116 = vector.extract_strided_slice %111 {offsets = [0, 96], sizes = [2, 32], strides = [1, 1]} : vector<2x128xf32> to vector<2x32xf32>
    %117 = arith.mulf %114, %99 : vector<2x32xf32>
    %118 = arith.mulf %113, %115 : vector<2x32xf32>
    %119 = arith.addf %117, %118 : vector<2x32xf32>
    %120 = math.tanh %119 : vector<2x32xf32>
    %121 = arith.mulf %116, %120 : vector<2x32xf32>
    %c5_i32 = arith.constant 5 : i32
    %122 = arith.index_cast %c5_i32 : i32 to index
    %c0_39 = arith.constant 0 : index
    %c0_40 = arith.constant 0 : index
    %123 = vector.load %arg26[%122, %c0_39, %c0_40] : memref<20x2x128xf32, #tpu.memory_space<vmem>>, vector<1x2x128xf32>
    %124 = vector.shape_cast %123 : vector<1x2x128xf32> to vector<2x128xf32>
    %cst_41 = arith.constant dense<0.000000e+00> : vector<2x128xf32>
    %125 = tpu.matmul %121, %19, %cst_41 {dimension_numbers = #tpu.dot_dimension_numbers<[1], [0], [0], [1], [0, 0, 1, 1], [], []>} : vector<2x32xf32>, vector<32x128xf32>, vector<2x128xf32> -> vector<2x128xf32>
    %126 = arith.addf %124, %125 : vector<2x128xf32>
    %127 = arith.negf %126 : vector<2x128xf32>
    %128 = math.exp %127 : vector<2x128xf32>
    %cst_42 = arith.constant 1.000000e+00 : f32
    %129 = vector.broadcast %cst_42 : f32 to vector<2x128xf32>
    %130 = arith.addf %129, %128 : vector<2x128xf32>
    %131 = arith.divf %129, %130 : vector<2x128xf32>
    %132 = math.tanh %126 : vector<2x128xf32>
    %133 = vector.extract_strided_slice %131 {offsets = [0, 0], sizes = [2, 32], strides = [1, 1]} : vector<2x128xf32> to vector<2x32xf32>
    %134 = vector.extract_strided_slice %131 {offsets = [0, 32], sizes = [2, 32], strides = [1, 1]} : vector<2x128xf32> to vector<2x32xf32>
    %135 = vector.extract_strided_slice %132 {offsets = [0, 64], sizes = [2, 32], strides = [1, 1]} : vector<2x128xf32> to vector<2x32xf32>
    %136 = vector.extract_strided_slice %131 {offsets = [0, 96], sizes = [2, 32], strides = [1, 1]} : vector<2x128xf32> to vector<2x32xf32>
    %137 = arith.mulf %134, %119 : vector<2x32xf32>
    %138 = arith.mulf %133, %135 : vector<2x32xf32>
    %139 = arith.addf %137, %138 : vector<2x32xf32>
    %140 = math.tanh %139 : vector<2x32xf32>
    %141 = arith.mulf %136, %140 : vector<2x32xf32>
    %c6_i32 = arith.constant 6 : i32
    %142 = arith.index_cast %c6_i32 : i32 to index
    %c0_43 = arith.constant 0 : index
    %c0_44 = arith.constant 0 : index
    %143 = vector.load %arg26[%142, %c0_43, %c0_44] : memref<20x2x128xf32, #tpu.memory_space<vmem>>, vector<1x2x128xf32>
    %144 = vector.shape_cast %143 : vector<1x2x128xf32> to vector<2x128xf32>
    %cst_45 = arith.constant dense<0.000000e+00> : vector<2x128xf32>
    %145 = tpu.matmul %141, %19, %cst_45 {dimension_numbers = #tpu.dot_dimension_numbers<[1], [0], [0], [1], [0, 0, 1, 1], [], []>} : vector<2x32xf32>, vector<32x128xf32>, vector<2x128xf32> -> vector<2x128xf32>
    %146 = arith.addf %144, %145 : vector<2x128xf32>
    %147 = arith.negf %146 : vector<2x128xf32>
    %148 = math.exp %147 : vector<2x128xf32>
    %cst_46 = arith.constant 1.000000e+00 : f32
    %149 = vector.broadcast %cst_46 : f32 to vector<2x128xf32>
    %150 = arith.addf %149, %148 : vector<2x128xf32>
    %151 = arith.divf %149, %150 : vector<2x128xf32>
    %152 = math.tanh %146 : vector<2x128xf32>
    %153 = vector.extract_strided_slice %151 {offsets = [0, 0], sizes = [2, 32], strides = [1, 1]} : vector<2x128xf32> to vector<2x32xf32>
    %154 = vector.extract_strided_slice %151 {offsets = [0, 32], sizes = [2, 32], strides = [1, 1]} : vector<2x128xf32> to vector<2x32xf32>
    %155 = vector.extract_strided_slice %152 {offsets = [0, 64], sizes = [2, 32], strides = [1, 1]} : vector<2x128xf32> to vector<2x32xf32>
    %156 = vector.extract_strided_slice %151 {offsets = [0, 96], sizes = [2, 32], strides = [1, 1]} : vector<2x128xf32> to vector<2x32xf32>
    %157 = arith.mulf %154, %139 : vector<2x32xf32>
    %158 = arith.mulf %153, %155 : vector<2x32xf32>
    %159 = arith.addf %157, %158 : vector<2x32xf32>
    %160 = math.tanh %159 : vector<2x32xf32>
    %161 = arith.mulf %156, %160 : vector<2x32xf32>
    %c7_i32 = arith.constant 7 : i32
    %162 = arith.index_cast %c7_i32 : i32 to index
    %c0_47 = arith.constant 0 : index
    %c0_48 = arith.constant 0 : index
    %163 = vector.load %arg26[%162, %c0_47, %c0_48] : memref<20x2x128xf32, #tpu.memory_space<vmem>>, vector<1x2x128xf32>
    %164 = vector.shape_cast %163 : vector<1x2x128xf32> to vector<2x128xf32>
    %cst_49 = arith.constant dense<0.000000e+00> : vector<2x128xf32>
    %165 = tpu.matmul %161, %19, %cst_49 {dimension_numbers = #tpu.dot_dimension_numbers<[1], [0], [0], [1], [0, 0, 1, 1], [], []>} : vector<2x32xf32>, vector<32x128xf32>, vector<2x128xf32> -> vector<2x128xf32>
    %166 = arith.addf %164, %165 : vector<2x128xf32>
    %167 = arith.negf %166 : vector<2x128xf32>
    %168 = math.exp %167 : vector<2x128xf32>
    %cst_50 = arith.constant 1.000000e+00 : f32
    %169 = vector.broadcast %cst_50 : f32 to vector<2x128xf32>
    %170 = arith.addf %169, %168 : vector<2x128xf32>
    %171 = arith.divf %169, %170 : vector<2x128xf32>
    %172 = math.tanh %166 : vector<2x128xf32>
    %173 = vector.extract_strided_slice %171 {offsets = [0, 0], sizes = [2, 32], strides = [1, 1]} : vector<2x128xf32> to vector<2x32xf32>
    %174 = vector.extract_strided_slice %171 {offsets = [0, 32], sizes = [2, 32], strides = [1, 1]} : vector<2x128xf32> to vector<2x32xf32>
    %175 = vector.extract_strided_slice %172 {offsets = [0, 64], sizes = [2, 32], strides = [1, 1]} : vector<2x128xf32> to vector<2x32xf32>
    %176 = vector.extract_strided_slice %171 {offsets = [0, 96], sizes = [2, 32], strides = [1, 1]} : vector<2x128xf32> to vector<2x32xf32>
    %177 = arith.mulf %174, %159 : vector<2x32xf32>
    %178 = arith.mulf %173, %175 : vector<2x32xf32>
    %179 = arith.addf %177, %178 : vector<2x32xf32>
    %180 = math.tanh %179 : vector<2x32xf32>
    %181 = arith.mulf %176, %180 : vector<2x32xf32>
    %c8_i32 = arith.constant 8 : i32
    %182 = arith.index_cast %c8_i32 : i32 to index
    %c0_51 = arith.constant 0 : index
    %c0_52 = arith.constant 0 : index
    %183 = vector.load %arg26[%182, %c0_51, %c0_52] : memref<20x2x128xf32, #tpu.memory_space<vmem>>, vector<1x2x128xf32>
    %184 = vector.shape_cast %183 : vector<1x2x128xf32> to vector<2x128xf32>
    %cst_53 = arith.constant dense<0.000000e+00> : vector<2x128xf32>
    %185 = tpu.matmul %181, %19, %cst_53 {dimension_numbers = #tpu.dot_dimension_numbers<[1], [0], [0], [1], [0, 0, 1, 1], [], []>} : vector<2x32xf32>, vector<32x128xf32>, vector<2x128xf32> -> vector<2x128xf32>
    %186 = arith.addf %184, %185 : vector<2x128xf32>
    %187 = arith.negf %186 : vector<2x128xf32>
    %188 = math.exp %187 : vector<2x128xf32>
    %cst_54 = arith.constant 1.000000e+00 : f32
    %189 = vector.broadcast %cst_54 : f32 to vector<2x128xf32>
    %190 = arith.addf %189, %188 : vector<2x128xf32>
    %191 = arith.divf %189, %190 : vector<2x128xf32>
    %192 = math.tanh %186 : vector<2x128xf32>
    %193 = vector.extract_strided_slice %191 {offsets = [0, 0], sizes = [2, 32], strides = [1, 1]} : vector<2x128xf32> to vector<2x32xf32>
    %194 = vector.extract_strided_slice %191 {offsets = [0, 32], sizes = [2, 32], strides = [1, 1]} : vector<2x128xf32> to vector<2x32xf32>
    %195 = vector.extract_strided_slice %192 {offsets = [0, 64], sizes = [2, 32], strides = [1, 1]} : vector<2x128xf32> to vector<2x32xf32>
    %196 = vector.extract_strided_slice %191 {offsets = [0, 96], sizes = [2, 32], strides = [1, 1]} : vector<2x128xf32> to vector<2x32xf32>
    %197 = arith.mulf %194, %179 : vector<2x32xf32>
    %198 = arith.mulf %193, %195 : vector<2x32xf32>
    %199 = arith.addf %197, %198 : vector<2x32xf32>
    %200 = math.tanh %199 : vector<2x32xf32>
    %201 = arith.mulf %196, %200 : vector<2x32xf32>
    %c9_i32 = arith.constant 9 : i32
    %202 = arith.index_cast %c9_i32 : i32 to index
    %c0_55 = arith.constant 0 : index
    %c0_56 = arith.constant 0 : index
    %203 = vector.load %arg26[%202, %c0_55, %c0_56] : memref<20x2x128xf32, #tpu.memory_space<vmem>>, vector<1x2x128xf32>
    %204 = vector.shape_cast %203 : vector<1x2x128xf32> to vector<2x128xf32>
    %cst_57 = arith.constant dense<0.000000e+00> : vector<2x128xf32>
    %205 = tpu.matmul %201, %19, %cst_57 {dimension_numbers = #tpu.dot_dimension_numbers<[1], [0], [0], [1], [0, 0, 1, 1], [], []>} : vector<2x32xf32>, vector<32x128xf32>, vector<2x128xf32> -> vector<2x128xf32>
    %206 = arith.addf %204, %205 : vector<2x128xf32>
    %207 = arith.negf %206 : vector<2x128xf32>
    %208 = math.exp %207 : vector<2x128xf32>
    %cst_58 = arith.constant 1.000000e+00 : f32
    %209 = vector.broadcast %cst_58 : f32 to vector<2x128xf32>
    %210 = arith.addf %209, %208 : vector<2x128xf32>
    %211 = arith.divf %209, %210 : vector<2x128xf32>
    %212 = math.tanh %206 : vector<2x128xf32>
    %213 = vector.extract_strided_slice %211 {offsets = [0, 0], sizes = [2, 32], strides = [1, 1]} : vector<2x128xf32> to vector<2x32xf32>
    %214 = vector.extract_strided_slice %211 {offsets = [0, 32], sizes = [2, 32], strides = [1, 1]} : vector<2x128xf32> to vector<2x32xf32>
    %215 = vector.extract_strided_slice %212 {offsets = [0, 64], sizes = [2, 32], strides = [1, 1]} : vector<2x128xf32> to vector<2x32xf32>
    %216 = vector.extract_strided_slice %211 {offsets = [0, 96], sizes = [2, 32], strides = [1, 1]} : vector<2x128xf32> to vector<2x32xf32>
    %217 = arith.mulf %214, %199 : vector<2x32xf32>
    %218 = arith.mulf %213, %215 : vector<2x32xf32>
    %219 = arith.addf %217, %218 : vector<2x32xf32>
    %220 = math.tanh %219 : vector<2x32xf32>
    %221 = arith.mulf %216, %220 : vector<2x32xf32>
    %c10_i32 = arith.constant 10 : i32
    %222 = arith.index_cast %c10_i32 : i32 to index
    %c0_59 = arith.constant 0 : index
    %c0_60 = arith.constant 0 : index
    %223 = vector.load %arg26[%222, %c0_59, %c0_60] : memref<20x2x128xf32, #tpu.memory_space<vmem>>, vector<1x2x128xf32>
    %224 = vector.shape_cast %223 : vector<1x2x128xf32> to vector<2x128xf32>
    %cst_61 = arith.constant dense<0.000000e+00> : vector<2x128xf32>
    %225 = tpu.matmul %221, %19, %cst_61 {dimension_numbers = #tpu.dot_dimension_numbers<[1], [0], [0], [1], [0, 0, 1, 1], [], []>} : vector<2x32xf32>, vector<32x128xf32>, vector<2x128xf32> -> vector<2x128xf32>
    %226 = arith.addf %224, %225 : vector<2x128xf32>
    %227 = arith.negf %226 : vector<2x128xf32>
    %228 = math.exp %227 : vector<2x128xf32>
    %cst_62 = arith.constant 1.000000e+00 : f32
    %229 = vector.broadcast %cst_62 : f32 to vector<2x128xf32>
    %230 = arith.addf %229, %228 : vector<2x128xf32>
    %231 = arith.divf %229, %230 : vector<2x128xf32>
    %232 = math.tanh %226 : vector<2x128xf32>
    %233 = vector.extract_strided_slice %231 {offsets = [0, 0], sizes = [2, 32], strides = [1, 1]} : vector<2x128xf32> to vector<2x32xf32>
    %234 = vector.extract_strided_slice %231 {offsets = [0, 32], sizes = [2, 32], strides = [1, 1]} : vector<2x128xf32> to vector<2x32xf32>
    %235 = vector.extract_strided_slice %232 {offsets = [0, 64], sizes = [2, 32], strides = [1, 1]} : vector<2x128xf32> to vector<2x32xf32>
    %236 = vector.extract_strided_slice %231 {offsets = [0, 96], sizes = [2, 32], strides = [1, 1]} : vector<2x128xf32> to vector<2x32xf32>
    %237 = arith.mulf %234, %219 : vector<2x32xf32>
    %238 = arith.mulf %233, %235 : vector<2x32xf32>
    %239 = arith.addf %237, %238 : vector<2x32xf32>
    %240 = math.tanh %239 : vector<2x32xf32>
    %241 = arith.mulf %236, %240 : vector<2x32xf32>
    %c11_i32 = arith.constant 11 : i32
    %242 = arith.index_cast %c11_i32 : i32 to index
    %c0_63 = arith.constant 0 : index
    %c0_64 = arith.constant 0 : index
    %243 = vector.load %arg26[%242, %c0_63, %c0_64] : memref<20x2x128xf32, #tpu.memory_space<vmem>>, vector<1x2x128xf32>
    %244 = vector.shape_cast %243 : vector<1x2x128xf32> to vector<2x128xf32>
    %cst_65 = arith.constant dense<0.000000e+00> : vector<2x128xf32>
    %245 = tpu.matmul %241, %19, %cst_65 {dimension_numbers = #tpu.dot_dimension_numbers<[1], [0], [0], [1], [0, 0, 1, 1], [], []>} : vector<2x32xf32>, vector<32x128xf32>, vector<2x128xf32> -> vector<2x128xf32>
    %246 = arith.addf %244, %245 : vector<2x128xf32>
    %247 = arith.negf %246 : vector<2x128xf32>
    %248 = math.exp %247 : vector<2x128xf32>
    %cst_66 = arith.constant 1.000000e+00 : f32
    %249 = vector.broadcast %cst_66 : f32 to vector<2x128xf32>
    %250 = arith.addf %249, %248 : vector<2x128xf32>
    %251 = arith.divf %249, %250 : vector<2x128xf32>
    %252 = math.tanh %246 : vector<2x128xf32>
    %253 = vector.extract_strided_slice %251 {offsets = [0, 0], sizes = [2, 32], strides = [1, 1]} : vector<2x128xf32> to vector<2x32xf32>
    %254 = vector.extract_strided_slice %251 {offsets = [0, 32], sizes = [2, 32], strides = [1, 1]} : vector<2x128xf32> to vector<2x32xf32>
    %255 = vector.extract_strided_slice %252 {offsets = [0, 64], sizes = [2, 32], strides = [1, 1]} : vector<2x128xf32> to vector<2x32xf32>
    %256 = vector.extract_strided_slice %251 {offsets = [0, 96], sizes = [2, 32], strides = [1, 1]} : vector<2x128xf32> to vector<2x32xf32>
    %257 = arith.mulf %254, %239 : vector<2x32xf32>
    %258 = arith.mulf %253, %255 : vector<2x32xf32>
    %259 = arith.addf %257, %258 : vector<2x32xf32>
    %260 = math.tanh %259 : vector<2x32xf32>
    %261 = arith.mulf %256, %260 : vector<2x32xf32>
    %c12_i32 = arith.constant 12 : i32
    %262 = arith.index_cast %c12_i32 : i32 to index
    %c0_67 = arith.constant 0 : index
    %c0_68 = arith.constant 0 : index
    %263 = vector.load %arg26[%262, %c0_67, %c0_68] : memref<20x2x128xf32, #tpu.memory_space<vmem>>, vector<1x2x128xf32>
    %264 = vector.shape_cast %263 : vector<1x2x128xf32> to vector<2x128xf32>
    %cst_69 = arith.constant dense<0.000000e+00> : vector<2x128xf32>
    %265 = tpu.matmul %261, %19, %cst_69 {dimension_numbers = #tpu.dot_dimension_numbers<[1], [0], [0], [1], [0, 0, 1, 1], [], []>} : vector<2x32xf32>, vector<32x128xf32>, vector<2x128xf32> -> vector<2x128xf32>
    %266 = arith.addf %264, %265 : vector<2x128xf32>
    %267 = arith.negf %266 : vector<2x128xf32>
    %268 = math.exp %267 : vector<2x128xf32>
    %cst_70 = arith.constant 1.000000e+00 : f32
    %269 = vector.broadcast %cst_70 : f32 to vector<2x128xf32>
    %270 = arith.addf %269, %268 : vector<2x128xf32>
    %271 = arith.divf %269, %270 : vector<2x128xf32>
    %272 = math.tanh %266 : vector<2x128xf32>
    %273 = vector.extract_strided_slice %271 {offsets = [0, 0], sizes = [2, 32], strides = [1, 1]} : vector<2x128xf32> to vector<2x32xf32>
    %274 = vector.extract_strided_slice %271 {offsets = [0, 32], sizes = [2, 32], strides = [1, 1]} : vector<2x128xf32> to vector<2x32xf32>
    %275 = vector.extract_strided_slice %272 {offsets = [0, 64], sizes = [2, 32], strides = [1, 1]} : vector<2x128xf32> to vector<2x32xf32>
    %276 = vector.extract_strided_slice %271 {offsets = [0, 96], sizes = [2, 32], strides = [1, 1]} : vector<2x128xf32> to vector<2x32xf32>
    %277 = arith.mulf %274, %259 : vector<2x32xf32>
    %278 = arith.mulf %273, %275 : vector<2x32xf32>
    %279 = arith.addf %277, %278 : vector<2x32xf32>
    %280 = math.tanh %279 : vector<2x32xf32>
    %281 = arith.mulf %276, %280 : vector<2x32xf32>
    %c13_i32 = arith.constant 13 : i32
    %282 = arith.index_cast %c13_i32 : i32 to index
    %c0_71 = arith.constant 0 : index
    %c0_72 = arith.constant 0 : index
    %283 = vector.load %arg26[%282, %c0_71, %c0_72] : memref<20x2x128xf32, #tpu.memory_space<vmem>>, vector<1x2x128xf32>
    %284 = vector.shape_cast %283 : vector<1x2x128xf32> to vector<2x128xf32>
    %cst_73 = arith.constant dense<0.000000e+00> : vector<2x128xf32>
    %285 = tpu.matmul %281, %19, %cst_73 {dimension_numbers = #tpu.dot_dimension_numbers<[1], [0], [0], [1], [0, 0, 1, 1], [], []>} : vector<2x32xf32>, vector<32x128xf32>, vector<2x128xf32> -> vector<2x128xf32>
    %286 = arith.addf %284, %285 : vector<2x128xf32>
    %287 = arith.negf %286 : vector<2x128xf32>
    %288 = math.exp %287 : vector<2x128xf32>
    %cst_74 = arith.constant 1.000000e+00 : f32
    %289 = vector.broadcast %cst_74 : f32 to vector<2x128xf32>
    %290 = arith.addf %289, %288 : vector<2x128xf32>
    %291 = arith.divf %289, %290 : vector<2x128xf32>
    %292 = math.tanh %286 : vector<2x128xf32>
    %293 = vector.extract_strided_slice %291 {offsets = [0, 0], sizes = [2, 32], strides = [1, 1]} : vector<2x128xf32> to vector<2x32xf32>
    %294 = vector.extract_strided_slice %291 {offsets = [0, 32], sizes = [2, 32], strides = [1, 1]} : vector<2x128xf32> to vector<2x32xf32>
    %295 = vector.extract_strided_slice %292 {offsets = [0, 64], sizes = [2, 32], strides = [1, 1]} : vector<2x128xf32> to vector<2x32xf32>
    %296 = vector.extract_strided_slice %291 {offsets = [0, 96], sizes = [2, 32], strides = [1, 1]} : vector<2x128xf32> to vector<2x32xf32>
    %297 = arith.mulf %294, %279 : vector<2x32xf32>
    %298 = arith.mulf %293, %295 : vector<2x32xf32>
    %299 = arith.addf %297, %298 : vector<2x32xf32>
    %300 = math.tanh %299 : vector<2x32xf32>
    %301 = arith.mulf %296, %300 : vector<2x32xf32>
    %c14_i32 = arith.constant 14 : i32
    %302 = arith.index_cast %c14_i32 : i32 to index
    %c0_75 = arith.constant 0 : index
    %c0_76 = arith.constant 0 : index
    %303 = vector.load %arg26[%302, %c0_75, %c0_76] : memref<20x2x128xf32, #tpu.memory_space<vmem>>, vector<1x2x128xf32>
    %304 = vector.shape_cast %303 : vector<1x2x128xf32> to vector<2x128xf32>
    %cst_77 = arith.constant dense<0.000000e+00> : vector<2x128xf32>
    %305 = tpu.matmul %301, %19, %cst_77 {dimension_numbers = #tpu.dot_dimension_numbers<[1], [0], [0], [1], [0, 0, 1, 1], [], []>} : vector<2x32xf32>, vector<32x128xf32>, vector<2x128xf32> -> vector<2x128xf32>
    %306 = arith.addf %304, %305 : vector<2x128xf32>
    %307 = arith.negf %306 : vector<2x128xf32>
    %308 = math.exp %307 : vector<2x128xf32>
    %cst_78 = arith.constant 1.000000e+00 : f32
    %309 = vector.broadcast %cst_78 : f32 to vector<2x128xf32>
    %310 = arith.addf %309, %308 : vector<2x128xf32>
    %311 = arith.divf %309, %310 : vector<2x128xf32>
    %312 = math.tanh %306 : vector<2x128xf32>
    %313 = vector.extract_strided_slice %311 {offsets = [0, 0], sizes = [2, 32], strides = [1, 1]} : vector<2x128xf32> to vector<2x32xf32>
    %314 = vector.extract_strided_slice %311 {offsets = [0, 32], sizes = [2, 32], strides = [1, 1]} : vector<2x128xf32> to vector<2x32xf32>
    %315 = vector.extract_strided_slice %312 {offsets = [0, 64], sizes = [2, 32], strides = [1, 1]} : vector<2x128xf32> to vector<2x32xf32>
    %316 = vector.extract_strided_slice %311 {offsets = [0, 96], sizes = [2, 32], strides = [1, 1]} : vector<2x128xf32> to vector<2x32xf32>
    %317 = arith.mulf %314, %299 : vector<2x32xf32>
    %318 = arith.mulf %313, %315 : vector<2x32xf32>
    %319 = arith.addf %317, %318 : vector<2x32xf32>
    %320 = math.tanh %319 : vector<2x32xf32>
    %321 = arith.mulf %316, %320 : vector<2x32xf32>
    %c15_i32 = arith.constant 15 : i32
    %322 = arith.index_cast %c15_i32 : i32 to index
    %c0_79 = arith.constant 0 : index
    %c0_80 = arith.constant 0 : index
    %323 = vector.load %arg26[%322, %c0_79, %c0_80] : memref<20x2x128xf32, #tpu.memory_space<vmem>>, vector<1x2x128xf32>
    %324 = vector.shape_cast %323 : vector<1x2x128xf32> to vector<2x128xf32>
    %cst_81 = arith.constant dense<0.000000e+00> : vector<2x128xf32>
    %325 = tpu.matmul %321, %19, %cst_81 {dimension_numbers = #tpu.dot_dimension_numbers<[1], [0], [0], [1], [0, 0, 1, 1], [], []>} : vector<2x32xf32>, vector<32x128xf32>, vector<2x128xf32> -> vector<2x128xf32>
    %326 = arith.addf %324, %325 : vector<2x128xf32>
    %327 = arith.negf %326 : vector<2x128xf32>
    %328 = math.exp %327 : vector<2x128xf32>
    %cst_82 = arith.constant 1.000000e+00 : f32
    %329 = vector.broadcast %cst_82 : f32 to vector<2x128xf32>
    %330 = arith.addf %329, %328 : vector<2x128xf32>
    %331 = arith.divf %329, %330 : vector<2x128xf32>
    %332 = math.tanh %326 : vector<2x128xf32>
    %333 = vector.extract_strided_slice %331 {offsets = [0, 0], sizes = [2, 32], strides = [1, 1]} : vector<2x128xf32> to vector<2x32xf32>
    %334 = vector.extract_strided_slice %331 {offsets = [0, 32], sizes = [2, 32], strides = [1, 1]} : vector<2x128xf32> to vector<2x32xf32>
    %335 = vector.extract_strided_slice %332 {offsets = [0, 64], sizes = [2, 32], strides = [1, 1]} : vector<2x128xf32> to vector<2x32xf32>
    %336 = vector.extract_strided_slice %331 {offsets = [0, 96], sizes = [2, 32], strides = [1, 1]} : vector<2x128xf32> to vector<2x32xf32>
    %337 = arith.mulf %334, %319 : vector<2x32xf32>
    %338 = arith.mulf %333, %335 : vector<2x32xf32>
    %339 = arith.addf %337, %338 : vector<2x32xf32>
    %340 = math.tanh %339 : vector<2x32xf32>
    %341 = arith.mulf %336, %340 : vector<2x32xf32>
    %c16_i32 = arith.constant 16 : i32
    %342 = arith.index_cast %c16_i32 : i32 to index
    %c0_83 = arith.constant 0 : index
    %c0_84 = arith.constant 0 : index
    %343 = vector.load %arg26[%342, %c0_83, %c0_84] : memref<20x2x128xf32, #tpu.memory_space<vmem>>, vector<1x2x128xf32>
    %344 = vector.shape_cast %343 : vector<1x2x128xf32> to vector<2x128xf32>
    %cst_85 = arith.constant dense<0.000000e+00> : vector<2x128xf32>
    %345 = tpu.matmul %341, %19, %cst_85 {dimension_numbers = #tpu.dot_dimension_numbers<[1], [0], [0], [1], [0, 0, 1, 1], [], []>} : vector<2x32xf32>, vector<32x128xf32>, vector<2x128xf32> -> vector<2x128xf32>
    %346 = arith.addf %344, %345 : vector<2x128xf32>
    %347 = arith.negf %346 : vector<2x128xf32>
    %348 = math.exp %347 : vector<2x128xf32>
    %cst_86 = arith.constant 1.000000e+00 : f32
    %349 = vector.broadcast %cst_86 : f32 to vector<2x128xf32>
    %350 = arith.addf %349, %348 : vector<2x128xf32>
    %351 = arith.divf %349, %350 : vector<2x128xf32>
    %352 = math.tanh %346 : vector<2x128xf32>
    %353 = vector.extract_strided_slice %351 {offsets = [0, 0], sizes = [2, 32], strides = [1, 1]} : vector<2x128xf32> to vector<2x32xf32>
    %354 = vector.extract_strided_slice %351 {offsets = [0, 32], sizes = [2, 32], strides = [1, 1]} : vector<2x128xf32> to vector<2x32xf32>
    %355 = vector.extract_strided_slice %352 {offsets = [0, 64], sizes = [2, 32], strides = [1, 1]} : vector<2x128xf32> to vector<2x32xf32>
    %356 = vector.extract_strided_slice %351 {offsets = [0, 96], sizes = [2, 32], strides = [1, 1]} : vector<2x128xf32> to vector<2x32xf32>
    %357 = arith.mulf %354, %339 : vector<2x32xf32>
    %358 = arith.mulf %353, %355 : vector<2x32xf32>
    %359 = arith.addf %357, %358 : vector<2x32xf32>
    %360 = math.tanh %359 : vector<2x32xf32>
    %361 = arith.mulf %356, %360 : vector<2x32xf32>
    %c17_i32 = arith.constant 17 : i32
    %362 = arith.index_cast %c17_i32 : i32 to index
    %c0_87 = arith.constant 0 : index
    %c0_88 = arith.constant 0 : index
    %363 = vector.load %arg26[%362, %c0_87, %c0_88] : memref<20x2x128xf32, #tpu.memory_space<vmem>>, vector<1x2x128xf32>
    %364 = vector.shape_cast %363 : vector<1x2x128xf32> to vector<2x128xf32>
    %cst_89 = arith.constant dense<0.000000e+00> : vector<2x128xf32>
    %365 = tpu.matmul %361, %19, %cst_89 {dimension_numbers = #tpu.dot_dimension_numbers<[1], [0], [0], [1], [0, 0, 1, 1], [], []>} : vector<2x32xf32>, vector<32x128xf32>, vector<2x128xf32> -> vector<2x128xf32>
    %366 = arith.addf %364, %365 : vector<2x128xf32>
    %367 = arith.negf %366 : vector<2x128xf32>
    %368 = math.exp %367 : vector<2x128xf32>
    %cst_90 = arith.constant 1.000000e+00 : f32
    %369 = vector.broadcast %cst_90 : f32 to vector<2x128xf32>
    %370 = arith.addf %369, %368 : vector<2x128xf32>
    %371 = arith.divf %369, %370 : vector<2x128xf32>
    %372 = math.tanh %366 : vector<2x128xf32>
    %373 = vector.extract_strided_slice %371 {offsets = [0, 0], sizes = [2, 32], strides = [1, 1]} : vector<2x128xf32> to vector<2x32xf32>
    %374 = vector.extract_strided_slice %371 {offsets = [0, 32], sizes = [2, 32], strides = [1, 1]} : vector<2x128xf32> to vector<2x32xf32>
    %375 = vector.extract_strided_slice %372 {offsets = [0, 64], sizes = [2, 32], strides = [1, 1]} : vector<2x128xf32> to vector<2x32xf32>
    %376 = vector.extract_strided_slice %371 {offsets = [0, 96], sizes = [2, 32], strides = [1, 1]} : vector<2x128xf32> to vector<2x32xf32>
    %377 = arith.mulf %374, %359 : vector<2x32xf32>
    %378 = arith.mulf %373, %375 : vector<2x32xf32>
    %379 = arith.addf %377, %378 : vector<2x32xf32>
    %380 = math.tanh %379 : vector<2x32xf32>
    %381 = arith.mulf %376, %380 : vector<2x32xf32>
    %c18_i32 = arith.constant 18 : i32
    %382 = arith.index_cast %c18_i32 : i32 to index
    %c0_91 = arith.constant 0 : index
    %c0_92 = arith.constant 0 : index
    %383 = vector.load %arg26[%382, %c0_91, %c0_92] : memref<20x2x128xf32, #tpu.memory_space<vmem>>, vector<1x2x128xf32>
    %384 = vector.shape_cast %383 : vector<1x2x128xf32> to vector<2x128xf32>
    %cst_93 = arith.constant dense<0.000000e+00> : vector<2x128xf32>
    %385 = tpu.matmul %381, %19, %cst_93 {dimension_numbers = #tpu.dot_dimension_numbers<[1], [0], [0], [1], [0, 0, 1, 1], [], []>} : vector<2x32xf32>, vector<32x128xf32>, vector<2x128xf32> -> vector<2x128xf32>
    %386 = arith.addf %384, %385 : vector<2x128xf32>
    %387 = arith.negf %386 : vector<2x128xf32>
    %388 = math.exp %387 : vector<2x128xf32>
    %cst_94 = arith.constant 1.000000e+00 : f32
    %389 = vector.broadcast %cst_94 : f32 to vector<2x128xf32>
    %390 = arith.addf %389, %388 : vector<2x128xf32>
    %391 = arith.divf %389, %390 : vector<2x128xf32>
    %392 = math.tanh %386 : vector<2x128xf32>
    %393 = vector.extract_strided_slice %391 {offsets = [0, 0], sizes = [2, 32], strides = [1, 1]} : vector<2x128xf32> to vector<2x32xf32>
    %394 = vector.extract_strided_slice %391 {offsets = [0, 32], sizes = [2, 32], strides = [1, 1]} : vector<2x128xf32> to vector<2x32xf32>
    %395 = vector.extract_strided_slice %392 {offsets = [0, 64], sizes = [2, 32], strides = [1, 1]} : vector<2x128xf32> to vector<2x32xf32>
    %396 = vector.extract_strided_slice %391 {offsets = [0, 96], sizes = [2, 32], strides = [1, 1]} : vector<2x128xf32> to vector<2x32xf32>
    %397 = arith.mulf %394, %379 : vector<2x32xf32>
    %398 = arith.mulf %393, %395 : vector<2x32xf32>
    %399 = arith.addf %397, %398 : vector<2x32xf32>
    %400 = math.tanh %399 : vector<2x32xf32>
    %401 = arith.mulf %396, %400 : vector<2x32xf32>
    %c19_i32 = arith.constant 19 : i32
    %402 = arith.index_cast %c19_i32 : i32 to index
    %c0_95 = arith.constant 0 : index
    %c0_96 = arith.constant 0 : index
    %403 = vector.load %arg26[%402, %c0_95, %c0_96] : memref<20x2x128xf32, #tpu.memory_space<vmem>>, vector<1x2x128xf32>
    %404 = vector.shape_cast %403 : vector<1x2x128xf32> to vector<2x128xf32>
    %cst_97 = arith.constant dense<0.000000e+00> : vector<2x128xf32>
    %405 = tpu.matmul %401, %19, %cst_97 {dimension_numbers = #tpu.dot_dimension_numbers<[1], [0], [0], [1], [0, 0, 1, 1], [], []>} : vector<2x32xf32>, vector<32x128xf32>, vector<2x128xf32> -> vector<2x128xf32>
    %406 = arith.addf %404, %405 : vector<2x128xf32>
    %407 = arith.negf %406 : vector<2x128xf32>
    %408 = math.exp %407 : vector<2x128xf32>
    %cst_98 = arith.constant 1.000000e+00 : f32
    %409 = vector.broadcast %cst_98 : f32 to vector<2x128xf32>
    %410 = arith.addf %409, %408 : vector<2x128xf32>
    %411 = arith.divf %409, %410 : vector<2x128xf32>
    %412 = math.tanh %406 : vector<2x128xf32>
    %413 = vector.extract_strided_slice %411 {offsets = [0, 0], sizes = [2, 32], strides = [1, 1]} : vector<2x128xf32> to vector<2x32xf32>
    %414 = vector.extract_strided_slice %411 {offsets = [0, 32], sizes = [2, 32], strides = [1, 1]} : vector<2x128xf32> to vector<2x32xf32>
    %415 = vector.extract_strided_slice %412 {offsets = [0, 64], sizes = [2, 32], strides = [1, 1]} : vector<2x128xf32> to vector<2x32xf32>
    %416 = vector.extract_strided_slice %411 {offsets = [0, 96], sizes = [2, 32], strides = [1, 1]} : vector<2x128xf32> to vector<2x32xf32>
    %417 = arith.mulf %414, %399 : vector<2x32xf32>
    %418 = arith.mulf %413, %415 : vector<2x32xf32>
    %419 = arith.addf %417, %418 : vector<2x32xf32>
    %420 = math.tanh %419 : vector<2x32xf32>
    %421 = arith.mulf %416, %420 : vector<2x32xf32>
    %c20_i32 = arith.constant 20 : i32
    %422 = vector.extract_strided_slice %9 {offsets = [19, 0, 0], sizes = [1, 2, 16], strides = [1, 1, 1]} : vector<20x2x16xf32> to vector<1x2x16xf32>
    %423 = vector.shape_cast %422 : vector<1x2x16xf32> to vector<2x16xf32>
    %424 = arith.truncf %423 : vector<2x16xf32> to vector<2x16xbf16>
    %c0_99 = arith.constant 0 : index
    %c0_100 = arith.constant 0 : index
    %425 = vector.load %arg7[%c0_99, %c0_100] : memref<16x128xbf16, #tpu.memory_space<vmem>>, vector<16x128xbf16>
    %cst_101 = arith.constant dense<0.000000e+00> : vector<2x128xf32>
    %426 = tpu.matmul %424, %425, %cst_101 {dimension_numbers = #tpu.dot_dimension_numbers<[1], [0], [0], [1], [0, 0, 1, 1], [], []>} : vector<2x16xbf16>, vector<16x128xbf16>, vector<2x128xf32> -> vector<2x128xf32>
    %c0_102 = arith.constant 0 : index
    %c0_103 = arith.constant 0 : index
    %427 = vector.load %arg8[%c0_102, %c0_103] : memref<1x128xf32, #tpu.memory_space<vmem>>, vector<1x128xf32>
    %428 = vector.broadcast %427 : vector<1x128xf32> to vector<2x128xf32>
    %429 = arith.addf %426, %428 : vector<2x128xf32>
    %430 = arith.negf %429 : vector<2x128xf32>
    %431 = math.exp %430 : vector<2x128xf32>
    %cst_104 = arith.constant 1.000000e+00 : f32
    %432 = vector.broadcast %cst_104 : f32 to vector<2x128xf32>
    %433 = arith.addf %432, %431 : vector<2x128xf32>
    %434 = arith.divf %432, %433 : vector<2x128xf32>
    %435 = math.tanh %429 : vector<2x128xf32>
    %436 = vector.extract_strided_slice %434 {offsets = [0, 0], sizes = [2, 32], strides = [1, 1]} : vector<2x128xf32> to vector<2x32xf32>
    %437 = vector.extract_strided_slice %435 {offsets = [0, 64], sizes = [2, 32], strides = [1, 1]} : vector<2x128xf32> to vector<2x32xf32>
    %438 = vector.extract_strided_slice %434 {offsets = [0, 96], sizes = [2, 32], strides = [1, 1]} : vector<2x128xf32> to vector<2x32xf32>
    %439 = arith.mulf %436, %437 : vector<2x32xf32>
    %440 = math.tanh %439 : vector<2x32xf32>
    %441 = arith.mulf %438, %440 : vector<2x32xf32>
    %442 = tpu.concatenate %421, %441 in 1 : vector<2x32xf32>, vector<2x32xf32> -> vector<2x64xf32>
    %443 = arith.truncf %442 : vector<2x64xf32> to vector<2x64xbf16>
    %c0_105 = arith.constant 0 : index
    %c0_106 = arith.constant 0 : index
    %444 = vector.load %arg9[%c0_105, %c0_106] : memref<64x64xbf16, #tpu.memory_space<vmem>>, vector<64x64xbf16>
    %cst_107 = arith.constant dense<0.000000e+00> : vector<2x64xf32>
    %445 = tpu.matmul %443, %444, %cst_107 {dimension_numbers = #tpu.dot_dimension_numbers<[1], [0], [0], [1], [0, 0, 1, 1], [], []>} : vector<2x64xbf16>, vector<64x64xbf16>, vector<2x64xf32> -> vector<2x64xf32>
    %c0_108 = arith.constant 0 : index
    %c0_109 = arith.constant 0 : index
    %446 = vector.load %arg10[%c0_108, %c0_109] : memref<1x64xf32, #tpu.memory_space<vmem>>, vector<1x64xf32>
    %447 = vector.broadcast %446 : vector<1x64xf32> to vector<2x64xf32>
    %448 = arith.addf %445, %447 : vector<2x64xf32>
    %cst_110 = arith.constant 0.000000e+00 : f32
    %449 = vector.broadcast %cst_110 : f32 to vector<2x64xf32>
    %450 = arith.maximumf %448, %449 : vector<2x64xf32>
    %451 = arith.truncf %450 : vector<2x64xf32> to vector<2x64xbf16>
    %c0_111 = arith.constant 0 : index
    %c0_112 = arith.constant 0 : index
    %452 = vector.load %arg11[%c0_111, %c0_112] : memref<64x32xbf16, #tpu.memory_space<vmem>>, vector<64x32xbf16>
    %cst_113 = arith.constant dense<0.000000e+00> : vector<2x32xf32>
    %453 = tpu.matmul %451, %452, %cst_113 {dimension_numbers = #tpu.dot_dimension_numbers<[1], [0], [0], [1], [0, 0, 1, 1], [], []>} : vector<2x64xbf16>, vector<64x32xbf16>, vector<2x32xf32> -> vector<2x32xf32>
    %c0_114 = arith.constant 0 : index
    %c0_115 = arith.constant 0 : index
    %454 = vector.load %arg12[%c0_114, %c0_115] : memref<1x32xf32, #tpu.memory_space<vmem>>, vector<1x32xf32>
    %455 = vector.broadcast %454 : vector<1x32xf32> to vector<2x32xf32>
    %456 = arith.addf %453, %455 : vector<2x32xf32>
    %cst_116 = arith.constant 0.000000e+00 : f32
    %457 = vector.broadcast %cst_116 : f32 to vector<2x32xf32>
    %458 = arith.maximumf %456, %457 : vector<2x32xf32>
    %459 = arith.truncf %458 : vector<2x32xf32> to vector<2x32xbf16>
    %c0_117 = arith.constant 0 : index
    %c0_118 = arith.constant 0 : index
    %460 = vector.load %arg13[%c0_117, %c0_118] : memref<32x32xbf16, #tpu.memory_space<vmem>>, vector<32x32xbf16>
    %cst_119 = arith.constant dense<0.000000e+00> : vector<2x32xf32>
    %461 = tpu.matmul %459, %460, %cst_119 {dimension_numbers = #tpu.dot_dimension_numbers<[1], [0], [0], [1], [0, 0, 1, 1], [], []>} : vector<2x32xbf16>, vector<32x32xbf16>, vector<2x32xf32> -> vector<2x32xf32>
    %c0_120 = arith.constant 0 : index
    %c0_121 = arith.constant 0 : index
    %462 = vector.load %arg14[%c0_120, %c0_121] : memref<1x32xf32, #tpu.memory_space<vmem>>, vector<1x32xf32>
    %463 = vector.broadcast %462 : vector<1x32xf32> to vector<2x32xf32>
    %464 = arith.addf %461, %463 : vector<2x32xf32>
    %cst_122 = arith.constant 0.000000e+00 : f32
    %465 = vector.broadcast %cst_122 : f32 to vector<2x32xf32>
    %466 = arith.maximumf %464, %465 : vector<2x32xf32>
    %467 = arith.truncf %466 : vector<2x32xf32> to vector<2x32xbf16>
    %c0_123 = arith.constant 0 : index
    %c0_124 = arith.constant 0 : index
    %468 = vector.load %arg15[%c0_123, %c0_124] : memref<32x13xbf16, #tpu.memory_space<vmem>>, vector<32x13xbf16>
    %cst_125 = arith.constant dense<0.000000e+00> : vector<2x13xf32>
    %469 = tpu.matmul %467, %468, %cst_125 {dimension_numbers = #tpu.dot_dimension_numbers<[1], [0], [0], [1], [0, 0, 1, 1], [], []>} : vector<2x32xbf16>, vector<32x13xbf16>, vector<2x13xf32> -> vector<2x13xf32>
    %c0_126 = arith.constant 0 : index
    %c0_127 = arith.constant 0 : index
    %470 = vector.load %arg16[%c0_126, %c0_127] : memref<1x13xf32, #tpu.memory_space<vmem>>, vector<1x13xf32>
    %471 = vector.broadcast %470 : vector<1x13xf32> to vector<2x13xf32>
    %472 = arith.addf %469, %471 : vector<2x13xf32>
    %cst_128 = arith.constant 0.000000e+00 : f32
    %473 = vector.broadcast %cst_128 : f32 to vector<2x13xf32>
    %474 = arith.maximumf %472, %473 : vector<2x13xf32>
    %c0_129 = arith.constant 0 : index
    %c0_130 = arith.constant 0 : index
    %475 = vector.load %arg1[%c0_129, %c0_130] : memref<2x3xf32, #tpu.memory_space<vmem>>, vector<2x3xf32>
    %476 = tpu.concatenate %474, %475 in 1 : vector<2x13xf32>, vector<2x3xf32> -> vector<2x16xf32>
    %477 = arith.truncf %476 : vector<2x16xf32> to vector<2x16xbf16>
    %c0_131 = arith.constant 0 : index
    %c0_132 = arith.constant 0 : index
    %478 = vector.load %arg17[%c0_131, %c0_132] : memref<16x16xbf16, #tpu.memory_space<vmem>>, vector<16x16xbf16>
    %cst_133 = arith.constant dense<0.000000e+00> : vector<2x16xf32>
    %479 = tpu.matmul %477, %478, %cst_133 {dimension_numbers = #tpu.dot_dimension_numbers<[1], [0], [0], [1], [0, 0, 1, 1], [], []>} : vector<2x16xbf16>, vector<16x16xbf16>, vector<2x16xf32> -> vector<2x16xf32>
    %c0_134 = arith.constant 0 : index
    %c0_135 = arith.constant 0 : index
    %480 = vector.load %arg18[%c0_134, %c0_135] : memref<1x16xf32, #tpu.memory_space<vmem>>, vector<1x16xf32>
    %481 = vector.broadcast %480 : vector<1x16xf32> to vector<2x16xf32>
    %482 = arith.addf %479, %481 : vector<2x16xf32>
    %cst_136 = arith.constant 0.000000e+00 : f32
    %483 = vector.broadcast %cst_136 : f32 to vector<2x16xf32>
    %484 = arith.maximumf %482, %483 : vector<2x16xf32>
    %485 = arith.truncf %484 : vector<2x16xf32> to vector<2x16xbf16>
    %c0_137 = arith.constant 0 : index
    %c0_138 = arith.constant 0 : index
    %486 = vector.load %arg19[%c0_137, %c0_138] : memref<16x16xbf16, #tpu.memory_space<vmem>>, vector<16x16xbf16>
    %cst_139 = arith.constant dense<0.000000e+00> : vector<2x16xf32>
    %487 = tpu.matmul %485, %486, %cst_139 {dimension_numbers = #tpu.dot_dimension_numbers<[1], [0], [0], [1], [0, 0, 1, 1], [], []>} : vector<2x16xbf16>, vector<16x16xbf16>, vector<2x16xf32> -> vector<2x16xf32>
    %c0_140 = arith.constant 0 : index
    %c0_141 = arith.constant 0 : index
    %488 = vector.load %arg20[%c0_140, %c0_141] : memref<1x16xf32, #tpu.memory_space<vmem>>, vector<1x16xf32>
    %489 = vector.broadcast %488 : vector<1x16xf32> to vector<2x16xf32>
    %490 = arith.addf %487, %489 : vector<2x16xf32>
    %cst_142 = arith.constant 0.000000e+00 : f32
    %491 = vector.broadcast %cst_142 : f32 to vector<2x16xf32>
    %492 = arith.maximumf %490, %491 : vector<2x16xf32>
    %493 = arith.truncf %492 : vector<2x16xf32> to vector<2x16xbf16>
    %c0_143 = arith.constant 0 : index
    %c0_144 = arith.constant 0 : index
    %494 = vector.load %arg21[%c0_143, %c0_144] : memref<16x16xbf16, #tpu.memory_space<vmem>>, vector<16x16xbf16>
    %cst_145 = arith.constant dense<0.000000e+00> : vector<2x16xf32>
    %495 = tpu.matmul %493, %494, %cst_145 {dimension_numbers = #tpu.dot_dimension_numbers<[1], [0], [0], [1], [0, 0, 1, 1], [], []>} : vector<2x16xbf16>, vector<16x16xbf16>, vector<2x16xf32> -> vector<2x16xf32>
    %c0_146 = arith.constant 0 : index
    %c0_147 = arith.constant 0 : index
    %496 = vector.load %arg22[%c0_146, %c0_147] : memref<1x16xf32, #tpu.memory_space<vmem>>, vector<1x16xf32>
    %497 = vector.broadcast %496 : vector<1x16xf32> to vector<2x16xf32>
    %498 = arith.addf %495, %497 : vector<2x16xf32>
    %cst_148 = arith.constant 0.000000e+00 : f32
    %499 = vector.broadcast %cst_148 : f32 to vector<2x16xf32>
    %500 = arith.maximumf %498, %499 : vector<2x16xf32>
    %501 = arith.truncf %500 : vector<2x16xf32> to vector<2x16xbf16>
    %c0_149 = arith.constant 0 : index
    %c0_150 = arith.constant 0 : index
    %502 = vector.load %arg23[%c0_149, %c0_150] : memref<16x1xbf16, #tpu.memory_space<vmem>>, vector<16x1xbf16>
    %cst_151 = arith.constant dense<0.000000e+00> : vector<2x1xf32>
    %503 = tpu.matmul %501, %502, %cst_151 {dimension_numbers = #tpu.dot_dimension_numbers<[1], [0], [0], [1], [0, 0, 1, 1], [], []>} : vector<2x16xbf16>, vector<16x1xbf16>, vector<2x1xf32> -> vector<2x1xf32>
    %c0_152 = arith.constant 0 : index
    %c0_153 = arith.constant 0 : index
    %504 = vector.load %arg24[%c0_152, %c0_153] : memref<1x1xf32, #tpu.memory_space<vmem>>, vector<1x1xf32>
    %505 = vector.broadcast %504 : vector<1x1xf32> to vector<2x1xf32>
    %506 = arith.addf %503, %505 : vector<2x1xf32>
    %c0_154 = arith.constant 0 : index
    %c0_155 = arith.constant 0 : index
    %507 = vector.load %arg25[%c0_154, %c0_155] : memref<2x1xf32, #tpu.memory_space<vmem>>, vector<2x1xf32>
    tpu.vector_store %arg25[%c0_154, %c0_155], %506 {strides = array<i32>} : memref<2x1xf32, #tpu.memory_space<vmem>>, vector<2x1xf32>,
    return
  }
}

</mosaic_0001>

<bundles_post_ra>
// kernel: cnn_bilstm_forward.1
= control target key start
LH: loop header
LB: loop body
LE: loop exit
PB: predicated region body
PF: predicated region fallthrough
CT: control target
= control target key end

     0   :  { %vm353_vm0 = vcmask 1043456   ;;  %vm354_vm1 = vcmask 1044480   ;;  %v3625_v2 = vmov 65535   ;;  %vm277_vm2 = vcmask 203776   ;;  %s3628_s29 = smov 32   ;;  %s4498_s2 = inlined_call_operand.vmem [shape: bf16[25,16], index: 2, kind: input, shape index: {}]   ;;  %s4499_s3 = inlined_call_operand.vmem [shape: f32[1,16], index: 3, kind: input, shape index: {}]   ;;  %s4500_s0 = inlined_call_operand.vmem [shape: bf16[400,25], index: 0, kind: input, shape index: {}]   ;;  %s4501_s4 = inlined_call_operand.vmem [shape: bf16[16,128], index: 4, kind: input, shape index: {}]   ;;  %s4502_s5 = inlined_call_operand.vmem [shape: f32[32,128], index: 5, kind: input, shape index: {}]   ;;  %s4503_s6 = inlined_call_operand.vmem [shape: f32[1,128], index: 6, kind: input, shape index: {}]   ;;  %s4504_s7 = inlined_call_operand.vmem [shape: bf16[16,128], index: 7, kind: input, shape index: {}]   ;;  %s4505_s8 = inlined_call_operand.vmem [shape: f32[1,128], index: 8, kind: input, shape index: {}]   ;;  %s4506_s9 = inlined_call_operand.vmem [shape: bf16[64,64], index: 9, kind: input, shape index: {}]   ;;  %s4507_s10 = inlined_call_operand.vmem [shape: f32[1,64], index: 10, kind: input, shape index: {}]   ;;  %s4508_s11 = inlined_call_operand.vmem [shape: bf16[64,32], index: 11, kind: input, shape index: {}]   ;;  %s4509_s12 = inlined_call_operand.vmem [shape: f32[1,32], index: 12, kind: input, shape index: {}]   ;;  %s4510_s13 = inlined_call_operand.vmem [shape: bf16[32,32], index: 13, kind: input, shape index: {}]   ;;  %s4511_s14 = inlined_call_operand.vmem [shape: f32[1,32], index: 14, kind: input, shape index: {}]   ;;  %s4512_s15 = inlined_call_operand.vmem [shape: bf16[32,13], index: 15, kind: input, shape index: {}]   ;;  %s4513_s16 = inlined_call_operand.vmem [shape: f32[1,13], index: 16, kind: input, shape index: {}]   ;;  %s4514_s1 = inlined_call_operand.vmem [shape: f32[2,3], index: 1, kind: input, shape index: {}]   ;;  %s4515_s17 = inlined_call_operand.vmem [shape: bf16[16,16], index: 17, kind: input, shape index: {}]   ;;  %s4516_s18 = inlined_call_operand.vmem [shape: f32[1,16], index: 18, kind: input, shape index: {}]   ;;  %s4517_s19 = inlined_call_operand.vmem [shape: bf16[16,16], index: 19, kind: input, shape index: {}]   ;;  %s4518_s20 = inlined_call_operand.vmem [shape: f32[1,16], index: 20, kind: input, shape index: {}]   ;;  %s4519_s21 = inlined_call_operand.vmem [shape: bf16[16,16], index: 21, kind: input, shape index: {}]   ;;  %s4520_s22 = inlined_call_operand.vmem [shape: f32[1,16], index: 22, kind: input, shape index: {}]   ;;  %s4521_s23 = inlined_call_operand.vmem [shape: bf16[16,1], index: 23, kind: input, shape index: {}]   ;;  %s4522_s24 = inlined_call_operand.<no memory space> [shape: f32[1,1], index: 24, kind: input, shape index: {}]   ;;  %s4523_s25 = inlined_call_operand.vmem [shape: f32[2,1], index: 25, kind: output, shape index: {}]  }
   0x1   :  { %4529 = sst [smem:[#allocation4_spill]] %s4498_s2  ;;  %v355_v3 = vsel %vm353_vm0, 4294967295, %v3625_v2  ;;  %vm894_vm3 = vcmask 123904   ;;  %vm1347_vm4 = vcmask 130048   ;;  %vm1440_vm9 = vcmask 261120  }
   0x2   :  { %4530 = sst [smem:[#allocation5_spill]] %s4499_s3  ;;  %v356_v5 = vsel %vm354_vm1, %v355_v3, 0 }
   0x3   :  { %4531 = sst [smem:[#allocation6_spill]] %s4500_s0  ;;  %s3627_s0 = smov 64  }
   0x4   :  { %4532 = sst [smem:[#allocation7_spill]] %s4501_s4 }
   0x5   :  { %4533 = sst [smem:[#allocation8_spill]] %s4502_s5  ;;  %s3629_s5 = smov 96  }
   0x6   :  { %4534 = sst [smem:[#allocation9_spill]] %s4503_s6 }
   0x7   :  { %4535 = sst [smem:[#allocation10_spill]] %s4504_s7 }
   0x8   :  { %4536 = sst [smem:[#allocation11_spill]] %s4505_s8 }
   0x9   :  { %4537 = sst [smem:[#allocation12_spill]] %s4506_s9 }
   0xa   :  { %4538 = sst [smem:[#allocation13_spill]] %s4507_s10 }
   0xb   :  { %s4539_s7 = sld [smem:[#allocation4_spill]] }
   0xc   :  { %s4540_s27 = sld [smem:[#allocation6_spill]] }
   0xd   :  { %s4541_s10 = sld [smem:[#allocation5_spill]] }
   0xe   :  { %s4542_s6 = sld [smem:[#allocation7_spill]] }
   0xf   :  { %s4543_s2 = sld [smem:[#allocation8_spill]] }
  0x10   :  { %s4545_s4 = sld [smem:[#allocation10_spill]] }
  0x11   :  { %v3229_v0 = vld [vmem:[%s4539_s7 + $0x8] sm:$0xf]  ;;  %v3406_v1 = vld [vmem:[%s4539_s7 + $0x8] sm:$0x10]  ;;  %v3405_v7 = vld [vmem:[%s4539_s7] sm:$0xff]  ;;  %s4546_s9 = sld [smem:[#allocation11_spill]] }
  0x12   :  { %v3230_v4 = vor.u32 %v3406_v1, %v3229_v0  ;;  %v3380_v8 = vld [vmem:[%s4540_s27] sm:$0xff]  ;;  %v3381_v9 = vld [vmem:[%s4540_s27 + $0x8] sm:$0xff]  ;;  %v3382_v10 = vld [vmem:[%s4540_s27 + $0x10] sm:$0xff]  ;;  %s4548_s8 = sld [smem:[#allocation13_spill]] }
  0x13   :  { %v3383_v11 = vld [vmem:[%s4540_s27 + $0x18] sm:$0xff]  ;;  %v3384_v12 = vld [vmem:[%s4540_s27 + $0x20] sm:$0xff]  ;;  %v3385_v13 = vld [vmem:[%s4540_s27 + $0x28] sm:$0xff] }
  0x14   :  { %v358_v6 = vand.u32 %v3230_v4, %v356_v5  ;;  %v3386_v14 = vld [vmem:[%s4540_s27 + $0x30] sm:$0xff]  ;;  %v3387_v15 = vld [vmem:[%s4540_s27 + $0x38] sm:$0xff]  ;;  %v3805_v16 = vld [vmem:[%s4541_s10] ss:$0 sm:$0xff] }
  0x15   :  { %v3388_v17 = vld [vmem:[%s4540_s27 + $0x40] sm:$0xff]  ;;  %v3389_v42 = vld [vmem:[%s4540_s27 + $0x48] sm:$0xff] }
  0x16   :  { %366 = vmatpush.bf16.msra.mxu0 %v358_v6  ;;  %3426 = vmatpush.bf16.msra.mxu2 %v358_v6  ;;  %v3396_v21 = vld [vmem:[%s4540_s27 + $0x80] sm:$0xff]  ;;  %v3397_v51 = vld [vmem:[%s4540_s27 + $0x88] sm:$0xff] }
  0x17   :  { %3425 = vmatpush.bf16.msra.mxu1 %v358_v6  ;;  %3427 = vmatpush.bf16.msra.mxu3 %v358_v6  ;;  %v3392_v24 = vld [vmem:[%s4540_s27 + $0x60] sm:$0xff]  ;;  %v3393_v57 = vld [vmem:[%s4540_s27 + $0x68] sm:$0xff] }
  0x1a   :  { %367 = vmatpush.bf16.msra.mxu0 %v3405_v7  ;;  %3429 = vmatpush.bf16.msra.mxu2 %v3405_v7 }
  0x1b   :  { %3428 = vmatpush.bf16.msra.mxu1 %v3405_v7  ;;  %3430 = vmatpush.bf16.msra.mxu3 %v3405_v7 }
  0x1d   :  { %3231 = vmatmul.msk.bf16.vlgmr.msra.gmra.mxu0 %vm277_vm2, %v3380_v8  ;;  %3247 = vmatmul.msk.bf16.vlgmr.msra.gmra.mxu2 %vm277_vm2, %v3396_v21 }
  0x1e   :  { %3243 = vmatmul.msk.bf16.vlgmr.msra.gmra.mxu1 %vm277_vm2, %v3392_v24 }
  0x2d   :  { %3232 = vmatmul.msk.bf16.gmra.mxu0 %vm277_vm2, %v3381_v9  ;;  %3248 = vmatmul.msk.bf16.gmra.mxu2 %vm277_vm2, %v3397_v51 }
  0x2e   :  { %3244 = vmatmul.msk.bf16.gmra.mxu1 %vm277_vm2, %v3393_v57 }
  0x3d   :  { %3233 = vmatmul.msk.bf16.gmra.mxu0 %vm277_vm2, %v3382_v10 }
  0x4d   :  { %3234 = vmatmul.msk.bf16.gmra.mxu0 %vm277_vm2, %v3383_v11 }
  0x5d   :  { %3235 = vmatmul.msk.bf16.gmra.mxu0 %vm277_vm2, %v3384_v12 }
  0x6d   :  { %3236 = vmatmul.msk.bf16.gmra.mxu0 %vm277_vm2, %v3385_v13  ;;  %v3390_v13 = vld [vmem:[%s4540_s27 + $0x50] sm:$0xff] }
  0x7d   :  { %3237 = vmatmul.msk.bf16.gmra.mxu0 %vm277_vm2, %v3386_v14 }
  0x8d   :  { %3238 = vmatmul.msk.bf16.gmra.mxu0 %vm277_vm2, %v3387_v15 }
  0x9a   :  { %v369_v18 = vpop.f32.mrf.mxu0 }
  0x9b   :  { %v370_v19 = vadd.f32 %v3805_v16, %v369_v18  ;;  %v3398_v18 = vld [vmem:[%s4540_s27 + $0x90] sm:$0xff] }
  0x9c   :  { %3249 = vmatmul.msk.bf16.gmra.mxu2 %vm277_vm2, %v3398_v18 }
  0x9d   :  { %v494_v20 = vmax.f32 %v370_v19, 0.0  ;;  %3239 = vmatmul.msk.bf16.gmra.mxu0 %vm277_vm2, %v3388_v17 }
  0x9f   :  { %v594_v22 = vrot.slane %v494_v20, 2  ;;  %v595_v23 = vrot.slane %v494_v20, 4  ;;  %v596_v25 = vrot.slane %v494_v20, 6  ;;  %v895_v26 = vsel %vm894_vm3, %v494_v20, -inf }
  0xa1   :  { %v896_v27 = vsel %vm894_vm3, %v594_v22, -inf  ;;  %v898_v30 = vsel %vm894_vm3, %v595_v23, -inf  ;;  %v900_v33 = vsel %vm894_vm3, %v596_v25, -inf  ;;  %v3394_v23 = vld [vmem:[%s4540_s27 + $0x70] sm:$0xff] }
  0xa2   :  { %v897_v28 = vmax.f32 %v895_v26, %v896_v27  ;;  %v371_v29 = vpop.f32.mrf.mxu0  ;;  %3245 = vmatmul.msk.bf16.gmra.mxu1 %vm277_vm2, %v3394_v23 }
  0xa3   :  { %v372_v31 = vadd.f32 %v3805_v16, %v371_v29 }
  0xa4   :  { %v899_v32 = vmax.f32 %v897_v28, %v898_v30 }
  0xa5   :  { %v495_v34 = vmax.f32 %v372_v31, 0.0 }
  0xa6   :  { %v901_v35 = vmax.f32 %v899_v32, %v900_v33 }
  0xa7   :  { %v597_v36 = vrot.slane %v495_v34, 2  ;;  %v598_v37 = vrot.slane %v495_v34, 4  ;;  %v902_v38 = vsel %vm894_vm3, %v495_v34, -inf  ;;  %v599_v40 = vrot.slane %v495_v34, 6 }
  0xa8   :  { %v903_v39 = vmax.f32 %v901_v35, %v902_v38 }
  0xa9   :  { %v904_v41 = vsel %vm894_vm3, %v597_v36, -inf  ;;  %v906_v45 = vsel %vm894_vm3, %v598_v37, -inf  ;;  %v908_v48 = vsel %vm894_vm3, %v599_v40, -inf }
  0xaa   :  { %v905_v43 = vmax.f32 %v903_v39, %v904_v41  ;;  %v374_v44 = vpop.f32.mrf.mxu0 }
  0xab   :  { %v375_v46 = vadd.f32 %v3805_v16, %v374_v44  ;;  %v3391_v44 = vld [vmem:[%s4540_s27 + $0x58] sm:$0xff] }
  0xac   :  { %v907_v47 = vmax.f32 %v905_v43, %v906_v45 }
  0xad   :  { %v496_v49 = vmax.f32 %v375_v46, 0.0  ;;  %3240 = vmatmul.msk.bf16.gmra.mxu0 %vm277_vm2, %v3389_v42 }
  0xae   :  { %v909_v50 = vmax.f32 %v907_v47, %v908_v48  ;;  %v3399_v48 = vld [vmem:[%s4540_s27 + $0x98] sm:$0xff] }
  0xaf   :  { %v600_v52 = vrot.slane %v496_v49, 2  ;;  %v601_v53 = vrot.slane %v496_v49, 4  ;;  %v602_v54 = vrot.slane %v496_v49, 6  ;;  %v910_v55 = vsel %vm894_vm3, %v496_v49, -inf  ;;  %3250 = vmatmul.msk.bf16.gmra.mxu2 %vm277_vm2, %v3399_v48 }
  0xb0   :  { %v911_v56 = vmax.f32 %v909_v50, %v910_v55 }
  0xb1   :  { %v912_v58 = vsel %vm894_vm3, %v600_v52, -inf  ;;  %v914_v61 = vsel %vm894_vm3, %v601_v53, -inf  ;;  %v915_v62 = vsel %vm894_vm3, %v602_v54, -inf  ;;  %v3395_v53 = vld [vmem:[%s4540_s27 + $0x78] sm:$0xff] }
  0xb2   :  { %v913_v59 = vmax.f32 %v911_v56, %v912_v58  ;;  %v376_v60 = vpop.f32.mrf.mxu0  ;;  %v916_v1 = vmax.f32 %v914_v61, %v915_v62  ;;  %3246 = vmatmul.msk.bf16.gmra.mxu1 %vm277_vm2, %v3395_v53 }
  0xb3   :  { %v377_v63 = vadd.f32 %v3805_v16, %v376_v60 }
  0xb4   :  { %1295 = vst [vmem:[#allocation1] ss:$4 sm:$0xff] %v913_v59 }
  0xb5   :  { %v497_v0 = vmax.f32 %v377_v63, 0.0 }
  0xb7   :  { %v603_v2 = vrot.slane %v497_v0, 2  ;;  %v604_v3 = vrot.slane %v497_v0, 4  ;;  %v917_v4 = vsel %vm894_vm3, %v497_v0, -inf  ;;  %v605_v6 = vrot.slane %v497_v0, 6 }
  0xb8   :  { %v918_v5 = vmax.f32 %v916_v1, %v917_v4 }
  0xb9   :  { %v919_v7 = vsel %vm894_vm3, %v603_v2, -inf  ;;  %v921_v10 = vsel %vm894_vm3, %v604_v3, -inf  ;;  %v923_v14 = vsel %vm894_vm3, %v605_v6, -inf }
  0xba   :  { %v920_v8 = vmax.f32 %v918_v5, %v919_v7  ;;  %v379_v9 = vpop.f32.mrf.mxu0 }
  0xbb   :  { %v380_v11 = vadd.f32 %v3805_v16, %v379_v9 }
  0xbc   :  { %v922_v12 = vmax.f32 %v920_v8, %v921_v10 }
  0xbd   :  { %v498_v15 = vmax.f32 %v380_v11, 0.0  ;;  %3241 = vmatmul.msk.bf16.gmra.mxu0 %vm277_vm2, %v3390_v13 }
  0xbe   :  { %v924_v17 = vmax.f32 %v922_v12, %v923_v14 }
  0xbf   :  { %v606_v19 = vrot.slane %v498_v15, 2  ;;  %v607_v20 = vrot.slane %v498_v15, 4  ;;  %v925_v21 = vsel %vm894_vm3, %v498_v15, -inf  ;;  %v608_v24 = vrot.slane %v498_v15, 6 }
  0xc0   :  { %v926_v22 = vmax.f32 %v924_v17, %v925_v21 }
  0xc1   :  { %v927_v25 = vsel %vm894_vm3, %v606_v19, -inf  ;;  %v929_v28 = vsel %vm894_vm3, %v607_v20, -inf  ;;  %v931_v31 = vsel %vm894_vm3, %v608_v24, -inf }
  0xc2   :  { %v928_v26 = vmax.f32 %v926_v22, %v927_v25  ;;  %v381_v27 = vpop.f32.mrf.mxu0 }
  0xc3   :  { %v382_v29 = vadd.f32 %v3805_v16, %v381_v27 }
  0xc4   :  { %v930_v30 = vmax.f32 %v928_v26, %v929_v28 }
  0xc5   :  { %v499_v32 = vmax.f32 %v382_v29, 0.0 }
  0xc6   :  { %v932_v33 = vmax.f32 %v930_v30, %v931_v31 }
  0xc7   :  { %v609_v34 = vrot.slane %v499_v32, 2  ;;  %v610_v35 = vrot.slane %v499_v32, 4  ;;  %v611_v36 = vrot.slane %v499_v32, 6  ;;  %v933_v37 = vsel %vm894_vm3, %v499_v32, -inf }
  0xc8   :  { %1297 = vst [vmem:[#allocation1 + $0x1] ss:$4 sm:$0xff] %v932_v33 }
  0xc9   :  { %v934_v38 = vsel %vm894_vm3, %v609_v34, -inf  ;;  %v936_v41 = vsel %vm894_vm3, %v610_v35, -inf  ;;  %v938_v45 = vsel %vm894_vm3, %v611_v36, -inf }
  0xca   :  { %v935_v39 = vmax.f32 %v933_v37, %v934_v38  ;;  %v384_v40 = vpop.f32.mrf.mxu0 }
  0xcb   :  { %v385_v42 = vadd.f32 %v3805_v16, %v384_v40 }
  0xcc   :  { %v937_v43 = vmax.f32 %v935_v39, %v936_v41 }
  0xcd   :  { %v500_v46 = vmax.f32 %v385_v42, 0.0  ;;  %3242 = vmatmul.msk.bf16.gmra.mxu0 %vm277_vm2, %v3391_v44 }
  0xce   :  { %v939_v47 = vmax.f32 %v937_v43, %v938_v45 }
  0xcf   :  { %v612_v49 = vrot.slane %v500_v46, 2  ;;  %v613_v50 = vrot.slane %v500_v46, 4  ;;  %v940_v51 = vsel %vm894_vm3, %v500_v46, -inf  ;;  %v614_v54 = vrot.slane %v500_v46, 6 }
  0xd0   :  { %v941_v52 = vmax.f32 %v939_v47, %v940_v51 }
  0xd1   :  { %v942_v55 = vsel %vm894_vm3, %v612_v49, -inf  ;;  %v944_v58 = vsel %vm894_vm3, %v613_v50, -inf  ;;  %v946_v61 = vsel %vm894_vm3, %v614_v54, -inf }
  0xd2   :  { %v943_v56 = vmax.f32 %v941_v52, %v942_v55  ;;  %v386_v57 = vpop.f32.mrf.mxu0 }
  0xd3   :  { %v387_v59 = vadd.f32 %v3805_v16, %v386_v57 }
  0xd4   :  { %v945_v60 = vmax.f32 %v943_v56, %v944_v58 }
  0xd5   :  { %v501_v62 = vmax.f32 %v387_v59, 0.0  ;;  %v3407_v59 = vld [vmem:[%s4542_s6] sm:$0xff]  ;;  %s4544_s6 = sld [smem:[#allocation9_spill]] }
  0xd6   :  { %v947_v63 = vmax.f32 %v945_v60, %v946_v61  ;;  %v3918_v60 = vld [vmem:[%s4543_s2 + $0x18] sm:$0xff]  ;;  %1364 = vmatpush.bf16.msrb.mxu1 %v3407_v59 }
  0xd7   :  { %v615_v0 = vrot.slane %v501_v62, 2  ;;  %v616_v1 = vrot.slane %v501_v62, 4  ;;  %v617_v2 = vrot.slane %v501_v62, 6  ;;  %v948_v3 = vsel %vm894_vm3, %v501_v62, -inf  ;;  %1456 = vmatpush.msrb.mxu2 %v3918_v60  ;;  %1521 = vmatpush.msrb.mxu3 %v3918_v60 }
  0xd8   :  { %v949_v4 = vmax.f32 %v947_v63, %v948_v3 }
  0xd9   :  { %v950_v5 = vsel %vm894_vm3, %v615_v0, -inf  ;;  %v952_v8 = vsel %vm894_vm3, %v616_v1, -inf  ;;  %v953_v9 = vsel %vm894_vm3, %v617_v2, -inf }
  0xda   :  { %v951_v6 = vmax.f32 %v949_v4, %v950_v5  ;;  %v389_v7 = vpop.f32.mrf.mxu0  ;;  %v954_v12 = vmax.f32 %v952_v8, %v953_v9  ;;  %2236 = vmatpush.msra.mxu1 %v3918_v60 }
  0xdb   :  { %v390_v10 = vadd.f32 %v3805_v16, %v389_v7 }
  0xdc   :  { %1299 = vst [vmem:[#allocation1 + $0x2] ss:$4 sm:$0xff] %v951_v6 }
  0xdd   :  { %v502_v11 = vmax.f32 %v390_v10, 0.0 }
  0xdf   :  { %v618_v13 = vrot.slane %v502_v11, 2  ;;  %v619_v14 = vrot.slane %v502_v11, 4  ;;  %v955_v15 = vsel %vm894_vm3, %v502_v11, -inf  ;;  %v620_v18 = vrot.slane %v502_v11, 6 }
  0xe0   :  { %v956_v17 = vmax.f32 %v954_v12, %v955_v15 }
  0xe1   :  { %v957_v19 = vsel %vm894_vm3, %v618_v13, -inf  ;;  %v959_v22 = vsel %vm894_vm3, %v619_v14, -inf  ;;  %v961_v25 = vsel %vm894_vm3, %v620_v18, -inf }
  0xe2   :  { %v958_v20 = vmax.f32 %v956_v17, %v957_v19  ;;  %v391_v21 = vpop.f32.mrf.mxu0  ;;  %v3935_v19 = vld [vmem:[%s4543_s2 + $0x10] sm:$0xff] }
  0xe3   :  { %v392_v23 = vadd.f32 %v3805_v16, %v391_v21  ;;  %1457 = vmatpush.msrb.mxu2 %v3935_v19  ;;  %1522 = vmatpush.msrb.mxu3 %v3935_v19 }
  0xe4   :  { %v960_v24 = vmax.f32 %v958_v20, %v959_v22  ;;  %2237 = vmatpush.msra.mxu1 %v3935_v19 }
  0xe5   :  { %v503_v26 = vmax.f32 %v392_v23, 0.0 }
  0xe6   :  { %v962_v27 = vmax.f32 %v960_v24, %v961_v25 }
  0xe7   :  { %v621_v28 = vrot.slane %v503_v26, 2  ;;  %v622_v29 = vrot.slane %v503_v26, 4  ;;  %v963_v30 = vsel %vm894_vm3, %v503_v26, -inf  ;;  %v623_v32 = vrot.slane %v503_v26, 6 }
  0xe8   :  { %v964_v31 = vmax.f32 %v962_v27, %v963_v30 }
  0xe9   :  { %v965_v33 = vsel %vm894_vm3, %v621_v28, -inf  ;;  %v967_v36 = vsel %vm894_vm3, %v622_v29, -inf  ;;  %v969_v39 = vsel %vm894_vm3, %v623_v32, -inf }
  0xea   :  { %v966_v34 = vmax.f32 %v964_v31, %v965_v33  ;;  %v394_v35 = vpop.f32.mrf.mxu0 }
  0xeb   :  { %v395_v37 = vadd.f32 %v3805_v16, %v394_v35 }
  0xec   :  { %v968_v38 = vmax.f32 %v966_v34, %v967_v36 }
  0xed   :  { %v504_v40 = vmax.f32 %v395_v37, 0.0 }
  0xee   :  { %v970_v41 = vmax.f32 %v968_v38, %v969_v39 }
  0xef   :  { %v624_v42 = vrot.slane %v504_v40, 2  ;;  %v625_v43 = vrot.slane %v504_v40, 4  ;;  %v626_v44 = vrot.slane %v504_v40, 6  ;;  %v971_v45 = vsel %vm894_vm3, %v504_v40, -inf }
  0xf0   :  { %1301 = vst [vmem:[#allocation1 + $0x3] ss:$4 sm:$0xff] %v970_v41 }
  0xf1   :  { %v972_v46 = vsel %vm894_vm3, %v624_v42, -inf  ;;  %v974_v49 = vsel %vm894_vm3, %v625_v43, -inf  ;;  %v976_v52 = vsel %vm894_vm3, %v626_v44, -inf }
  0xf2   :  { %v973_v47 = vmax.f32 %v971_v45, %v972_v46  ;;  %v396_v48 = vpop.f32.mrf.mxu0 }
  0xf3   :  { %v397_v50 = vadd.f32 %v3805_v16, %v396_v48 }
  0xf4   :  { %v975_v51 = vmax.f32 %v973_v47, %v974_v49  ;;  %v3952_v47 = vld [vmem:[%s4543_s2 + $0x8] sm:$0xff] }
  0xf5   :  { %v505_v53 = vmax.f32 %v397_v50, 0.0  ;;  %1458 = vmatpush.msrb.mxu2 %v3952_v47  ;;  %1523 = vmatpush.msrb.mxu3 %v3952_v47 }
  0xf6   :  { %v977_v54 = vmax.f32 %v975_v51, %v976_v52  ;;  %2238 = vmatpush.msra.mxu1 %v3952_v47 }
  0xf7   :  { %v627_v55 = vrot.slane %v505_v53, 2  ;;  %v628_v56 = vrot.slane %v505_v53, 4  ;;  %v978_v57 = vsel %vm894_vm3, %v505_v53, -inf  ;;  %v629_v61 = vrot.slane %v505_v53, 6 }
  0xf8   :  { %v979_v58 = vmax.f32 %v977_v54, %v978_v57 }
  0xf9   :  { %v980_v62 = vsel %vm894_vm3, %v627_v55, -inf  ;;  %v982_v1 = vsel %vm894_vm3, %v628_v56, -inf  ;;  %v984_v4 = vsel %vm894_vm3, %v629_v61, -inf }
  0xfa   :  { %v981_v63 = vmax.f32 %v979_v58, %v980_v62  ;;  %v399_v0 = vpop.f32.mrf.mxu0 }
  0xfb   :  { %v400_v2 = vadd.f32 %v3805_v16, %v399_v0 }
  0xfc   :  { %v983_v3 = vmax.f32 %v981_v63, %v982_v1 }
  0xfd   :  { %v506_v5 = vmax.f32 %v400_v2, 0.0 }
  0xfe   :  { %v985_v6 = vmax.f32 %v983_v3, %v984_v4  ;;  %v429_v4 = vpop.f32.mrf.mxu1 }
  0xff   :  { %v630_v7 = vrot.slane %v506_v5, 2  ;;  %v631_v8 = vrot.slane %v506_v5, 4  ;;  %v632_v9 = vrot.slane %v506_v5, 6  ;;  %v986_v10 = vsel %vm894_vm3, %v506_v5, -inf }
 0x100   :  { %v987_v11 = vmax.f32 %v985_v6, %v986_v10  ;;  %v3967_v6 = vld [vmem:[%s4543_s2] sm:$0xff] }
 0x101   :  { %v988_v12 = vsel %vm894_vm3, %v630_v7, -inf  ;;  %v990_v15 = vsel %vm894_vm3, %v631_v8, -inf  ;;  %v991_v17 = vsel %vm894_vm3, %v632_v9, -inf  ;;  %1459 = vmatpush.msrb.mxu2 %v3967_v6  ;;  %1524 = vmatpush.msrb.mxu3 %v3967_v6 }
 0x102   :  { %v989_v13 = vmax.f32 %v987_v11, %v988_v12  ;;  %v401_v14 = vpop.f32.mrf.mxu0  ;;  %v992_v21 = vmax.f32 %v990_v15, %v991_v17  ;;  %2239 = vmatpush.msra.mxu1 %v3967_v6  ;;  %v430_v15 = vadd.f32 %v3805_v16, %v429_v4 }
 0x103   :  { %v402_v18 = vadd.f32 %v3805_v16, %v401_v14  ;;  %1586 = vmatpush.msra.mxu2 %v3918_v60 }
 0x104   :  { %1303 = vst [vmem:[#allocation1 + $0x20] ss:$4 sm:$0xff] %v989_v13  ;;  %v449_v13 = vpop.f32.mrf.mxu2 }
 0x105   :  { %v507_v20 = vmax.f32 %v402_v18, 0.0  ;;  %1587 = vmatpush.msra.mxu2 %v3935_v19 }
 0x107   :  { %v633_v22 = vrot.slane %v507_v20, 2  ;;  %v634_v23 = vrot.slane %v507_v20, 4  ;;  %v993_v24 = vsel %vm894_vm3, %v507_v20, -inf  ;;  %v635_v26 = vrot.slane %v507_v20, 6  ;;  %1588 = vmatpush.msra.mxu2 %v3952_v47 }
 0x108   :  { %v994_v25 = vmax.f32 %v992_v21, %v993_v24  ;;  %v450_v20 = vadd.f32 %v3805_v16, %v449_v13 }
 0x109   :  { %v995_v27 = vsel %vm894_vm3, %v633_v22, -inf  ;;  %v997_v30 = vsel %vm894_vm3, %v634_v23, -inf  ;;  %v999_v33 = vsel %vm894_vm3, %v635_v26, -inf  ;;  %v431_v26 = vpop.f32.mrf.mxu1  ;;  %1589 = vmatpush.msra.mxu2 %v3967_v6 }
 0x10a   :  { %v996_v28 = vmax.f32 %v994_v25, %v995_v27  ;;  %v404_v29 = vpop.f32.mrf.mxu0 }
 0x10b   :  { %v405_v31 = vadd.f32 %v3805_v16, %v404_v29  ;;  %v3984_v29 = vmax.f32 %v450_v20, 0.0 }
 0x10c   :  { %v998_v32 = vmax.f32 %v996_v28, %v997_v30  ;;  %v3982_v28 = vmax.f32 %v430_v15, 0.0  ;;  %v432_v30 = vadd.f32 %v3805_v16, %v431_v26 }
 0x10d   :  { %v508_v34 = vmax.f32 %v405_v31, 0.0 }
 0x10e   :  { %v1000_v35 = vmax.f32 %v998_v32, %v999_v33 }
 0x10f   :  { %v636_v36 = vrot.slane %v508_v34, 2  ;;  %v637_v37 = vrot.slane %v508_v34, 4  ;;  %v1001_v38 = vsel %vm894_vm3, %v508_v34, -inf  ;;  %v638_v40 = vrot.slane %v508_v34, 6 }
 0x110   :  { %v1002_v39 = vmax.f32 %v1000_v35, %v1001_v38  ;;  %v691_v35 = vrot.slane %v3984_v29, 4  ;;  %v692_v38 = vrot.slane %v3984_v29, 6 }
 0x111   :  { %v1003_v41 = vsel %vm894_vm3, %v636_v36, -inf  ;;  %v1005_v44 = vsel %vm894_vm3, %v637_v37, -inf  ;;  %v1007_v48 = vsel %vm894_vm3, %v638_v40, -inf  ;;  %v451_v40 = vpop.f32.mrf.mxu2 }
 0x112   :  { %v1004_v42 = vmax.f32 %v1002_v39, %v1003_v41  ;;  %v406_v43 = vpop.f32.mrf.mxu0  ;;  %v519_v39 = vmax.f32 %v432_v30, 0.0  ;;  %v666_v41 = vrot.slane %v3982_v28, 2 }
 0x113   :  { %v407_v45 = vadd.f32 %v3805_v16, %v406_v43  ;;  %v452_v43 = vadd.f32 %v3805_v16, %v451_v40 }
 0x114   :  { %v1006_v46 = vmax.f32 %v1004_v42, %v1005_v44  ;;  %v1142_v42 = vsel %vm894_vm3, %v691_v35, -inf }
 0x115   :  { %v509_v49 = vmax.f32 %v407_v45, 0.0  ;;  %v1143_v45 = vsel %vm894_vm3, %v692_v38, -inf }
 0x116   :  { %v1008_v50 = vmax.f32 %v1006_v46, %v1007_v48  ;;  %v669_v46 = vrot.slane %v519_v39, 2  ;;  %v670_v48 = vrot.slane %v519_v39, 4 }
 0x117   :  { %v639_v51 = vrot.slane %v509_v49, 2  ;;  %v640_v52 = vrot.slane %v509_v49, 4  ;;  %v641_v53 = vrot.slane %v509_v49, 6  ;;  %v1009_v54 = vsel %vm894_vm3, %v509_v49, -inf }
 0x118   :  { %1305 = vst [vmem:[#allocation1 + $0x21] ss:$4 sm:$0xff] %v1008_v50  ;;  %v3626_v49 = vmov 0.0  }
 0x119   :  { %v1010_v55 = vsel %vm894_vm3, %v639_v51, -inf  ;;  %v1012_v58 = vsel %vm894_vm3, %v640_v52, -inf  ;;  %v1014_v62 = vsel %vm894_vm3, %v641_v53, -inf  ;;  %1460 = vmatmul.f32.vlgmr.msrb.gmra.mxu2 %v3626_v49  ;;  %v671_v51 = vrot.slane %v519_v39, 6 }
 0x11a   :  { %v1011_v56 = vmax.f32 %v1009_v54, %v1010_v55  ;;  %v409_v57 = vpop.f32.mrf.mxu0  ;;  %v1085_v52 = vsel %vm894_vm3, %v519_v39, -inf  ;;  %v527_v53 = vmax.f32 %v452_v43, 0.0  ;;  %1716 = vmatpush.msrb.mxu2 %v3918_v60 }
 0x11b   :  { %v410_v59 = vadd.f32 %v3805_v16, %v409_v57  ;;  %v1144_v57 = vmax.f32 %v1142_v42, %v1143_v45 }
 0x11c   :  { %v1013_v61 = vmax.f32 %v1011_v56, %v1012_v58  ;;  %v434_v58 = vpop.f32.mrf.mxu1  ;;  %1717 = vmatpush.msrb.mxu2 %v3935_v19 }
 0x11d   :  { %v510_v63 = vmax.f32 %v410_v59, 0.0  ;;  %v435_v13 = vadd.f32 %v3805_v16, %v434_v58 }
 0x11e   :  { %v1015_v0 = vmax.f32 %v1013_v61, %v1014_v62  ;;  %v1086_v62 = vsel %vm894_vm3, %v669_v46, -inf  ;;  %1718 = vmatpush.msrb.mxu2 %v3952_v47 }
 0x11f   :  { %v642_v1 = vrot.slane %v510_v63, 2  ;;  %v643_v2 = vrot.slane %v510_v63, 4  ;;  %v1016_v3 = vsel %vm894_vm3, %v510_v63, -inf  ;;  %v644_v7 = vrot.slane %v510_v63, 6 }
 0x120   :  { %v1017_v5 = vmax.f32 %v1015_v0, %v1016_v3  ;;  %v1088_v63 = vsel %vm894_vm3, %v670_v48, -inf  ;;  %v1090_v3 = vsel %vm894_vm3, %v671_v51, -inf  ;;  %1719 = vmatpush.msrb.mxu2 %v3967_v6 }
 0x121   :  { %v1018_v8 = vsel %vm894_vm3, %v642_v1, -inf  ;;  %v1020_v11 = vsel %vm894_vm3, %v643_v2, -inf  ;;  %v1022_v17 = vsel %vm894_vm3, %v644_v7, -inf  ;;  %v1087_v2 = vmax.f32 %v1085_v52, %v1086_v62 }
 0x122   :  { %v1019_v9 = vmax.f32 %v1017_v5, %v1018_v8  ;;  %v411_v10 = vpop.f32.mrf.mxu0  ;;  %v693_v7 = vrot.slane %v527_v53, 2  ;;  %v694_v8 = vrot.slane %v527_v53, 4 }
 0x123   :  { %v412_v12 = vadd.f32 %v3805_v16, %v411_v10 }
 0x124   :  { %v1021_v14 = vmax.f32 %v1019_v9, %v1020_v11  ;;  %v695_v9 = vrot.slane %v527_v53, 6  ;;  %v1089_v11 = vmax.f32 %v1087_v2, %v1088_v63  ;;  %v1147_v20 = vsel %vm894_vm3, %v693_v7, -inf  ;;  %v436_v35 = vpop.f32.mrf.mxu1 }
 0x125   :  { %v511_v18 = vmax.f32 %v412_v12, 0.0  ;;  %v1145_v12 = vsel %vm894_vm3, %v527_v53, -inf }
 0x126   :  { %v1023_v21 = vmax.f32 %v1021_v14, %v1022_v17  ;;  %v454_v14 = vpop.f32.mrf.mxu2 }
 0x127   :  { %v645_v22 = vrot.slane %v511_v18, 2  ;;  %v646_v23 = vrot.slane %v511_v18, 4  ;;  %v647_v24 = vrot.slane %v511_v18, 6  ;;  %v1024_v25 = vsel %vm894_vm3, %v511_v18, -inf }
 0x128   :  { %v1025_v27 = vmax.f32 %v1023_v21, %v1024_v25  ;;  %v1146_v18 = vmax.f32 %v1144_v57, %v1145_v12  ;;  %v455_v30 = vadd.f32 %v3805_v16, %v454_v14  ;;  %v437_v57 = vadd.f32 %v3805_v16, %v436_v35 }
 0x129   :  { %v1026_v31 = vsel %vm894_vm3, %v645_v22, -inf  ;;  %v1028_v33 = vsel %vm894_vm3, %v646_v23, -inf  ;;  %v1029_v36 = vsel %vm894_vm3, %v647_v24, -inf  ;;  %v1149_v22 = vsel %vm894_vm3, %v694_v8, -inf }
 0x12a   :  { %v1027_v32 = vmax.f32 %v1025_v27, %v1026_v31  ;;  %v414_v34 = vpop.f32.mrf.mxu0  ;;  %v1030_v50 = vmax.f32 %v1028_v33, %v1029_v36  ;;  %v1151_v23 = vsel %vm894_vm3, %v695_v9, -inf  ;;  %v520_v24 = vmax.f32 %v435_v13, 0.0 }
 0x12b   :  { %v415_v37 = vadd.f32 %v3805_v16, %v414_v34  ;;  %v1148_v26 = vmax.f32 %v1146_v18, %v1147_v20  ;;  %v1091_v27 = vmax.f32 %v1089_v11, %v1090_v3  ;;  %v528_v52 = vmax.f32 %v455_v30, 0.0 }
 0x12c   :  { %1307 = vst [vmem:[#allocation1 + $0x22] ss:$4 sm:$0xff] %v1027_v32  ;;  %v672_v38 = vrot.slane %v520_v24, 2  ;;  %v673_v39 = vrot.slane %v520_v24, 4  ;;  %v1092_v46 = vsel %vm894_vm3, %v520_v24, -inf  ;;  %v521_v3 = vmax.f32 %v437_v57, 0.0 }
 0x12d   :  { %v512_v44 = vmax.f32 %v415_v37, 0.0  ;;  %v1150_v37 = vmax.f32 %v1148_v26, %v1149_v22  ;;  %v696_v62 = vrot.slane %v528_v52, 2  ;;  %v697_v63 = vrot.slane %v528_v52, 4 }
 0x12e   :  { %v1094_v48 = vsel %vm894_vm3, %v672_v38, -inf  ;;  %v1096_v49 = vsel %vm894_vm3, %v673_v39, -inf  ;;  %v1153_v2 = vsel %vm894_vm3, %v528_v52, -inf  ;;  %v675_v12 = vrot.slane %v521_v3, 2 }
 0x12f   :  { %v648_v54 = vrot.slane %v512_v44, 2  ;;  %v649_v55 = vrot.slane %v512_v44, 4  ;;  %v1031_v56 = vsel %vm894_vm3, %v512_v44, -inf  ;;  %v650_v59 = vrot.slane %v512_v44, 6 }
 0x130   :  { %v1032_v61 = vmax.f32 %v1030_v50, %v1031_v56  ;;  %v674_v44 = vrot.slane %v520_v24, 6  ;;  %v1093_v50 = vmax.f32 %v1091_v27, %v1092_v46  ;;  %v1152_v53 = vmax.f32 %v1150_v37, %v1151_v23  ;;  %v1310_v37 = vld.sshfl [vmem:[#allocation1] sm:$0xff pattern:$0x73625140] }
 0x131   :  { %v1033_v0 = vsel %vm894_vm3, %v648_v54, -inf  ;;  %v1035_v1 = vsel %vm894_vm3, %v649_v55, -inf  ;;  %v1037_v17 = vsel %vm894_vm3, %v650_v59, -inf  ;;  %v456_v55 = vpop.f32.mrf.mxu2  ;;  %v1155_v8 = vsel %vm894_vm3, %v696_v62, -inf }
 0x132   :  { %v1034_v4 = vmax.f32 %v1032_v61, %v1033_v0  ;;  %v416_v5 = vpop.f32.mrf.mxu0  ;;  %v1098_v51 = vsel %vm894_vm3, %v674_v44, -inf  ;;  %v457_v59 = vadd.f32 %v3805_v16, %v456_v55  ;;  %v1095_v61 = vmax.f32 %v1093_v50, %v1094_v48 }
 0x133   :  { %v417_v10 = vadd.f32 %v3805_v16, %v416_v5  ;;  %v698_v0 = vrot.slane %v528_v52, 6  ;;  %v1154_v7 = vmax.f32 %v1152_v53, %v1153_v2  ;;  %v1157_v9 = vsel %vm894_vm3, %v697_v63, -inf }
 0x134   :  { %v1036_v15 = vmax.f32 %v1034_v4, %v1035_v1  ;;  %v1097_v5 = vmax.f32 %v1095_v61, %v1096_v49  ;;  %v676_v13 = vrot.slane %v521_v3, 4  ;;  %v677_v14 = vrot.slane %v521_v3, 6 }
 0x135   :  { %v513_v21 = vmax.f32 %v417_v10, 0.0  ;;  %v439_v10 = vpop.f32.mrf.mxu1  ;;  %v1159_v11 = vsel %vm894_vm3, %v698_v0, -inf  ;;  %v1100_v18 = vsel %vm894_vm3, %v521_v3, -inf  ;;  %v529_v35 = vmax.f32 %v457_v59, 0.0 }
 0x136   :  { %v1038_v25 = vmax.f32 %v1036_v15, %v1037_v17  ;;  %v1156_v15 = vmax.f32 %v1154_v7, %v1155_v8  ;;  %v1099_v17 = vmax.f32 %v1097_v5, %v1098_v51  ;;  %v1104_v22 = vsel %vm894_vm3, %v676_v13, -inf }
 0x137   :  { %v651_v31 = vrot.slane %v513_v21, 2  ;;  %v652_v32 = vrot.slane %v513_v21, 4  ;;  %v653_v33 = vrot.slane %v513_v21, 6  ;;  %v1039_v34 = vsel %vm894_vm3, %v513_v21, -inf }
 0x138   :  { %v1040_v36 = vmax.f32 %v1038_v25, %v1039_v34  ;;  %v1102_v21 = vsel %vm894_vm3, %v675_v12, -inf  ;;  %v1105_v23 = vsel %vm894_vm3, %v677_v14, -inf  ;;  %v1158_v25 = vmax.f32 %v1156_v15, %v1157_v9 }
 0x139   :  { %v1041_v40 = vsel %vm894_vm3, %v651_v31, -inf  ;;  %v1043_v42 = vsel %vm894_vm3, %v652_v32, -inf  ;;  %v1045_v43 = vsel %vm894_vm3, %v653_v33, -inf  ;;  %v1101_v26 = vmax.f32 %v1099_v17, %v1100_v18  ;;  %v459_v32 = vpop.f32.mrf.mxu2 }
 0x13a   :  { %v1042_v45 = vmax.f32 %v1040_v36, %v1041_v40  ;;  %v419_v54 = vpop.f32.mrf.mxu0  ;;  %v440_v36 = vadd.f32 %v3805_v16, %v439_v10  ;;  %v1160_v38 = vmax.f32 %v1158_v25, %v1159_v11  ;;  %v700_v44 = vrot.slane %v529_v35, 4 }
 0x13b   :  { %v420_v58 = vadd.f32 %v3805_v16, %v419_v54  ;;  %v1103_v39 = vmax.f32 %v1101_v26, %v1102_v21  ;;  %v1161_v46 = vsel %vm894_vm3, %v529_v35, -inf  ;;  %v1106_v51 = vmax.f32 %v1104_v22, %v1105_v23 }
 0x13c   :  { %v1044_v56 = vmax.f32 %v1042_v45, %v1043_v42  ;;  %v701_v45 = vrot.slane %v529_v35, 6  ;;  %v522_v50 = vmax.f32 %v440_v36, 0.0  ;;  %v460_v2 = vadd.f32 %v3805_v16, %v459_v32 }
 0x13d   :  { %v514_v4 = vmax.f32 %v420_v58, 0.0  ;;  %1314 = vst [vmem:[#allocation1 + $0x2] ss:$4 sm:$0xff] %v1103_v39  ;;  %v441_v53 = vpop.f32.mrf.mxu1  ;;  %v667_v3 = vrot.slane %v3982_v28, 4 }
 0x13e   :  { %v1046_v1 = vmax.f32 %v1044_v56, %v1045_v43  ;;  %v699_v43 = vrot.slane %v529_v35, 2  ;;  %v1164_v56 = vsel %vm894_vm3, %v700_v44, -inf  ;;  %v1166_v57 = vsel %vm894_vm3, %v701_v45, -inf }
 0x13f   :  { %v654_v20 = vrot.slane %v514_v4, 2  ;;  %v655_v24 = vrot.slane %v514_v4, 4  ;;  %v656_v27 = vrot.slane %v514_v4, 6  ;;  %v1047_v30 = vsel %vm894_vm3, %v514_v4, -inf }
 0x140   :  { %1309 = vst [vmem:[#allocation1 + $0x23] ss:$4 sm:$0xff] %v1046_v1  ;;  %v1162_v55 = vsel %vm894_vm3, %v699_v43, -inf  ;;  %v678_v59 = vrot.slane %v522_v50, 2  ;;  %v679_v61 = vrot.slane %v522_v50, 4  ;;  %v680_v62 = vrot.slane %v522_v50, 6 }
 0x141   :  { %v1048_v33 = vsel %vm894_vm3, %v654_v20, -inf  ;;  %v1050_v34 = vsel %vm894_vm3, %v655_v24, -inf  ;;  %v1052_v42 = vsel %vm894_vm3, %v656_v27, -inf  ;;  %v1163_v58 = vmax.f32 %v1161_v46, %v1162_v55  ;;  %v461_v8 = vpop.f32.mrf.mxu2 }
 0x142   :  { %v421_v31 = vpop.f32.mrf.mxu0  ;;  %v1049_v40 = vmax.f32 %v1047_v30, %v1048_v33  ;;  %v1107_v63 = vsel %vm894_vm3, %v522_v50, -inf  ;;  %v1109_v7 = vsel %vm894_vm3, %v678_v59, -inf  ;;  %v1111_v9 = vsel %vm894_vm3, %v679_v61, -inf }
 0x143   :  { %v422_v52 = vadd.f32 %v3805_v16, %v421_v31  ;;  %v1165_v4 = vmax.f32 %v1163_v58, %v1164_v56  ;;  %v1108_v5 = vmax.f32 %v1106_v51, %v1107_v63  ;;  %v530_v17 = vmax.f32 %v460_v2, 0.0 }
 0x144   :  { %v1051_v49 = vmax.f32 %v1049_v40, %v1050_v34  ;;  %v1113_v20 = vsel %vm894_vm3, %v680_v62, -inf  ;;  %v442_v32 = vadd.f32 %v3805_v16, %v441_v53  ;;  %v462_v46 = vadd.f32 %v3805_v16, %v461_v8 }
 0x145   :  { %v515_v0 = vmax.f32 %v422_v52, 0.0  ;;  %v1110_v14 = vmax.f32 %v1108_v5, %v1109_v7  ;;  %v1167_v18 = vmax.f32 %v1165_v4, %v1166_v57  ;;  %v702_v25 = vrot.slane %v530_v17, 2  ;;  %v444_v34 = vpop.f32.mrf.mxu1 }
 0x146   :  { %v1053_v1 = vmax.f32 %v1051_v49, %v1052_v42  ;;  %v703_v26 = vrot.slane %v530_v17, 4  ;;  %v704_v27 = vrot.slane %v530_v17, 6  ;;  %v1168_v31 = vsel %vm894_vm3, %v530_v17, -inf }
 0x147   :  { %v1311_v48 = vld.sshfl [vmem:[#allocation1 + $0x20] sm:$0xff pattern:$0x73625140]  ;;  %v657_v10 = vrot.slane %v515_v0, 2  ;;  %v658_v11 = vrot.slane %v515_v0, 4  ;;  %v659_v12 = vrot.slane %v515_v0, 6  ;;  %v1112_v24 = vmax.f32 %v1110_v14, %v1111_v9 }
 0x148   :  { %v1332_v54 = vpack.c.bf16 %v1311_v48, %v1310_v37  ;;  %1317 = vst [vmem:[#allocation1 + $0x21] ss:$4 sm:$0xff] %v1160_v38  ;;  %v1054_v15 = vsel %vm894_vm3, %v515_v0, -inf  ;;  %v1169_v36 = vmax.f32 %v1167_v18, %v1168_v31  ;;  %v1170_v37 = vsel %vm894_vm3, %v702_v25, -inf }
 0x149   :  { %v1055_v21 = vmax.f32 %v1053_v1, %v1054_v15  ;;  %v1056_v22 = vsel %vm894_vm3, %v657_v10, -inf  ;;  %v1058_v23 = vsel %vm894_vm3, %v658_v11, -inf  ;;  %v1060_v35 = vsel %vm894_vm3, %v659_v12, -inf  ;;  %v464_v57 = vpop.f32.mrf.mxu2  ;;  %v4080_v12 = vld [vmem:[%s4541_s10] ss:$0 sm:$0xff] }
 0x14a   :  { %3260 = vmatmul.msk.bf16.vlgmr.msrb.gmra.mxu1 %vm1347_vm4, %v1332_v54  ;;  %v424_v13 = vpop.f32.mrf.mxu0  ;;  %v1172_v38 = vsel %vm894_vm3, %v703_v26, -inf  ;;  %v1174_v39 = vsel %vm894_vm3, %v704_v27, -inf  ;;  %v523_v40 = vmax.f32 %v442_v32, 0.0  ;;  %v1114_v42 = vmax.f32 %v1112_v24, %v1113_v20 }
 0x14b   :  { %2431 = vmatpush.msrb.mxu1 %v3918_v60  ;;  %v1057_v30 = vmax.f32 %v1055_v21, %v1056_v22  ;;  %v425_v33 = vadd.f32 %v3805_v16, %v424_v13  ;;  %v1171_v45 = vmax.f32 %v1169_v36, %v1170_v37  ;;  %v445_v48 = vadd.f32 %v3805_v16, %v444_v34 }
 0x14c   :  { %v681_v49 = vrot.slane %v523_v40, 2  ;;  %v682_v50 = vrot.slane %v523_v40, 4  ;;  %v683_v51 = vrot.slane %v523_v40, 6  ;;  %v1115_v52 = vsel %vm894_vm3, %v523_v40, -inf }
 0x14d   :  { %2432 = vmatpush.msrb.mxu1 %v3935_v19  ;;  %v516_v43 = vmax.f32 %v425_v33, 0.0  ;;  %v1059_v44 = vmax.f32 %v1057_v30, %v1058_v23  ;;  %v1173_v53 = vmax.f32 %v1171_v45, %v1172_v38  ;;  %v1116_v54 = vmax.f32 %v1114_v42, %v1115_v52  ;;  %v446_v30 = vpop.f32.mrf.mxu1 }
 0x14e   :  { %v1117_v58 = vsel %vm894_vm3, %v681_v49, -inf  ;;  %v1119_v59 = vsel %vm894_vm3, %v682_v50, -inf  ;;  %v1121_v61 = vsel %vm894_vm3, %v683_v51, -inf  ;;  %v531_v7 = vmax.f32 %v462_v46, 0.0 }
 0x14f   :  { %2433 = vmatpush.msrb.mxu1 %v3952_v47  ;;  %v660_v55 = vrot.slane %v516_v43, 2  ;;  %v661_v56 = vrot.slane %v516_v43, 4  ;;  %v662_v62 = vrot.slane %v516_v43, 6  ;;  %v1118_v0 = vmax.f32 %v1116_v54, %v1117_v58 }
 0x150   :  { %v1061_v16 = vmax.f32 %v1059_v44, %v1060_v35  ;;  %v1062_v1 = vsel %vm894_vm3, %v516_v43, -inf  ;;  %v1175_v8 = vmax.f32 %v1173_v53, %v1174_v39  ;;  %v524_v11 = vmax.f32 %v445_v48, 0.0 }
 0x151   :  { %2434 = vmatpush.msrb.mxu1 %v3967_v6  ;;  %v1064_v2 = vsel %vm894_vm3, %v660_v55, -inf  ;;  %v1066_v4 = vsel %vm894_vm3, %v661_v56, -inf  ;;  %v1067_v5 = vsel %vm894_vm3, %v662_v62, -inf  ;;  %v1120_v9 = vmax.f32 %v1118_v0, %v1119_v59  ;;  %v466_v44 = vpop.f32.mrf.mxu2 }
 0x152   :  { %v426_v63 = vpop.f32.mrf.mxu0  ;;  %v1063_v10 = vmax.f32 %v1061_v16, %v1062_v1  ;;  %v705_v14 = vrot.slane %v531_v7, 2  ;;  %v706_v15 = vrot.slane %v531_v7, 4  ;;  %v707_v17 = vrot.slane %v531_v7, 6 }
 0x153   :  { %v427_v13 = vadd.f32 %v4080_v12, %v426_v63  ;;  %v1176_v18 = vsel %vm894_vm3, %v531_v7, -inf  ;;  %v1122_v20 = vmax.f32 %v1120_v9, %v1121_v61  ;;  %v684_v23 = vrot.slane %v524_v11, 2 }
 0x154   :  { %v1065_v21 = vmax.f32 %v1063_v10, %v1064_v2  ;;  %v1177_v22 = vmax.f32 %v1175_v8, %v1176_v18  ;;  %v1178_v24 = vsel %vm894_vm3, %v705_v14, -inf  ;;  %v1180_v25 = vsel %vm894_vm3, %v706_v15, -inf }
 0x155   :  { %v1181_v26 = vsel %vm894_vm3, %v707_v17, -inf  ;;  %v685_v27 = vrot.slane %v524_v11, 4  ;;  %1315 = vst [vmem:[#allocation1 + $0x3] ss:$4 sm:$0xff] %v1122_v20  ;;  %v686_v32 = vrot.slane %v524_v11, 6  ;;  %v1123_v33 = vsel %vm894_vm3, %v524_v11, -inf }
 0x156   :  { %v1179_v31 = vmax.f32 %v1177_v22, %v1178_v24  ;;  %v1124_v34 = vsel %vm894_vm3, %v684_v23, -inf  ;;  %1312 = vst [vmem:[#allocation1] ss:$4 sm:$0xff] %v1065_v21  ;;  %v517_v37 = vmax.f32 %v427_v13, 0.0  ;;  %v1068_v38 = vmax.f32 %v1066_v4, %v1067_v5 }
 0x157   :  { %v1125_v35 = vmax.f32 %v1123_v33, %v1124_v34  ;;  %v1126_v36 = vsel %vm894_vm3, %v685_v27, -inf  ;;  %v668_v39 = vrot.slane %v3982_v28, 6  ;;  %v1128_v40 = vsel %vm894_vm3, %v686_v32, -inf }
 0x158   :  { %1318 = vst [vmem:[#allocation1 + $0x22] ss:$4 sm:$0xff] %v1179_v31  ;;  %v465_v42 = vadd.f32 %v4080_v12, %v464_v57  ;;  %v447_v43 = vadd.f32 %v4080_v12, %v446_v30  ;;  %v663_v46 = vrot.slane %v517_v37, 2  ;;  %v664_v48 = vrot.slane %v517_v37, 4 }
 0x159   :  { %v1127_v45 = vmax.f32 %v1125_v35, %v1126_v36  ;;  %v1182_v49 = vmax.f32 %v1180_v25, %v1181_v26  ;;  %v665_v50 = vrot.slane %v517_v37, 6  ;;  %v1069_v51 = vsel %vm894_vm3, %v517_v37, -inf }
 0x15a   :  { %v532_v52 = vmax.f32 %v465_v42, 0.0  ;;  %v525_v53 = vmax.f32 %v447_v43, 0.0  ;;  %v1070_v54 = vmax.f32 %v1068_v38, %v1069_v51  ;;  %v1071_v55 = vsel %vm894_vm3, %v663_v46, -inf }
 0x15b   :  { %v1073_v56 = vsel %vm894_vm3, %v664_v48, -inf  ;;  %v467_v58 = vadd.f32 %v4080_v12, %v466_v44  ;;  %v1077_v63 = vsel %vm894_vm3, %v3982_v28, -inf  ;;  %v1075_v2 = vsel %vm894_vm3, %v665_v50, -inf }
 0x15c   :  { %v708_v57 = vrot.slane %v532_v52, 2  ;;  %v709_v59 = vrot.slane %v532_v52, 4  ;;  %v710_v61 = vrot.slane %v532_v52, 6  ;;  %v1183_v62 = vsel %vm894_vm3, %v532_v52, -inf }
 0x15d   :  { %v1072_v0 = vmax.f32 %v1070_v54, %v1071_v55  ;;  %v1184_v16 = vmax.f32 %v1182_v49, %v1183_v62  ;;  %v687_v1 = vrot.slane %v525_v53, 2  ;;  %v688_v7 = vrot.slane %v525_v53, 4  ;;  %v4128_v54 = vld [vmem:[%s4544_s6] ss:$0 sm:$0xff] }
 0x15e   :  { %v1185_v4 = vsel %vm894_vm3, %v708_v57, -inf  ;;  %v1187_v5 = vsel %vm894_vm3, %v709_v59, -inf  ;;  %v1129_v10 = vmax.f32 %v1127_v45, %v1128_v40  ;;  %v1130_v11 = vsel %vm894_vm3, %v525_v53, -inf }
 0x15f   :  { %v1074_v8 = vmax.f32 %v1072_v0, %v1073_v56  ;;  %v1186_v9 = vmax.f32 %v1184_v16, %v1185_v4  ;;  %v1189_v13 = vsel %vm894_vm3, %v710_v61, -inf  ;;  %v689_v14 = vrot.slane %v525_v53, 6 }
 0x160   :  { %v1132_v15 = vsel %vm894_vm3, %v687_v1, -inf  ;;  %v533_v17 = vmax.f32 %v467_v58, 0.0  ;;  %v1079_v18 = vsel %vm894_vm3, %v666_v41, -inf  ;;  %v1131_v22 = vmax.f32 %v1129_v10, %v1130_v11 }
 0x161   :  { %v1076_v20 = vmax.f32 %v1074_v8, %v1075_v2  ;;  %v1188_v21 = vmax.f32 %v1186_v9, %v1187_v5  ;;  %v1134_v23 = vsel %vm894_vm3, %v688_v7, -inf  ;;  %v1081_v27 = vsel %vm894_vm3, %v667_v3, -inf }
 0x162   :  { %v711_v24 = vrot.slane %v533_v17, 2  ;;  %v712_v25 = vrot.slane %v533_v17, 4  ;;  %v1191_v26 = vsel %vm894_vm3, %v533_v17, -inf  ;;  %v1133_v31 = vmax.f32 %v1131_v22, %v1132_v15 }
 0x163   :  { %v1078_v30 = vmax.f32 %v1076_v20, %v1077_v63  ;;  %v1190_v32 = vmax.f32 %v1188_v21, %v1189_v13  ;;  %v690_v33 = vrot.slane %v3984_v29, 2  ;;  %v1136_v41 = vsel %vm894_vm3, %v689_v14, -inf }
 0x164   :  { %v713_v34 = vrot.slane %v533_v17, 6  ;;  %v1193_v35 = vsel %vm894_vm3, %v711_v24, -inf  ;;  %v1135_v37 = vmax.f32 %v1133_v31, %v1134_v23  ;;  %v1083_v40 = vsel %vm894_vm3, %v668_v39, -inf }
 0x165   :  { %v1080_v36 = vmax.f32 %v1078_v30, %v1079_v18  ;;  %v1192_v38 = vmax.f32 %v1190_v32, %v1191_v26  ;;  %v1138_v28 = vsel %vm894_vm3, %v3984_v29, -inf  ;;  %v1195_v3 = vsel %vm894_vm3, %v712_v25, -inf }
 0x166   :  { %v1137_v43 = vmax.f32 %v1135_v37, %v1136_v41  ;;  %v1140_v45 = vsel %vm894_vm3, %v690_v33, -inf  ;;  %v1197_v46 = vsel %vm894_vm3, %v713_v34, -inf  ;;  %v3401_v37 = vld [vmem:[%s4540_s27 + $0xa8] sm:$0xff] }
 0x167   :  { %v1082_v42 = vmax.f32 %v1080_v36, %v1081_v27  ;;  %v1194_v44 = vmax.f32 %v1192_v38, %v1193_v35  ;;  %v3400_v36 = vld [vmem:[%s4540_s27 + $0xa0] sm:$0xff] }
 0x168   :  { %v1139_v49 = vmax.f32 %v1137_v43, %v1138_v28  ;;  %3251 = vmatmul.msk.bf16.vlgmr.msra.gmra.mxu3 %vm277_vm2, %v3400_v36 }
 0x169   :  { %v1084_v48 = vmax.f32 %v1082_v42, %v1083_v40  ;;  %v1196_v50 = vmax.f32 %v1194_v44, %v1195_v3  ;;  %1651 = vmatpush.msra.mxu3 %v3918_v60  ;;  %v3402_v60 = vld [vmem:[%s4540_s27 + $0xb0] sm:$0xff] }
 0x16a   :  { %v1141_v51 = vmax.f32 %v1139_v49, %v1140_v45 }
 0x16b   :  { %1313 = vst [vmem:[#allocation1 + $0x1] ss:$4 sm:$0xff] %v1084_v48  ;;  %v1198_v52 = vmax.f32 %v1196_v50, %v1197_v46  ;;  %1652 = vmatpush.msra.mxu3 %v3935_v19 }
 0x16c   :  { %1316 = vst [vmem:[#allocation1 + $0x20] ss:$4 sm:$0xff] %v1141_v51 }
 0x16d   :  { %1319 = vst [vmem:[#allocation1 + $0x23] ss:$4 sm:$0xff] %v1198_v52  ;;  %1653 = vmatpush.msra.mxu3 %v3952_v47  ;;  %v3403_v47 = vld [vmem:[%s4540_s27 + $0xb8] sm:$0xff] }
 0x16f   :  { %1654 = vmatpush.msra.mxu3 %v3967_v6  ;;  %v3404_v6 = vld [vmem:[%s4540_s27 + $0xc0] sm:$0xff]  ;;  %s4547_s27 = sld [smem:[#allocation12_spill]] }
 0x172   :  { %v1320_v39 = vld.sshfl [vmem:[#allocation1] sm:$0xff pattern:$0x73625140] }
 0x174   :  { %v1321_v53 = vld.sshfl [vmem:[#allocation1 + $0x20] sm:$0xff pattern:$0x73625140] }
 0x175   :  { %v1333_v29 = vpack.c.bf16 %v1321_v53, %v1320_v39 }
 0x177   :  { %3261 = vmatmul.msk.bf16.gmra.mxu1 %vm1347_vm4, %v1333_v29 }
 0x178   :  { %3252 = vmatmul.msk.bf16.gmra.mxu3 %vm277_vm2, %v3401_v37 }
 0x188   :  { %3253 = vmatmul.msk.bf16.gmra.mxu3 %vm277_vm2, %v3402_v60 }
 0x198   :  { %3254 = vmatmul.msk.bf16.gmra.mxu3 %vm277_vm2, %v3403_v47 }
 0x19c   :  { %v1461_v62 = vpop.f32.mrf.mxu2 }
 0x1a8   :  { %3255 = vmatmul.msk.bf16.gmra.mxu3 %vm277_vm2, %v3404_v6 }
 0x1c7   :  { %v1366_v55 = vpop.f32.mrf.mxu1 }
 0x1c8   :  { %v1367_v56 = vadd.f32 %v4128_v54, %v1366_v55 }
 0x1ca   :  { %v1385_v58 = vrot.slane %v1367_v56, 2  ;;  %v1386_v57 = vrot.slane %v1367_v56, 4  ;;  %v1387_v59 = vrot.slane %v1367_v56, 6  ;;  %1415 = vst [vmem:[#allocation2] sm:$0x3] %v1367_v56 }
 0x1cc   :  { %1416 = vst [vmem:[#allocation2 + $0x2] sm:$0x3] %v1385_v58 }
 0x1cd   :  { %1417 = vst [vmem:[#allocation2 + $0x4] sm:$0x3] %v1386_v57 }
 0x1ce   :  { %1418 = vst [vmem:[#allocation2 + $0x6] sm:$0x3] %v1387_v59 }
 0x1cf   :  { %v1368_v61 = vpop.f32.mrf.mxu1 }
 0x1d0   :  { %v1369_v63 = vadd.f32 %v4128_v54, %v1368_v61 }
 0x1d1   :  { %v1439_v0 = vld [vmem:[#allocation2] sm:$0x3] }
 0x1d2   :  { %v1388_v16 = vrot.slane %v1369_v63, 2  ;;  %v1389_v1 = vrot.slane %v1369_v63, 4  ;;  %v1390_v2 = vrot.slane %v1369_v63, 6  ;;  %1419 = vst [vmem:[#allocation2 + $0x8] sm:$0x3] %v1369_v63  ;;  %v1464_v4 = vadd.f32 %v1461_v62, %v1439_v0 }
 0x1d4   :  { %1420 = vst [vmem:[#allocation2 + $0xa] sm:$0x3] %v1388_v16  ;;  %3448 = vtanh.f32 %v1464_v4  ;;  %v3263_v20 = vmul.f32 -1.442695, %v1464_v4 }
 0x1d5   :  { %1421 = vst [vmem:[#allocation2 + $0xc] sm:$0x3] %v1389_v1 }
 0x1d6   :  { %1422 = vst [vmem:[#allocation2 + $0xe] sm:$0x3] %v1390_v2  ;;  %3450 = vpow2.f32 %v3263_v20 }
 0x1da   :  { %v3449_v5 = vpop.eup %3448 }
 0x1db   :  { %1487 = vrot.lane.b32.xlu0 %v3449_v5, %s3627_s0 }
 0x1dc   :  { %v3451_v21 = vpop.eup %3450 }
 0x1dd   :  { %v1468_v22 = vadd.f32 1.0, %v3451_v21 }
 0x1df   :  { %3452 = vrcp.f32 %v1468_v22  ;;  %v1480_v30 = vand.u32 2147483648, %v1468_v22  ;;  %vm1474_vm6 = vweird.f32 %v1468_v22  ;;  %v1478_v31 = vand.u32 2147483647, %v1468_v22 }
 0x1e1   :  { %v1481_v33 = vor.u32 1.1754944e-38, %v1480_v30  ;;  %vm1479_vm8 = vcmp.eq.f32.partialorder %v1478_v31, 8.507059e+37 }
 0x1e5   :  { %v3453_v23 = vpop.eup %3452 }
 0x1e6   :  { %v1470_v24 = vmul.f32 %v3453_v23, %v1468_v22  ;;  %vm1475_vm5 = vweird.f32 %v3453_v23 }
 0x1e7   :  { %vm1476_vm7 = vmor %vm1474_vm6, %vm1475_vm5 }
 0x1e8   :  { %v1471_v25 = vsub.f32 1.0, %v1470_v24 }
 0x1ea   :  { %v1472_v26 = vmul.f32 %v3453_v23, %v1471_v25 }
 0x1eb   :  { %v469_v3 = vpop.f32.mrf.mxu3 }
 0x1ec   :  { %v1473_v27 = vadd.f32 %v3453_v23, %v1472_v26  ;;  %v470_v42 = vadd.f32 %v4080_v12, %v469_v3 }
 0x1ee   :  { %v1477_v32 = vsel %vm1476_vm7, %v3453_v23, %v1473_v27  ;;  %v534_v43 = vmax.f32 %v470_v42, 0.0 }
 0x1ef   :  { %v1482_v34 = vsel %vm1479_vm8, %v1481_v33, %v1477_v32 }
 0x1f0   :  { %v1485_v38 = vmul.f32 0.0, %v1482_v34  ;;  %v714_v44 = vrot.slane %v534_v43, 2  ;;  %v715_v45 = vrot.slane %v534_v43, 4  ;;  %v716_v46 = vrot.slane %v534_v43, 6 }
 0x1f1   :  { %v1199_v48 = vsel %vm894_vm3, %v534_v43, -inf }
 0x1f2   :  { %v1200_v49 = vsel %vm894_vm3, %v714_v44, -inf  ;;  %v1202_v50 = vsel %vm894_vm3, %v715_v45, -inf  ;;  %v1204_v39 = vsel %vm894_vm3, %v716_v46, -inf }
 0x1f3   :  { %v1201_v51 = vmax.f32 %v1199_v48, %v1200_v49  ;;  %v471_v52 = vpop.f32.mrf.mxu3 }
 0x1f4   :  { %v1371_v7 = vpop.f32.mrf.mxu1  ;;  %v472_v53 = vadd.f32 %v4080_v12, %v471_v52 }
 0x1f5   :  { %v1372_v8 = vadd.f32 %v4128_v54, %v1371_v7  ;;  %v1203_v29 = vmax.f32 %v1201_v51, %v1202_v50 }
 0x1f6   :  { %v535_v55 = vmax.f32 %v472_v53, 0.0 }
 0x1f7   :  { %v1391_v9 = vrot.slane %v1372_v8, 2  ;;  %v1392_v10 = vrot.slane %v1372_v8, 4  ;;  %v1393_v11 = vrot.slane %v1372_v8, 6  ;;  %1423 = vst [vmem:[#allocation2 + $0x10] sm:$0x3] %v1372_v8  ;;  %v1205_v56 = vmax.f32 %v1203_v29, %v1204_v39 }
 0x1f8   :  { %v717_v57 = vrot.slane %v535_v55, 2  ;;  %v718_v59 = vrot.slane %v535_v55, 4  ;;  %v719_v61 = vrot.slane %v535_v55, 6  ;;  %v1206_v62 = vsel %vm894_vm3, %v535_v55, -inf }
 0x1f9   :  { %1424 = vst [vmem:[#allocation2 + $0x12] sm:$0x3] %v1391_v9  ;;  %v1207_v0 = vmax.f32 %v1205_v56, %v1206_v62 }
 0x1fa   :  { %1425 = vst [vmem:[#allocation2 + $0x14] sm:$0x3] %v1392_v10  ;;  %v1208_v16 = vsel %vm894_vm3, %v717_v57, -inf  ;;  %v1210_v1 = vsel %vm894_vm3, %v718_v59, -inf  ;;  %v1212_v5 = vsel %vm894_vm3, %v719_v61, -inf }
 0x1fb   :  { %1426 = vst [vmem:[#allocation2 + $0x16] sm:$0x3] %v1393_v11  ;;  %v1209_v2 = vmax.f32 %v1207_v0, %v1208_v16  ;;  %v474_v4 = vpop.f32.mrf.mxu3 }
 0x1fc   :  { %v1373_v13 = vpop.f32.mrf.mxu1  ;;  %v475_v7 = vadd.f32 %v4080_v12, %v474_v4 }
 0x1fd   :  { %v1374_v14 = vadd.f32 %v4128_v54, %v1373_v13  ;;  %v1211_v8 = vmax.f32 %v1209_v2, %v1210_v1 }
 0x1fe   :  { %v536_v9 = vmax.f32 %v475_v7, 0.0 }
 0x1ff   :  { %v1394_v15 = vrot.slane %v1374_v14, 2  ;;  %v1395_v17 = vrot.slane %v1374_v14, 4  ;;  %v1396_v18 = vrot.slane %v1374_v14, 6  ;;  %1427 = vst [vmem:[#allocation2 + $0x18] sm:$0x3] %v1374_v14  ;;  %v1213_v10 = vmax.f32 %v1211_v8, %v1212_v5 }
 0x200   :  { %v720_v11 = vrot.slane %v536_v9, 2  ;;  %v1214_v13 = vsel %vm894_vm3, %v536_v9, -inf  ;;  %v721_v20 = vrot.slane %v536_v9, 4  ;;  %v722_v21 = vrot.slane %v536_v9, 6 }
 0x201   :  { %1428 = vst [vmem:[#allocation2 + $0x1a] sm:$0x3] %v1394_v15  ;;  %v1215_v14 = vmax.f32 %v1213_v10, %v1214_v13 }
 0x202   :  { %1429 = vst [vmem:[#allocation2 + $0x1c] sm:$0x3] %v1395_v17  ;;  %v1216_v15 = vsel %vm894_vm3, %v720_v11, -inf  ;;  %v1218_v23 = vsel %vm894_vm3, %v721_v20, -inf  ;;  %v1219_v24 = vsel %vm894_vm3, %v722_v21, -inf }
 0x203   :  { %1430 = vst [vmem:[#allocation2 + $0x1e] sm:$0x3] %v1396_v18  ;;  %v1217_v17 = vmax.f32 %v1215_v14, %v1216_v15  ;;  %v476_v18 = vpop.f32.mrf.mxu3  ;;  %v1220_v26 = vmax.f32 %v1218_v23, %v1219_v24 }
 0x204   :  { %v477_v22 = vadd.f32 %v4080_v12, %v476_v18 }
 0x205   :  { %1322 = vst [vmem:[#allocation1] ss:$4 sm:$0xff] %v1217_v17 }
 0x206   :  { %v537_v25 = vmax.f32 %v477_v22, 0.0 }
 0x208   :  { %v723_v27 = vrot.slane %v537_v25, 2  ;;  %v1221_v30 = vsel %vm894_vm3, %v537_v25, -inf  ;;  %v724_v32 = vrot.slane %v537_v25, 4 }
 0x209   :  { %v1222_v31 = vmax.f32 %v1220_v26, %v1221_v30 }
 0x20a   :  { %v1223_v33 = vsel %vm894_vm3, %v723_v27, -inf }
 0x24d   :  { %v1488_v41 = vpop.permute.xlu0 %1487 }
 0x24e   :  { %v1490_v35 = vmul.f32 %v1488_v41, %v1482_v34  ;;  %v1224_v41 = vmax.f32 %v1222_v31, %v1223_v33 }
 0x250   :  { %1492 = vrot.lane.b32.xlu0 %v1490_v35, %s3628_s29  ;;  %v1225_v35 = vsel %vm894_vm3, %v724_v32, -inf  ;;  %v4209_v32 = vld [vmem:[%s4543_s2 + $0x18] sm:$0xff] }
 0x251   :  { %v1226_v36 = vmax.f32 %v1224_v41, %v1225_v35  ;;  %v4216_v35 = vld [vmem:[%s4543_s2 + $0x10] sm:$0xff] }
 0x2c2   :  { %v1493_v40 = vpop.permute.xlu0 %1492 }
 0x2c3   :  { %v4148_v28 = vadd.f32 %v1493_v40, %v1485_v38  ;;  %v479_v38 = vpop.f32.mrf.mxu3 }
 0x2c4   :  { %v480_v40 = vadd.f32 %v4080_v12, %v479_v38  ;;  %v4222_v38 = vld [vmem:[%s4543_s2 + $0x8] sm:$0xff] }
 0x2c5   :  { %3454 = vtanh.f32 %v4148_v28 }
 0x2cb   :  { %v3455_v19 = vpop.eup %3454  ;;  %v481_v48 = vpop.f32.mrf.mxu3 }
 0x2cc   :  { %1498 = vrot.lane.b32.xlu1 %v3455_v19, %s3627_s0  ;;  %v538_v19 = vmax.f32 %v480_v40, 0.0  ;;  %v482_v50 = vadd.f32 %v4080_v12, %v481_v48 }
 0x2ce   :  { %v726_v47 = vrot.slane %v538_v19, 2  ;;  %v727_v6 = vrot.slane %v538_v19, 4  ;;  %v728_v3 = vrot.slane %v538_v19, 6  ;;  %v1229_v42 = vsel %vm894_vm3, %v538_v19, -inf }
 0x2cf   :  { %v539_v52 = vmax.f32 %v482_v50, 0.0 }
 0x2d0   :  { %v1231_v44 = vsel %vm894_vm3, %v726_v47, -inf  ;;  %v1233_v45 = vsel %vm894_vm3, %v727_v6, -inf  ;;  %v1235_v49 = vsel %vm894_vm3, %v728_v3, -inf  ;;  %v4229_v6 = vld [vmem:[%s4543_s2] sm:$0xff] }
 0x2d1   :  { %v729_v53 = vrot.slane %v539_v52, 2  ;;  %v730_v29 = vrot.slane %v539_v52, 4  ;;  %v731_v55 = vrot.slane %v539_v52, 6  ;;  %v1237_v56 = vsel %vm894_vm3, %v539_v52, -inf }
 0x2d3   :  { %v1240_v57 = vsel %vm894_vm3, %v730_v29, -inf  ;;  %v1242_v61 = vsel %vm894_vm3, %v731_v55, -inf }
 0x33e   :  { %v1499_v58 = vpop.permute.xlu1 %1498 }
 0x33f   :  { %v1501_v63 = vmul.f32 %v1499_v58, %v1482_v34  ;;  %v725_v34 = vrot.slane %v537_v25, 6  ;;  %v1238_v58 = vsel %vm894_vm3, %v729_v53, -inf }
 0x340   :  { %v1239_v59 = vmax.f32 %v1237_v56, %v1238_v58 }
 0x341   :  { %1505 = vrot.lane.b32.xlu1 %v1501_v63, %s3628_s29  ;;  %v1227_v37 = vsel %vm894_vm3, %v725_v34, -inf  ;;  %v484_v63 = vpop.f32.mrf.mxu3 }
 0x342   :  { %v1228_v60 = vmax.f32 %v1226_v36, %v1227_v37  ;;  %v1241_v62 = vmax.f32 %v1239_v59, %v1240_v57  ;;  %v485_v0 = vadd.f32 %v4080_v12, %v484_v63 }
 0x344   :  { %v1230_v43 = vmax.f32 %v1228_v60, %v1229_v42  ;;  %v1243_v16 = vmax.f32 %v1241_v62, %v1242_v61  ;;  %v540_v1 = vmax.f32 %v485_v0, 0.0  ;;  %v1503_v0 = vld [vmem:[#allocation2 + $0x2] sm:$0x3] }
 0x346   :  { %v1232_v46 = vmax.f32 %v1230_v43, %v1231_v44  ;;  %v732_v2 = vrot.slane %v540_v1, 2  ;;  %v733_v4 = vrot.slane %v540_v1, 4  ;;  %v734_v5 = vrot.slane %v540_v1, 6 }
 0x347   :  { %v1244_v7 = vsel %vm894_vm3, %v540_v1, -inf }
 0x348   :  { %v1234_v51 = vmax.f32 %v1232_v46, %v1233_v45  ;;  %v1245_v8 = vmax.f32 %v1243_v16, %v1244_v7  ;;  %v1246_v9 = vsel %vm894_vm3, %v732_v2, -inf  ;;  %v1248_v10 = vsel %vm894_vm3, %v733_v4, -inf }
 0x349   :  { %v486_v13 = vpop.f32.mrf.mxu3  ;;  %v1250_v14 = vsel %vm894_vm3, %v734_v5, -inf }
 0x34a   :  { %v1236_v39 = vmax.f32 %v1234_v51, %v1235_v49  ;;  %v1247_v11 = vmax.f32 %v1245_v8, %v1246_v9  ;;  %v487_v15 = vadd.f32 %v4080_v12, %v486_v13 }
 0x34c   :  { %1323 = vst [vmem:[#allocation1 + $0x1] ss:$4 sm:$0xff] %v1236_v39  ;;  %v1249_v17 = vmax.f32 %v1247_v11, %v1248_v10  ;;  %v541_v18 = vmax.f32 %v487_v15, 0.0 }
 0x34e   :  { %v1251_v20 = vmax.f32 %v1249_v17, %v1250_v14  ;;  %v735_v22 = vrot.slane %v541_v18, 2  ;;  %v736_v23 = vrot.slane %v541_v18, 4  ;;  %v737_v24 = vrot.slane %v541_v18, 6 }
 0x34f   :  { %v1252_v25 = vsel %vm894_vm3, %v541_v18, -inf }
 0x350   :  { %v1253_v26 = vmax.f32 %v1251_v20, %v1252_v25  ;;  %v1254_v27 = vsel %vm894_vm3, %v735_v22, -inf  ;;  %v1256_v30 = vsel %vm894_vm3, %v736_v23, -inf  ;;  %v1257_v31 = vsel %vm894_vm3, %v737_v24, -inf }
 0x351   :  { %v489_v41 = vpop.f32.mrf.mxu3  ;;  %v1258_v36 = vmax.f32 %v1256_v30, %v1257_v31 }
 0x352   :  { %v1255_v33 = vmax.f32 %v1253_v26, %v1254_v27  ;;  %v490_v34 = vadd.f32 %v4080_v12, %v489_v41 }
 0x354   :  { %1324 = vst [vmem:[#allocation1 + $0x2] ss:$4 sm:$0xff] %v1255_v33  ;;  %v542_v37 = vmax.f32 %v490_v34, 0.0 }
 0x356   :  { %v738_v40 = vrot.slane %v542_v37, 2  ;;  %v739_v60 = vrot.slane %v542_v37, 4  ;;  %v740_v19 = vrot.slane %v542_v37, 6  ;;  %v1259_v47 = vsel %vm894_vm3, %v542_v37, -inf }
 0x357   :  { %v1260_v3 = vmax.f32 %v1258_v36, %v1259_v47 }
 0x358   :  { %v1261_v42 = vsel %vm894_vm3, %v738_v40, -inf  ;;  %v1263_v43 = vsel %vm894_vm3, %v739_v60, -inf  ;;  %v1265_v46 = vsel %vm894_vm3, %v740_v19, -inf }
 0x359   :  { %v1262_v44 = vmax.f32 %v1260_v3, %v1261_v42  ;;  %v491_v45 = vpop.f32.mrf.mxu3 }
 0x35a   :  { %v492_v48 = vadd.f32 %v4080_v12, %v491_v45 }
 0x35b   :  { %v1264_v49 = vmax.f32 %v1262_v44, %v1263_v43 }
 0x35c   :  { %v543_v50 = vmax.f32 %v492_v48, 0.0 }
 0x35d   :  { %v1266_v51 = vmax.f32 %v1264_v49, %v1265_v46 }
 0x35e   :  { %v741_v52 = vrot.slane %v543_v50, 2  ;;  %v742_v39 = vrot.slane %v543_v50, 4  ;;  %v743_v53 = vrot.slane %v543_v50, 6  ;;  %v1267_v29 = vsel %vm894_vm3, %v543_v50, -inf }
 0x35f   :  { %v1268_v55 = vmax.f32 %v1266_v51, %v1267_v29 }
 0x360   :  { %v1269_v56 = vsel %vm894_vm3, %v741_v52, -inf  ;;  %v1271_v58 = vsel %vm894_vm3, %v742_v39, -inf  ;;  %v1273_v59 = vsel %vm894_vm3, %v743_v53, -inf }
 0x361   :  { %v1270_v57 = vmax.f32 %v1268_v55, %v1269_v56 }
 0x363   :  { %v1272_v61 = vmax.f32 %v1270_v57, %v1271_v58 }
 0x365   :  { %v4240_v62 = vmax.f32 %v1272_v61, %v1273_v59 }
 0x367   :  { %1325 = vst [vmem:[#allocation1 + $0x3] ss:$4 sm:$0xff] %v4240_v62 }
 0x36e   :  { %v1326_v12 = vld.sshfl [vmem:[#allocation1] sm:$0xff pattern:$0x73625140] }
 0x36f   :  { %v1334_v63 = vpack.c.bf16 %v1326_v12, %v1326_v12 }
 0x371   :  { %3262 = vmatmul.msk.bf16.gmra.mxu1 %vm1347_vm4, %v1334_v63  ;;  %v1633_v63 = vld [vmem:[#allocation2 + $0x6] sm:$0x3] }
 0x3b3   :  { %v1506_v21 = vpop.permute.xlu1 %1505 }
 0x3b4   :  { %3264 = vmatmul.msk.f32.vlgmr.msrb.gmra.mxu3 %vm1440_vm9, %v1506_v21 }
 0x3b5   :  { %1781 = vmatpush.msrb.mxu3 %v4209_v32 }
 0x3b7   :  { %1782 = vmatpush.msrb.mxu3 %v4216_v35 }
 0x3b9   :  { %1783 = vmatpush.msrb.mxu3 %v4222_v38 }
 0x3bb   :  { %1784 = vmatpush.msrb.mxu3 %v4229_v6 }
 0x3ee   :  { %v1376_v4 = vpop.f32.mrf.mxu1 }
 0x3ef   :  { %v1377_v5 = vadd.f32 %v4128_v54, %v1376_v4 }
 0x3f1   :  { %v1397_v7 = vrot.slane %v1377_v5, 2  ;;  %v1398_v8 = vrot.slane %v1377_v5, 4  ;;  %v1399_v9 = vrot.slane %v1377_v5, 6  ;;  %1431 = vst [vmem:[#allocation2 + $0x20] sm:$0x3] %v1377_v5 }
 0x3f3   :  { %1432 = vst [vmem:[#allocation2 + $0x22] sm:$0x3] %v1397_v7 }
 0x3f4   :  { %1433 = vst [vmem:[#allocation2 + $0x24] sm:$0x3] %v1398_v8 }
 0x3f5   :  { %1434 = vst [vmem:[#allocation2 + $0x26] sm:$0x3] %v1399_v9 }
 0x3f6   :  { %v1378_v10 = vpop.f32.mrf.mxu1 }
 0x437   :  { %v1526_v16 = vpop.f32.mrf.mxu3 }
 0x438   :  { %v1529_v1 = vadd.f32 %v1526_v16, %v1503_v0 }
 0x43a   :  { %3456 = vtanh.f32 %v1529_v1  ;;  %v3265_v11 = vmul.f32 -1.442695, %v1529_v1 }
 0x43c   :  { %3458 = vpow2.f32 %v3265_v11 }
 0x440   :  { %v3457_v2 = vpop.eup %3456 }
 0x441   :  { %1552 = vrot.lane.b32.xlu2 %v3457_v2, %s3627_s0 }
 0x442   :  { %v3459_v13 = vpop.eup %3458 }
 0x443   :  { %v1533_v14 = vadd.f32 1.0, %v3459_v13 }
 0x445   :  { %3460 = vrcp.f32 %v1533_v14  ;;  %v1545_v54 = vand.u32 2147483648, %v1533_v14  ;;  %vm1539_vm11 = vweird.f32 %v1533_v14  ;;  %v1543_v22 = vand.u32 2147483647, %v1533_v14 }
 0x447   :  { %v1546_v24 = vor.u32 1.1754944e-38, %v1545_v54  ;;  %vm1544_vm13 = vcmp.eq.f32.partialorder %v1543_v22, 8.507059e+37 }
 0x44b   :  { %v3461_v15 = vpop.eup %3460 }
 0x44c   :  { %v1535_v17 = vmul.f32 %v3461_v15, %v1533_v14  ;;  %vm1540_vm10 = vweird.f32 %v3461_v15 }
 0x44d   :  { %vm1541_vm12 = vmor %vm1539_vm11, %vm1540_vm10 }
 0x44e   :  { %v1536_v18 = vsub.f32 1.0, %v1535_v17 }
 0x450   :  { %v1537_v20 = vmul.f32 %v3461_v15, %v1536_v18 }
 0x452   :  { %v1538_v21 = vadd.f32 %v3461_v15, %v1537_v20 }
 0x454   :  { %v1542_v23 = vsel %vm1541_vm12, %v3461_v15, %v1538_v21 }
 0x455   :  { %v1547_v26 = vsel %vm1544_vm13, %v1546_v24, %v1542_v23 }
 0x456   :  { %v1550_v30 = vmul.f32 %v1547_v26, %v4148_v28  ;;  %v1568_v28 = vld [vmem:[#allocation2 + $0x4] sm:$0x3] }
 0x49b   :  { %v1553_v25 = vpop.permute.xlu2 %1552 }
 0x49c   :  { %v1555_v27 = vmul.f32 %v1553_v25, %v1547_v26 }
 0x49e   :  { %1557 = vrot.lane.b32.xlu2 %v1555_v27, %s3628_s29 }
 0x4f8   :  { %v1558_v31 = vpop.permute.xlu2 %1557 }
 0x4f9   :  { %v1560_v33 = vadd.f32 %v1558_v31, %v1550_v30  ;;  %v1698_v30 = vld [vmem:[#allocation2 + $0x8] sm:$0x3] }
 0x4fb   :  { %3462 = vtanh.f32 %v1560_v33 }
 0x501   :  { %v3463_v41 = vpop.eup %3462 }
 0x502   :  { %1563 = vrot.lane.b32.xlu0 %v3463_v41, %s3627_s0 }
 0x574   :  { %v1564_v34 = vpop.permute.xlu0 %1563 }
 0x575   :  { %v1566_v36 = vmul.f32 %v1564_v34, %v1547_v26 }
 0x577   :  { %1570 = vrot.lane.b32.xlu1 %v1566_v36, %s3628_s29 }
 0x5e9   :  { %v1571_v37 = vpop.permute.xlu1 %1570 }
 0x5ea   :  { %3266 = vmatmul.msk.f32.vlgmr.msra.gmra.mxu2 %vm1440_vm9, %v1571_v37 }
 0x5eb   :  { %1846 = vmatpush.msra.mxu2 %v4209_v32 }
 0x5ed   :  { %1847 = vmatpush.msra.mxu2 %v4216_v35 }
 0x5ef   :  { %1848 = vmatpush.msra.mxu2 %v4222_v38 }
 0x5f1   :  { %1849 = vmatpush.msra.mxu2 %v4229_v6 }
 0x66d   :  { %v1591_v40 = vpop.f32.mrf.mxu2 }
 0x66e   :  { %v1594_v60 = vadd.f32 %v1591_v40, %v1568_v28 }
 0x670   :  { %3464 = vtanh.f32 %v1594_v60  ;;  %v3267_v47 = vmul.f32 -1.442695, %v1594_v60 }
 0x672   :  { %3466 = vpow2.f32 %v3267_v47 }
 0x676   :  { %v3465_v19 = vpop.eup %3464 }
 0x677   :  { %1617 = vrot.lane.b32.xlu2 %v3465_v19, %s3627_s0 }
 0x678   :  { %v3467_v3 = vpop.eup %3466 }
 0x679   :  { %v1598_v42 = vadd.f32 1.0, %v3467_v3 }
 0x67b   :  { %3468 = vrcp.f32 %v1598_v42  ;;  %v1610_v49 = vand.u32 2147483648, %v1598_v42  ;;  %vm1604_vm15 = vweird.f32 %v1598_v42  ;;  %v1608_v50 = vand.u32 2147483647, %v1598_v42 }
 0x67d   :  { %v1611_v52 = vor.u32 1.1754944e-38, %v1610_v49  ;;  %vm1609_vm1 = vcmp.eq.f32.partialorder %v1608_v50, 8.507059e+37 }
 0x681   :  { %v3469_v43 = vpop.eup %3468 }
 0x682   :  { %v1600_v44 = vmul.f32 %v3469_v43, %v1598_v42  ;;  %vm1605_vm14 = vweird.f32 %v3469_v43 }
 0x683   :  { %vm1606_vm0 = vmor %vm1604_vm15, %vm1605_vm14 }
 0x684   :  { %v1601_v45 = vsub.f32 1.0, %v1600_v44 }
 0x686   :  { %v1602_v46 = vmul.f32 %v3469_v43, %v1601_v45 }
 0x688   :  { %v1603_v48 = vadd.f32 %v3469_v43, %v1602_v46 }
 0x68a   :  { %v1607_v51 = vsel %vm1606_vm0, %v3469_v43, %v1603_v48 }
 0x68b   :  { %v1612_v53 = vsel %vm1609_vm1, %v1611_v52, %v1607_v51 }
 0x68c   :  { %v1615_v55 = vmul.f32 %v1612_v53, %v1560_v33 }
 0x6d1   :  { %v1618_v39 = vpop.permute.xlu2 %1617 }
 0x6d2   :  { %v1620_v29 = vmul.f32 %v1618_v39, %v1612_v53 }
 0x6d4   :  { %1622 = vrot.lane.b32.xlu0 %v1620_v29, %s3628_s29 }
 0x746   :  { %v1623_v56 = vpop.permute.xlu0 %1622 }
 0x747   :  { %v1625_v58 = vadd.f32 %v1623_v56, %v1615_v55  ;;  %v1763_v55 = vld [vmem:[#allocation2 + $0xa] sm:$0x3] }
 0x749   :  { %3470 = vtanh.f32 %v1625_v58 }
 0x74f   :  { %v3471_v57 = vpop.eup %3470 }
 0x750   :  { %1628 = vrot.lane.b32.xlu1 %v3471_v57, %s3627_s0 }
 0x7c2   :  { %v1629_v59 = vpop.permute.xlu1 %1628 }
 0x7c3   :  { %v1631_v61 = vmul.f32 %v1629_v59, %v1612_v53 }
 0x7c5   :  { %1635 = vrot.lane.b32.xlu2 %v1631_v61, %s3628_s29 }
 0x81f   :  { %v1636_v12 = vpop.permute.xlu2 %1635 }
 0x820   :  { %3268 = vmatmul.msk.f32.vlgmr.msra.gmra.mxu3 %vm1440_vm9, %v1636_v12 }
 0x821   :  { %1911 = vmatpush.msra.mxu3 %v4209_v32 }
 0x823   :  { %1912 = vmatpush.msra.mxu3 %v4216_v35 }
 0x825   :  { %1913 = vmatpush.msra.mxu3 %v4222_v38 }
 0x827   :  { %1914 = vmatpush.msra.mxu3 %v4229_v6 }
 0x8a3   :  { %v1656_v0 = vpop.f32.mrf.mxu3 }
 0x8a4   :  { %v1659_v16 = vadd.f32 %v1656_v0, %v1633_v63 }
 0x8a6   :  { %3472 = vtanh.f32 %v1659_v16  ;;  %v3269_v2 = vmul.f32 -1.442695, %v1659_v16 }
 0x8a8   :  { %3474 = vpow2.f32 %v3269_v2 }
 0x8ac   :  { %v3473_v1 = vpop.eup %3472 }
 0x8ad   :  { %1682 = vrot.lane.b32.xlu0 %v3473_v1, %s3627_s0 }
 0x8ae   :  { %v3475_v4 = vpop.eup %3474 }
 0x8af   :  { %v1663_v5 = vadd.f32 1.0, %v3475_v4 }
 0x8b1   :  { %3476 = vrcp.f32 %v1663_v5  ;;  %v1675_v13 = vand.u32 2147483648, %v1663_v5  ;;  %vm1669_vm3 = vweird.f32 %v1663_v5  ;;  %v1673_v14 = vand.u32 2147483647, %v1663_v5 }
 0x8b3   :  { %v1676_v17 = vor.u32 1.1754944e-38, %v1675_v13  ;;  %vm1674_vm6 = vcmp.eq.f32.partialorder %v1673_v14, 8.507059e+37 }
 0x8b7   :  { %v3477_v7 = vpop.eup %3476 }
 0x8b8   :  { %v1665_v8 = vmul.f32 %v3477_v7, %v1663_v5  ;;  %vm1670_vm2 = vweird.f32 %v3477_v7 }
 0x8b9   :  { %vm1671_vm5 = vmor %vm1669_vm3, %vm1670_vm2 }
 0x8ba   :  { %v1666_v9 = vsub.f32 1.0, %v1665_v8 }
 0x8bc   :  { %v1667_v10 = vmul.f32 %v3477_v7, %v1666_v9 }
 0x8be   :  { %v1668_v11 = vadd.f32 %v3477_v7, %v1667_v10 }
 0x8c0   :  { %v1672_v15 = vsel %vm1671_vm5, %v3477_v7, %v1668_v11 }
 0x8c1   :  { %v1677_v20 = vsel %vm1674_vm6, %v1676_v17, %v1672_v15 }
 0x8c2   :  { %v1680_v54 = vmul.f32 %v1677_v20, %v1625_v58 }
 0x91f   :  { %v1683_v18 = vpop.permute.xlu0 %1682 }
 0x920   :  { %v1685_v21 = vmul.f32 %v1683_v18, %v1677_v20 }
 0x922   :  { %1687 = vrot.lane.b32.xlu1 %v1685_v21, %s3628_s29 }
 0x994   :  { %v1688_v22 = vpop.permute.xlu1 %1687 }
 0x995   :  { %v1690_v23 = vadd.f32 %v1688_v22, %v1680_v54  ;;  %v1828_v54 = vld [vmem:[#allocation2 + $0xc] sm:$0x3] }
 0x997   :  { %3478 = vtanh.f32 %v1690_v23 }
 0x99d   :  { %v3479_v24 = vpop.eup %3478 }
 0x99e   :  { %1693 = vrot.lane.b32.xlu2 %v3479_v24, %s3627_s0 }
 0x9f8   :  { %v1694_v25 = vpop.permute.xlu2 %1693 }
 0x9f9   :  { %v1696_v26 = vmul.f32 %v1694_v25, %v1677_v20 }
 0x9fb   :  { %1700 = vrot.lane.b32.xlu0 %v1696_v26, %s3628_s29 }
 0xa6d   :  { %v1701_v27 = vpop.permute.xlu0 %1700 }
 0xa6e   :  { %3270 = vmatmul.msk.f32.vlgmr.msrb.gmra.mxu2 %vm1440_vm9, %v1701_v27 }
 0xa6f   :  { %1976 = vmatpush.msrb.mxu2 %v4209_v32 }
 0xa71   :  { %1977 = vmatpush.msrb.mxu2 %v4216_v35 }
 0xa73   :  { %1978 = vmatpush.msrb.mxu2 %v4222_v38 }
 0xa75   :  { %1979 = vmatpush.msrb.mxu2 %v4229_v6 }
 0xaf1   :  { %v1721_v31 = vpop.f32.mrf.mxu2 }
 0xaf2   :  { %v1724_v33 = vadd.f32 %v1721_v31, %v1698_v30 }
 0xaf4   :  { %3480 = vtanh.f32 %v1724_v33  ;;  %v3271_v34 = vmul.f32 -1.442695, %v1724_v33 }
 0xaf6   :  { %3482 = vpow2.f32 %v3271_v34 }
 0xafa   :  { %v3481_v41 = vpop.eup %3480 }
 0xafb   :  { %1747 = vrot.lane.b32.xlu1 %v3481_v41, %s3627_s0 }
 0xafc   :  { %v3483_v36 = vpop.eup %3482 }
 0xafd   :  { %v1728_v37 = vadd.f32 1.0, %v3483_v36 }
 0xaff   :  { %3484 = vrcp.f32 %v1728_v37  ;;  %v1740_v3 = vand.u32 2147483648, %v1728_v37  ;;  %vm1734_vm8 = vweird.f32 %v1728_v37  ;;  %v1738_v42 = vand.u32 2147483647, %v1728_v37 }
 0xb01   :  { %v1741_v44 = vor.u32 1.1754944e-38, %v1740_v3  ;;  %vm1739_vm11 = vcmp.eq.f32.partialorder %v1738_v42, 8.507059e+37 }
 0xb05   :  { %v3485_v28 = vpop.eup %3484 }
 0xb06   :  { %v1730_v40 = vmul.f32 %v3485_v28, %v1728_v37  ;;  %vm1735_vm7 = vweird.f32 %v3485_v28 }
 0xb07   :  { %vm1736_vm10 = vmor %vm1734_vm8, %vm1735_vm7 }
 0xb08   :  { %v1731_v60 = vsub.f32 1.0, %v1730_v40 }
 0xb0a   :  { %v1732_v19 = vmul.f32 %v3485_v28, %v1731_v60 }
 0xb0c   :  { %v1733_v47 = vadd.f32 %v3485_v28, %v1732_v19 }
 0xb0e   :  { %v1737_v43 = vsel %vm1736_vm10, %v3485_v28, %v1733_v47 }
 0xb0f   :  { %v1742_v46 = vsel %vm1739_vm11, %v1741_v44, %v1737_v43 }
 0xb10   :  { %v1745_v49 = vmul.f32 %v1742_v46, %v1690_v23 }
 0xb6d   :  { %v1748_v45 = vpop.permute.xlu1 %1747 }
 0xb6e   :  { %v1750_v48 = vmul.f32 %v1748_v45, %v1742_v46 }
 0xb70   :  { %1752 = vrot.lane.b32.xlu2 %v1750_v48, %s3628_s29 }
 0xbca   :  { %v1753_v50 = vpop.permute.xlu2 %1752 }
 0xbcb   :  { %v1755_v51 = vadd.f32 %v1753_v50, %v1745_v49  ;;  %v1893_v49 = vld [vmem:[#allocation2 + $0xe] sm:$0x3] }
 0xbcd   :  { %3486 = vtanh.f32 %v1755_v51 }
 0xbd3   :  { %v3487_v52 = vpop.eup %3486 }
 0xbd4   :  { %1758 = vrot.lane.b32.xlu0 %v3487_v52, %s3627_s0 }
 0xc46   :  { %v1759_v39 = vpop.permute.xlu0 %1758 }
 0xc47   :  { %v1761_v53 = vmul.f32 %v1759_v39, %v1742_v46 }
 0xc49   :  { %1765 = vrot.lane.b32.xlu1 %v1761_v53, %s3628_s29 }
 0xcbb   :  { %v1766_v29 = vpop.permute.xlu1 %1765 }
 0xcbc   :  { %3272 = vmatmul.msk.f32.vlgmr.msrb.gmra.mxu3 %vm1440_vm9, %v1766_v29 }
 0xcbd   :  { %2041 = vmatpush.msrb.mxu3 %v4209_v32 }
 0xcbf   :  { %2042 = vmatpush.msrb.mxu3 %v4216_v35 }
 0xcc1   :  { %2043 = vmatpush.msrb.mxu3 %v4222_v38 }
 0xcc3   :  { %2044 = vmatpush.msrb.mxu3 %v4229_v6 }
 0xd3f   :  { %v1786_v56 = vpop.f32.mrf.mxu3 }
 0xd40   :  { %v1789_v58 = vadd.f32 %v1786_v56, %v1763_v55 }
 0xd42   :  { %3488 = vtanh.f32 %v1789_v58  ;;  %v3273_v59 = vmul.f32 -1.442695, %v1789_v58 }
 0xd44   :  { %3490 = vpow2.f32 %v3273_v59 }
 0xd48   :  { %v3489_v57 = vpop.eup %3488 }
 0xd49   :  { %1812 = vrot.lane.b32.xlu2 %v3489_v57, %s3627_s0 }
 0xd4a   :  { %v3491_v61 = vpop.eup %3490 }
 0xd4b   :  { %v1793_v12 = vadd.f32 1.0, %v3491_v61 }
 0xd4d   :  { %3492 = vrcp.f32 %v1793_v12  ;;  %v1805_v4 = vand.u32 2147483648, %v1793_v12  ;;  %vm1799_vm13 = vweird.f32 %v1793_v12  ;;  %v1803_v5 = vand.u32 2147483647, %v1793_v12 }
 0xd4f   :  { %v1806_v8 = vor.u32 1.1754944e-38, %v1805_v4  ;;  %vm1804_vm15 = vcmp.eq.f32.partialorder %v1803_v5, 8.507059e+37 }
 0xd53   :  { %v3493_v63 = vpop.eup %3492 }
 0xd54   :  { %v1795_v0 = vmul.f32 %v3493_v63, %v1793_v12  ;;  %vm1800_vm12 = vweird.f32 %v3493_v63 }
 0xd55   :  { %vm1801_vm14 = vmor %vm1799_vm13, %vm1800_vm12 }
 0xd56   :  { %v1796_v16 = vsub.f32 1.0, %v1795_v0 }
 0xd58   :  { %v1797_v1 = vmul.f32 %v3493_v63, %v1796_v16 }
 0xd5a   :  { %v1798_v2 = vadd.f32 %v3493_v63, %v1797_v1 }
 0xd5c   :  { %v1802_v7 = vsel %vm1801_vm14, %v3493_v63, %v1798_v2 }
 0xd5d   :  { %v1807_v10 = vsel %vm1804_vm15, %v1806_v8, %v1802_v7 }
 0xd5e   :  { %v1810_v13 = vmul.f32 %v1807_v10, %v1755_v51 }
 0xda3   :  { %v1813_v9 = vpop.permute.xlu2 %1812 }
 0xda4   :  { %v1815_v11 = vmul.f32 %v1813_v9, %v1807_v10 }
 0xda6   :  { %1817 = vrot.lane.b32.xlu0 %v1815_v11, %s3628_s29 }
 0xe18   :  { %v1818_v14 = vpop.permute.xlu0 %1817 }
 0xe19   :  { %v1820_v15 = vadd.f32 %v1818_v14, %v1810_v13  ;;  %v1958_v13 = vld [vmem:[#allocation2 + $0x10] sm:$0x3] }
 0xe1b   :  { %3494 = vtanh.f32 %v1820_v15 }
 0xe21   :  { %v3495_v17 = vpop.eup %3494 }
 0xe22   :  { %1823 = vrot.lane.b32.xlu1 %v3495_v17, %s3627_s0 }
 0xe94   :  { %v1824_v18 = vpop.permute.xlu1 %1823 }
 0xe95   :  { %v1826_v20 = vmul.f32 %v1824_v18, %v1807_v10 }
 0xe97   :  { %1830 = vrot.lane.b32.xlu2 %v1826_v20, %s3628_s29 }
 0xef1   :  { %v1831_v21 = vpop.permute.xlu2 %1830 }
 0xef2   :  { %3274 = vmatmul.msk.f32.vlgmr.msra.gmra.mxu2 %vm1440_vm9, %v1831_v21 }
 0xef3   :  { %2106 = vmatpush.msra.mxu2 %v4209_v32 }
 0xef5   :  { %2107 = vmatpush.msra.mxu2 %v4216_v35 }
 0xef7   :  { %2108 = vmatpush.msra.mxu2 %v4222_v38 }
 0xef9   :  { %2109 = vmatpush.msra.mxu2 %v4229_v6 }
 0xf75   :  { %v1851_v22 = vpop.f32.mrf.mxu2 }
 0xf76   :  { %v1854_v23 = vadd.f32 %v1851_v22, %v1828_v54 }
 0xf78   :  { %3496 = vtanh.f32 %v1854_v23  ;;  %v3275_v25 = vmul.f32 -1.442695, %v1854_v23 }
 0xf7a   :  { %3498 = vpow2.f32 %v3275_v25 }
 0xf7e   :  { %v3497_v24 = vpop.eup %3496 }
 0xf7f   :  { %1877 = vrot.lane.b32.xlu0 %v3497_v24, %s3627_s0 }
 0xf80   :  { %v3499_v26 = vpop.eup %3498 }
 0xf81   :  { %v1858_v27 = vadd.f32 1.0, %v3499_v26 }
 0xf83   :  { %3500 = vrcp.f32 %v1858_v27  ;;  %v1870_v36 = vand.u32 2147483648, %v1858_v27  ;;  %vm1864_vm1 = vweird.f32 %v1858_v27  ;;  %v1868_v37 = vand.u32 2147483647, %v1858_v27 }
 0xf85   :  { %v1871_v40 = vor.u32 1.1754944e-38, %v1870_v36  ;;  %vm1869_vm3 = vcmp.eq.f32.partialorder %v1868_v37, 8.507059e+37 }
 0xf89   :  { %v3501_v30 = vpop.eup %3500 }
 0xf8a   :  { %v1860_v31 = vmul.f32 %v3501_v30, %v1858_v27  ;;  %vm1865_vm0 = vweird.f32 %v3501_v30 }
 0xf8b   :  { %vm1866_vm2 = vmor %vm1864_vm1, %vm1865_vm0 }
 0xf8c   :  { %v1861_v33 = vsub.f32 1.0, %v1860_v31 }
 0xf8e   :  { %v1862_v41 = vmul.f32 %v3501_v30, %v1861_v33 }
 0xf90   :  { %v1863_v34 = vadd.f32 %v3501_v30, %v1862_v41 }
 0xf92   :  { %v1867_v28 = vsel %vm1866_vm2, %v3501_v30, %v1863_v34 }
 0xf93   :  { %v1872_v19 = vsel %vm1869_vm3, %v1871_v40, %v1867_v28 }
 0xf94   :  { %v1875_v3 = vmul.f32 %v1872_v19, %v1820_v15 }
 0xff1   :  { %v1878_v60 = vpop.permute.xlu0 %1877 }
 0xff2   :  { %v1880_v47 = vmul.f32 %v1878_v60, %v1872_v19 }
 0xff4   :  { %1882 = vrot.lane.b32.xlu1 %v1880_v47, %s3628_s29 }
0x1066   :  { %v1883_v42 = vpop.permute.xlu1 %1882 }
0x1067   :  { %v1885_v43 = vadd.f32 %v1883_v42, %v1875_v3  ;;  %v2023_v3 = vld [vmem:[#allocation2 + $0x12] sm:$0x3] }
0x1069   :  { %3502 = vtanh.f32 %v1885_v43 }
0x106f   :  { %v3503_v44 = vpop.eup %3502 }
0x1070   :  { %1888 = vrot.lane.b32.xlu2 %v3503_v44, %s3627_s0 }
0x10ca   :  { %v1889_v45 = vpop.permute.xlu2 %1888 }
0x10cb   :  { %v1891_v46 = vmul.f32 %v1889_v45, %v1872_v19 }
0x10cd   :  { %1895 = vrot.lane.b32.xlu0 %v1891_v46, %s3628_s29 }
0x113f   :  { %v1896_v48 = vpop.permute.xlu0 %1895 }
0x1140   :  { %3276 = vmatmul.msk.f32.vlgmr.msra.gmra.mxu3 %vm1440_vm9, %v1896_v48 }
0x1141   :  { %2171 = vmatpush.msra.mxu3 %v4209_v32 }
0x1143   :  { %2172 = vmatpush.msra.mxu3 %v4216_v35 }
0x1145   :  { %2173 = vmatpush.msra.mxu3 %v4222_v38 }
0x1147   :  { %2174 = vmatpush.msra.mxu3 %v4229_v6 }
0x11c3   :  { %v1916_v50 = vpop.f32.mrf.mxu3 }
0x11c4   :  { %v1919_v51 = vadd.f32 %v1916_v50, %v1893_v49 }
0x11c6   :  { %3504 = vtanh.f32 %v1919_v51  ;;  %v3277_v39 = vmul.f32 -1.442695, %v1919_v51 }
0x11c8   :  { %3506 = vpow2.f32 %v3277_v39 }
0x11cc   :  { %v3505_v52 = vpop.eup %3504 }
0x11cd   :  { %1942 = vrot.lane.b32.xlu1 %v3505_v52, %s3627_s0 }
0x11ce   :  { %v3507_v53 = vpop.eup %3506 }
0x11cf   :  { %v1923_v29 = vadd.f32 1.0, %v3507_v53 }
0x11d1   :  { %3508 = vrcp.f32 %v1923_v29  ;;  %v1935_v61 = vand.u32 2147483648, %v1923_v29  ;;  %vm1929_vm6 = vweird.f32 %v1923_v29  ;;  %v1933_v12 = vand.u32 2147483647, %v1923_v29 }
0x11d3   :  { %v1936_v0 = vor.u32 1.1754944e-38, %v1935_v61  ;;  %vm1934_vm8 = vcmp.eq.f32.partialorder %v1933_v12, 8.507059e+37 }
0x11d7   :  { %v3509_v55 = vpop.eup %3508 }
0x11d8   :  { %v1925_v56 = vmul.f32 %v3509_v55, %v1923_v29  ;;  %vm1930_vm5 = vweird.f32 %v3509_v55 }
0x11d9   :  { %vm1931_vm7 = vmor %vm1929_vm6, %vm1930_vm5 }
0x11da   :  { %v1926_v58 = vsub.f32 1.0, %v1925_v56 }
0x11dc   :  { %v1927_v57 = vmul.f32 %v3509_v55, %v1926_v58 }
0x11de   :  { %v1928_v59 = vadd.f32 %v3509_v55, %v1927_v57 }
0x11e0   :  { %v1932_v63 = vsel %vm1931_vm7, %v3509_v55, %v1928_v59 }
0x11e1   :  { %v1937_v1 = vsel %vm1934_vm8, %v1936_v0, %v1932_v63 }
0x11e2   :  { %v1940_v4 = vmul.f32 %v1937_v1, %v1885_v43 }
0x123f   :  { %v1943_v16 = vpop.permute.xlu1 %1942 }
0x1240   :  { %v1945_v2 = vmul.f32 %v1943_v16, %v1937_v1 }
0x1242   :  { %1947 = vrot.lane.b32.xlu2 %v1945_v2, %s3628_s29 }
0x129c   :  { %v1948_v5 = vpop.permute.xlu2 %1947 }
0x129d   :  { %v1950_v7 = vadd.f32 %v1948_v5, %v1940_v4  ;;  %v2088_v4 = vld [vmem:[#allocation2 + $0x14] sm:$0x3] }
0x129f   :  { %3510 = vtanh.f32 %v1950_v7 }
0x12a5   :  { %v3511_v8 = vpop.eup %3510 }
0x12a6   :  { %1953 = vrot.lane.b32.xlu0 %v3511_v8, %s3627_s0 }
0x1318   :  { %v1954_v9 = vpop.permute.xlu0 %1953 }
0x1319   :  { %v1956_v10 = vmul.f32 %v1954_v9, %v1937_v1 }
0x131b   :  { %1960 = vrot.lane.b32.xlu1 %v1956_v10, %s3628_s29 }
0x138d   :  { %v1961_v11 = vpop.permute.xlu1 %1960 }
0x138e   :  { %3278 = vmatmul.msk.f32.vlgmr.msrb.gmra.mxu2 %vm1440_vm9, %v1961_v11 }
0x138f   :  { %2301 = vmatpush.msrb.mxu2 %v4209_v32 }
0x1391   :  { %2302 = vmatpush.msrb.mxu2 %v4216_v35 }
0x1393   :  { %2303 = vmatpush.msrb.mxu2 %v4222_v38 }
0x1395   :  { %2304 = vmatpush.msrb.mxu2 %v4229_v6 }
0x1411   :  { %v1981_v14 = vpop.f32.mrf.mxu2 }
0x1412   :  { %v1984_v15 = vadd.f32 %v1981_v14, %v1958_v13 }
0x1414   :  { %3512 = vtanh.f32 %v1984_v15  ;;  %v3279_v18 = vmul.f32 -1.442695, %v1984_v15 }
0x1416   :  { %3514 = vpow2.f32 %v3279_v18 }
0x141a   :  { %v3513_v17 = vpop.eup %3512 }
0x141b   :  { %2007 = vrot.lane.b32.xlu2 %v3513_v17, %s3627_s0 }
0x141c   :  { %v3515_v20 = vpop.eup %3514 }
0x141d   :  { %v1988_v21 = vadd.f32 1.0, %v3515_v20 }
0x141f   :  { %3516 = vrcp.f32 %v1988_v21  ;;  %v2000_v26 = vand.u32 2147483648, %v1988_v21  ;;  %vm1994_vm11 = vweird.f32 %v1988_v21  ;;  %v1998_v27 = vand.u32 2147483647, %v1988_v21 }
0x1421   :  { %v2001_v31 = vor.u32 1.1754944e-38, %v2000_v26  ;;  %vm1999_vm13 = vcmp.eq.f32.partialorder %v1998_v27, 8.507059e+37 }
0x1425   :  { %v3517_v54 = vpop.eup %3516 }
0x1426   :  { %v1990_v22 = vmul.f32 %v3517_v54, %v1988_v21  ;;  %vm1995_vm10 = vweird.f32 %v3517_v54 }
0x1427   :  { %vm1996_vm12 = vmor %vm1994_vm11, %vm1995_vm10 }
0x1428   :  { %v1991_v23 = vsub.f32 1.0, %v1990_v22 }
0x142a   :  { %v1992_v24 = vmul.f32 %v3517_v54, %v1991_v23 }
0x142c   :  { %v1993_v25 = vadd.f32 %v3517_v54, %v1992_v24 }
0x142e   :  { %v1997_v30 = vsel %vm1996_vm12, %v3517_v54, %v1993_v25 }
0x142f   :  { %v2002_v41 = vsel %vm1999_vm13, %v2001_v31, %v1997_v30 }
0x1430   :  { %v2005_v36 = vmul.f32 %v2002_v41, %v1950_v7 }
0x1475   :  { %v2008_v33 = vpop.permute.xlu2 %2007 }
0x1476   :  { %v2010_v34 = vmul.f32 %v2008_v33, %v2002_v41 }
0x1478   :  { %2012 = vrot.lane.b32.xlu0 %v2010_v34, %s3628_s29 }
0x14ea   :  { %v2013_v37 = vpop.permute.xlu0 %2012 }
0x14eb   :  { %v2015_v28 = vadd.f32 %v2013_v37, %v2005_v36  ;;  %v2153_v36 = vld [vmem:[#allocation2 + $0x16] sm:$0x3] }
0x14ed   :  { %3518 = vtanh.f32 %v2015_v28 }
0x14f3   :  { %v3519_v40 = vpop.eup %3518 }
0x14f4   :  { %2018 = vrot.lane.b32.xlu1 %v3519_v40, %s3627_s0 }
0x1566   :  { %v2019_v60 = vpop.permute.xlu1 %2018 }
0x1567   :  { %v2021_v19 = vmul.f32 %v2019_v60, %v2002_v41 }
0x1569   :  { %2025 = vrot.lane.b32.xlu2 %v2021_v19, %s3628_s29 }
0x15c3   :  { %v2026_v47 = vpop.permute.xlu2 %2025 }
0x15c4   :  { %3280 = vmatmul.msk.f32.vlgmr.msrb.gmra.mxu3 %vm1440_vm9, %v2026_v47 }
0x15c5   :  { %2366 = vmatpush.msrb.mxu3 %v4209_v32 }
0x15c7   :  { %2367 = vmatpush.msrb.mxu3 %v4216_v35 }
0x15c9   :  { %2368 = vmatpush.msrb.mxu3 %v4222_v38 }
0x15cb   :  { %2369 = vmatpush.msrb.mxu3 %v4229_v6 }
0x1647   :  { %v2046_v42 = vpop.f32.mrf.mxu3 }
0x1648   :  { %v2049_v43 = vadd.f32 %v2046_v42, %v2023_v3 }
0x164a   :  { %3520 = vtanh.f32 %v2049_v43  ;;  %v3281_v45 = vmul.f32 -1.442695, %v2049_v43 }
0x164c   :  { %3522 = vpow2.f32 %v3281_v45 }
0x1650   :  { %v3521_v44 = vpop.eup %3520 }
0x1651   :  { %2072 = vrot.lane.b32.xlu0 %v3521_v44, %s3627_s0 }
0x1652   :  { %v3523_v46 = vpop.eup %3522 }
0x1653   :  { %v2053_v48 = vadd.f32 1.0, %v3523_v46 }
0x1655   :  { %3524 = vrcp.f32 %v2053_v48  ;;  %v2065_v53 = vand.u32 2147483648, %v2053_v48  ;;  %vm2059_vm15 = vweird.f32 %v2053_v48  ;;  %v2063_v29 = vand.u32 2147483647, %v2053_v48 }
0x1657   :  { %v2066_v56 = vor.u32 1.1754944e-38, %v2065_v53  ;;  %vm2064_vm1 = vcmp.eq.f32.partialorder %v2063_v29, 8.507059e+37 }
0x165b   :  { %v3525_v49 = vpop.eup %3524 }
0x165c   :  { %v2055_v50 = vmul.f32 %v3525_v49, %v2053_v48  ;;  %vm2060_vm14 = vweird.f32 %v3525_v49 }
0x165d   :  { %vm2061_vm0 = vmor %vm2059_vm15, %vm2060_vm14 }
0x165e   :  { %v2056_v51 = vsub.f32 1.0, %v2055_v50 }
0x1660   :  { %v2057_v52 = vmul.f32 %v3525_v49, %v2056_v51 }
0x1662   :  { %v2058_v39 = vadd.f32 %v3525_v49, %v2057_v52 }
0x1664   :  { %v2062_v55 = vsel %vm2061_vm0, %v3525_v49, %v2058_v39 }
0x1665   :  { %v2067_v57 = vsel %vm2064_vm1, %v2066_v56, %v2062_v55 }
0x1666   :  { %v2070_v61 = vmul.f32 %v2067_v57, %v2015_v28 }
0x16c3   :  { %v2073_v58 = vpop.permute.xlu0 %2072 }
0x16c4   :  { %v2075_v59 = vmul.f32 %v2073_v58, %v2067_v57  ;;  %v3621_v58 = vld [vmem:[%s4543_s2 + $0x18] sm:$0xff] }
0x16c6   :  { %2077 = vrot.lane.b32.xlu1 %v2075_v59, %s3628_s29  ;;  %v3623_v59 = vld [vmem:[%s4543_s2 + $0x8] sm:$0xff] }
0x1738   :  { %v2078_v12 = vpop.permute.xlu1 %2077 }
0x1739   :  { %v2080_v63 = vadd.f32 %v2078_v12, %v2070_v61  ;;  %v2218_v61 = vld [vmem:[#allocation2 + $0x18] sm:$0x3] }
0x173b   :  { %3526 = vtanh.f32 %v2080_v63 }
0x1741   :  { %v3527_v0 = vpop.eup %3526 }
0x1742   :  { %2083 = vrot.lane.b32.xlu2 %v3527_v0, %s3627_s0 }
0x179c   :  { %v2084_v16 = vpop.permute.xlu2 %2083 }
0x179d   :  { %v2086_v1 = vmul.f32 %v2084_v16, %v2067_v57  ;;  %v3622_v57 = vld [vmem:[%s4543_s2 + $0x10] sm:$0xff] }
0x179f   :  { %2090 = vrot.lane.b32.xlu0 %v2086_v1, %s3628_s29 }
0x1811   :  { %v2091_v2 = vpop.permute.xlu0 %2090 }
0x1812   :  { %3282 = vmatmul.msk.f32.vlgmr.msra.gmra.mxu2 %vm1440_vm9, %v2091_v2 }
0x1813   :  { %2496 = vmatpush.msra.mxu2 %v4209_v32 }
0x1815   :  { %2497 = vmatpush.msra.mxu2 %v4216_v35 }
0x1817   :  { %2498 = vmatpush.msra.mxu2 %v4222_v38 }
0x1819   :  { %2499 = vmatpush.msra.mxu2 %v4229_v6 }
0x1895   :  { %v2111_v5 = vpop.f32.mrf.mxu2 }
0x1896   :  { %v2114_v7 = vadd.f32 %v2111_v5, %v2088_v4 }
0x1898   :  { %3528 = vtanh.f32 %v2114_v7  ;;  %v3283_v9 = vmul.f32 -1.442695, %v2114_v7 }
0x189a   :  { %3530 = vpow2.f32 %v3283_v9 }
0x189e   :  { %v3529_v8 = vpop.eup %3528 }
0x189f   :  { %2137 = vrot.lane.b32.xlu1 %v3529_v8, %s3627_s0 }
0x18a0   :  { %v3531_v10 = vpop.eup %3530 }
0x18a1   :  { %v2118_v11 = vadd.f32 1.0, %v3531_v10 }
0x18a3   :  { %3532 = vrcp.f32 %v2118_v11  ;;  %v2130_v20 = vand.u32 2147483648, %v2118_v11  ;;  %vm2124_vm3 = vweird.f32 %v2118_v11  ;;  %v2128_v21 = vand.u32 2147483647, %v2118_v11 }
0x18a5   :  { %v2131_v22 = vor.u32 1.1754944e-38, %v2130_v20  ;;  %vm2129_vm6 = vcmp.eq.f32.partialorder %v2128_v21, 8.507059e+37 }
0x18a9   :  { %v3533_v13 = vpop.eup %3532 }
0x18aa   :  { %v2120_v14 = vmul.f32 %v3533_v13, %v2118_v11  ;;  %vm2125_vm2 = vweird.f32 %v3533_v13 }
0x18ab   :  { %vm2126_vm5 = vmor %vm2124_vm3, %vm2125_vm2 }
0x18ac   :  { %v2121_v15 = vsub.f32 1.0, %v2120_v14 }
0x18ae   :  { %v2122_v17 = vmul.f32 %v3533_v13, %v2121_v15 }
0x18b0   :  { %v2123_v18 = vadd.f32 %v3533_v13, %v2122_v17 }
0x18b2   :  { %v2127_v54 = vsel %vm2126_vm5, %v3533_v13, %v2123_v18 }
0x18b3   :  { %v2132_v24 = vsel %vm2129_vm6, %v2131_v22, %v2127_v54 }
0x18b4   :  { %v2135_v26 = vmul.f32 %v2132_v24, %v2080_v63 }
0x1911   :  { %v2138_v23 = vpop.permute.xlu1 %2137 }
0x1912   :  { %v2140_v25 = vmul.f32 %v2138_v23, %v2132_v24 }
0x1914   :  { %2142 = vrot.lane.b32.xlu2 %v2140_v25, %s3628_s29  ;;  %v3624_v25 = vld [vmem:[%s4543_s2] sm:$0xff] }
0x196e   :  { %v2143_v27 = vpop.permute.xlu2 %2142 }
0x196f   :  { %v2145_v30 = vadd.f32 %v2143_v27, %v2135_v26  ;;  %v2283_v26 = vld [vmem:[#allocation2 + $0x1a] sm:$0x3] }
0x1971   :  { %3534 = vtanh.f32 %v2145_v30 }
0x1977   :  { %v3535_v31 = vpop.eup %3534 }
0x1978   :  { %2148 = vrot.lane.b32.xlu0 %v3535_v31, %s3627_s0 }
0x19ea   :  { %v2149_v33 = vpop.permute.xlu0 %2148 }
0x19eb   :  { %v2151_v41 = vmul.f32 %v2149_v33, %v2132_v24 }
0x19ed   :  { %2155 = vrot.lane.b32.xlu1 %v2151_v41, %s3628_s29 }
0x1a5f   :  { %v2156_v34 = vpop.permute.xlu1 %2155 }
0x1a60   :  { %3284 = vmatmul.msk.f32.vlgmr.msra.gmra.mxu3 %vm1440_vm9, %v2156_v34 }
0x1a61   :  { %2561 = vmatpush.msra.mxu3 %v4209_v32 }
0x1a63   :  { %2562 = vmatpush.msra.mxu3 %v4216_v35 }
0x1a65   :  { %2563 = vmatpush.msra.mxu3 %v4222_v38 }
0x1a67   :  { %2564 = vmatpush.msra.mxu3 %v4229_v6 }
0x1ae3   :  { %v2176_v37 = vpop.f32.mrf.mxu3 }
0x1ae4   :  { %v2179_v28 = vadd.f32 %v2176_v37, %v2153_v36 }
0x1ae6   :  { %3536 = vtanh.f32 %v2179_v28  ;;  %v3285_v60 = vmul.f32 -1.442695, %v2179_v28 }
0x1ae8   :  { %3538 = vpow2.f32 %v3285_v60 }
0x1aec   :  { %v3537_v40 = vpop.eup %3536 }
0x1aed   :  { %2202 = vrot.lane.b32.xlu2 %v3537_v40, %s3627_s0 }
0x1aee   :  { %v3539_v19 = vpop.eup %3538 }
0x1aef   :  { %v2183_v47 = vadd.f32 1.0, %v3539_v19 }
0x1af1   :  { %3540 = vrcp.f32 %v2183_v47  ;;  %v2195_v38 = vand.u32 2147483648, %v2183_v47  ;;  %vm2189_vm8 = vweird.f32 %v2183_v47  ;;  %v2193_v44 = vand.u32 2147483647, %v2183_v47 }
0x1af3   :  { %v2196_v46 = vor.u32 1.1754944e-38, %v2195_v38  ;;  %vm2194_vm11 = vcmp.eq.f32.partialorder %v2193_v44, 8.507059e+37 }
0x1af7   :  { %v3541_v3 = vpop.eup %3540 }
0x1af8   :  { %v2185_v32 = vmul.f32 %v3541_v3, %v2183_v47  ;;  %vm2190_vm7 = vweird.f32 %v3541_v3 }
0x1af9   :  { %vm2191_vm10 = vmor %vm2189_vm8, %vm2190_vm7 }
0x1afa   :  { %v2186_v42 = vsub.f32 1.0, %v2185_v32 }
0x1afc   :  { %v2187_v35 = vmul.f32 %v3541_v3, %v2186_v42 }
0x1afe   :  { %v2188_v43 = vadd.f32 %v3541_v3, %v2187_v35 }
0x1b00   :  { %v2192_v45 = vsel %vm2191_vm10, %v3541_v3, %v2188_v43 }
0x1b01   :  { %v2197_v49 = vsel %vm2194_vm11, %v2196_v46, %v2192_v45 }
0x1b02   :  { %v2200_v51 = vmul.f32 %v2197_v49, %v2145_v30 }
0x1b47   :  { %v2203_v48 = vpop.permute.xlu2 %2202 }
0x1b48   :  { %v2205_v50 = vmul.f32 %v2203_v48, %v2197_v49 }
0x1b4a   :  { %2207 = vrot.lane.b32.xlu0 %v2205_v50, %s3628_s29 }
0x1bbc   :  { %v2208_v52 = vpop.permute.xlu0 %2207 }
0x1bbd   :  { %v2210_v39 = vadd.f32 %v2208_v52, %v2200_v51  ;;  %v2348_v51 = vld [vmem:[#allocation2 + $0x1c] sm:$0x3] }
0x1bbf   :  { %3542 = vtanh.f32 %v2210_v39 }
0x1bc5   :  { %v3543_v53 = vpop.eup %3542 }
0x1bc6   :  { %2213 = vrot.lane.b32.xlu1 %v3543_v53, %s3627_s0 }
0x1c38   :  { %v2214_v29 = vpop.permute.xlu1 %2213 }
0x1c39   :  { %v2216_v55 = vmul.f32 %v2214_v29, %v2197_v49 }
0x1c3b   :  { %2220 = vrot.lane.b32.xlu2 %v2216_v55, %s3628_s29 }
0x1c95   :  { %v2221_v56 = vpop.permute.xlu2 %2220 }
0x1c96   :  { %3286 = vmatmul.msk.f32.vlgmr.msra.gmra.mxu1 %vm1440_vm9, %v2221_v56 }
0x1c97   :  { %2626 = vmatpush.msra.mxu1 %v3621_v58 }
0x1c99   :  { %2627 = vmatpush.msra.mxu1 %v3622_v57 }
0x1c9b   :  { %2628 = vmatpush.msra.mxu1 %v3623_v59 }
0x1c9d   :  { %2629 = vmatpush.msra.mxu1 %v4229_v6 }
0x1d13   :  { %v2241_v12 = vpop.f32.mrf.mxu1 }
0x1d14   :  { %v2244_v63 = vadd.f32 %v2241_v12, %v2218_v61 }
0x1d16   :  { %3544 = vtanh.f32 %v2244_v63  ;;  %v3287_v16 = vmul.f32 -1.442695, %v2244_v63 }
0x1d18   :  { %3546 = vpow2.f32 %v3287_v16 }
0x1d1c   :  { %v3545_v0 = vpop.eup %3544 }
0x1d1d   :  { %2267 = vrot.lane.b32.xlu0 %v3545_v0, %s3627_s0 }
0x1d1e   :  { %v3547_v1 = vpop.eup %3546 }
0x1d1f   :  { %v2248_v2 = vadd.f32 1.0, %v3547_v1 }
0x1d21   :  { %3548 = vrcp.f32 %v2248_v2  ;;  %v2260_v10 = vand.u32 2147483648, %v2248_v2  ;;  %vm2254_vm13 = vweird.f32 %v2248_v2  ;;  %v2258_v6 = vand.u32 2147483647, %v2248_v2 }
0x1d23   :  { %v2261_v13 = vor.u32 1.1754944e-38, %v2260_v10  ;;  %vm2259_vm15 = vcmp.eq.f32.partialorder %v2258_v6, 8.507059e+37 }
0x1d27   :  { %v3549_v4 = vpop.eup %3548 }
0x1d28   :  { %v2250_v5 = vmul.f32 %v3549_v4, %v2248_v2  ;;  %vm2255_vm12 = vweird.f32 %v3549_v4 }
0x1d29   :  { %vm2256_vm14 = vmor %vm2254_vm13, %vm2255_vm12 }
0x1d2a   :  { %v2251_v7 = vsub.f32 1.0, %v2250_v5 }
0x1d2c   :  { %v2252_v8 = vmul.f32 %v3549_v4, %v2251_v7 }
0x1d2e   :  { %v2253_v9 = vadd.f32 %v3549_v4, %v2252_v8 }
0x1d30   :  { %v2257_v11 = vsel %vm2256_vm14, %v3549_v4, %v2253_v9 }
0x1d31   :  { %v2262_v15 = vsel %vm2259_vm15, %v2261_v13, %v2257_v11 }
0x1d32   :  { %v2265_v18 = vmul.f32 %v2262_v15, %v2210_v39 }
0x1d8f   :  { %v2268_v14 = vpop.permute.xlu0 %2267 }
0x1d90   :  { %v2270_v17 = vmul.f32 %v2268_v14, %v2262_v15  ;;  %v2413_v14 = vld [vmem:[#allocation2 + $0x1e] sm:$0x3] }
0x1d92   :  { %2272 = vrot.lane.b32.xlu1 %v2270_v17, %s3628_s29 }
0x1e04   :  { %v2273_v20 = vpop.permute.xlu1 %2272 }
0x1e05   :  { %v2275_v21 = vadd.f32 %v2273_v20, %v2265_v18 }
0x1e07   :  { %3550 = vtanh.f32 %v2275_v21 }
0x1e0d   :  { %v3551_v54 = vpop.eup %3550 }
0x1e0e   :  { %2278 = vrot.lane.b32.xlu2 %v3551_v54, %s3627_s0 }
0x1e68   :  { %v2279_v22 = vpop.permute.xlu2 %2278 }
0x1e69   :  { %v2281_v23 = vmul.f32 %v2279_v22, %v2262_v15 }
0x1e6b   :  { %2285 = vrot.lane.b32.xlu0 %v2281_v23, %s3628_s29 }
0x1edd   :  { %v2286_v24 = vpop.permute.xlu0 %2285 }
0x1ede   :  { %3288 = vmatmul.msk.f32.vlgmr.msrb.gmra.mxu2 %vm1440_vm9, %v2286_v24 }
0x1edf   :  { %2691 = vmatpush.msrb.mxu2 %v3621_v58 }
0x1ee1   :  { %2692 = vmatpush.msrb.mxu2 %v3622_v57 }
0x1ee3   :  { %2693 = vmatpush.msrb.mxu2 %v3623_v59 }
0x1ee5   :  { %2694 = vmatpush.msrb.mxu2 %v3624_v25 }
0x1f61   :  { %v2306_v27 = vpop.f32.mrf.mxu2 }
0x1f62   :  { %v2309_v30 = vadd.f32 %v2306_v27, %v2283_v26 }
0x1f64   :  { %3552 = vtanh.f32 %v2309_v30  ;;  %v3289_v33 = vmul.f32 -1.442695, %v2309_v30 }
0x1f66   :  { %3554 = vpow2.f32 %v3289_v33 }
0x1f6a   :  { %v3553_v31 = vpop.eup %3552 }
0x1f6b   :  { %2332 = vrot.lane.b32.xlu1 %v3553_v31, %s3627_s0 }
0x1f6c   :  { %v3555_v41 = vpop.eup %3554 }
0x1f6d   :  { %v2313_v34 = vadd.f32 1.0, %v3555_v41 }
0x1f6f   :  { %3556 = vrcp.f32 %v2313_v34  ;;  %v2325_v19 = vand.u32 2147483648, %v2313_v34  ;;  %vm2319_vm1 = vweird.f32 %v2313_v34  ;;  %v2323_v47 = vand.u32 2147483647, %v2313_v34 }
0x1f71   :  { %v2326_v32 = vor.u32 1.1754944e-38, %v2325_v19  ;;  %vm2324_vm3 = vcmp.eq.f32.partialorder %v2323_v47, 8.507059e+37 }
0x1f75   :  { %v3557_v36 = vpop.eup %3556 }
0x1f76   :  { %v2315_v37 = vmul.f32 %v3557_v36, %v2313_v34  ;;  %vm2320_vm0 = vweird.f32 %v3557_v36 }
0x1f77   :  { %vm2321_vm2 = vmor %vm2319_vm1, %vm2320_vm0 }
0x1f78   :  { %v2316_v28 = vsub.f32 1.0, %v2315_v37 }
0x1f7a   :  { %v2317_v40 = vmul.f32 %v3557_v36, %v2316_v28 }
0x1f7c   :  { %v2318_v60 = vadd.f32 %v3557_v36, %v2317_v40 }
0x1f7e   :  { %v2322_v3 = vsel %vm2321_vm2, %v3557_v36, %v2318_v60 }
0x1f7f   :  { %v2327_v35 = vsel %vm2324_vm3, %v2326_v32, %v2322_v3  ;;  %v2478_v32 = vld [vmem:[#allocation2 + $0x20] sm:$0x3] }
0x1f80   :  { %v2330_v38 = vmul.f32 %v2327_v35, %v2275_v21 }
0x1fdd   :  { %v2333_v42 = vpop.permute.xlu1 %2332 }
0x1fde   :  { %v2335_v43 = vmul.f32 %v2333_v42, %v2327_v35 }
0x1fe0   :  { %2337 = vrot.lane.b32.xlu2 %v2335_v43, %s3628_s29 }
0x203a   :  { %v2338_v44 = vpop.permute.xlu2 %2337 }
0x203b   :  { %v2340_v45 = vadd.f32 %v2338_v44, %v2330_v38 }
0x203d   :  { %3558 = vtanh.f32 %v2340_v45 }
0x2043   :  { %v3559_v46 = vpop.eup %3558 }
0x2044   :  { %2343 = vrot.lane.b32.xlu0 %v3559_v46, %s3627_s0 }
0x20b6   :  { %v2344_v48 = vpop.permute.xlu0 %2343 }
0x20b7   :  { %v2346_v49 = vmul.f32 %v2344_v48, %v2327_v35 }
0x20b9   :  { %2350 = vrot.lane.b32.xlu1 %v2346_v49, %s3628_s29 }
0x212b   :  { %v2351_v50 = vpop.permute.xlu1 %2350 }
0x212c   :  { %3290 = vmatmul.msk.f32.vlgmr.msrb.gmra.mxu3 %vm1440_vm9, %v2351_v50 }
0x21af   :  { %v2371_v52 = vpop.f32.mrf.mxu3 }
0x21b0   :  { %v2374_v39 = vadd.f32 %v2371_v52, %v2348_v51 }
0x21b2   :  { %3560 = vtanh.f32 %v2374_v39  ;;  %v3291_v29 = vmul.f32 -1.442695, %v2374_v39 }
0x21b4   :  { %3562 = vpow2.f32 %v3291_v29 }
0x21b8   :  { %v3561_v53 = vpop.eup %3560 }
0x21b9   :  { %2397 = vrot.lane.b32.xlu2 %v3561_v53, %s3627_s0 }
0x21ba   :  { %v3563_v55 = vpop.eup %3562 }
0x21bb   :  { %v2378_v56 = vadd.f32 1.0, %v3563_v55 }
0x21bd   :  { %3564 = vrcp.f32 %v2378_v56  ;;  %v2390_v63 = vand.u32 2147483648, %v2378_v56  ;;  %vm2384_vm6 = vweird.f32 %v2378_v56  ;;  %v2388_v0 = vand.u32 2147483647, %v2378_v56 }
0x21bf   :  { %v2391_v1 = vor.u32 1.1754944e-38, %v2390_v63  ;;  %vm2389_vm8 = vcmp.eq.f32.partialorder %v2388_v0, 8.507059e+37 }
0x21c3   :  { %v3565_v58 = vpop.eup %3564 }
0x21c4   :  { %v2380_v57 = vmul.f32 %v3565_v58, %v2378_v56  ;;  %vm2385_vm5 = vweird.f32 %v3565_v58 }
0x21c5   :  { %vm2386_vm7 = vmor %vm2384_vm6, %vm2385_vm5 }
0x21c6   :  { %v2381_v59 = vsub.f32 1.0, %v2380_v57 }
0x21c8   :  { %v2382_v61 = vmul.f32 %v3565_v58, %v2381_v59 }
0x21ca   :  { %v2383_v12 = vadd.f32 %v3565_v58, %v2382_v61 }
0x21cc   :  { %v2387_v16 = vsel %vm2386_vm7, %v3565_v58, %v2383_v12 }
0x21cd   :  { %v2392_v4 = vsel %vm2389_vm8, %v2391_v1, %v2387_v16  ;;  %v3408_v16 = vld [vmem:[%s4545_s4] sm:$0xff] }
0x21ce   :  { %v2395_v7 = vmul.f32 %v2392_v4, %v2340_v45  ;;  %2760 = vmatpush.bf16.msrb.mxu3 %v3408_v16 }
0x2213   :  { %v2398_v2 = vpop.permute.xlu2 %2397 }
0x2214   :  { %v2400_v5 = vmul.f32 %v2398_v2, %v2392_v4  ;;  %v2737_v2 = vpack.c.bf16 %v4240_v62, %v4240_v62 }
0x2216   :  { %2402 = vrot.lane.b32.xlu0 %v2400_v5, %s3628_s29 }
0x2288   :  { %v2403_v8 = vpop.permute.xlu0 %2402 }
0x2289   :  { %v2405_v9 = vadd.f32 %v2403_v8, %v2395_v7 }
0x228b   :  { %3566 = vtanh.f32 %v2405_v9 }
0x2291   :  { %v3567_v10 = vpop.eup %3566 }
0x2292   :  { %2408 = vrot.lane.b32.xlu1 %v3567_v10, %s3627_s0 }
0x2304   :  { %v2409_v6 = vpop.permute.xlu1 %2408 }
0x2305   :  { %v2411_v11 = vmul.f32 %v2409_v6, %v2392_v4  ;;  %v2543_v4 = vld [vmem:[#allocation2 + $0x22] sm:$0x3] }
0x2307   :  { %2415 = vrot.lane.b32.xlu2 %v2411_v11, %s3628_s29 }
0x2361   :  { %v2416_v13 = vpop.permute.xlu2 %2415 }
0x2362   :  { %3292 = vmatmul.msk.f32.vlgmr.msrb.gmra.mxu1 %vm1440_vm9, %v2416_v13 }
0x23df   :  { %v2436_v15 = vpop.f32.mrf.mxu1 }
0x23e0   :  { %v2439_v17 = vadd.f32 %v2436_v15, %v2413_v14 }
0x23e2   :  { %3568 = vtanh.f32 %v2439_v17  ;;  %v3293_v20 = vmul.f32 -1.442695, %v2439_v17 }
0x23e4   :  { %3570 = vpow2.f32 %v3293_v20 }
0x23e8   :  { %v3569_v18 = vpop.eup %3568 }
0x23e9   :  { %2462 = vrot.lane.b32.xlu0 %v3569_v18, %s3627_s0 }
0x23ea   :  { %v3571_v21 = vpop.eup %3570 }
0x23eb   :  { %v2443_v54 = vadd.f32 1.0, %v3571_v21 }
0x23ed   :  { %3572 = vrcp.f32 %v2443_v54  ;;  %v2455_v27 = vand.u32 2147483648, %v2443_v54  ;;  %vm2449_vm11 = vweird.f32 %v2443_v54  ;;  %v2453_v30 = vand.u32 2147483647, %v2443_v54 }
0x23ef   :  { %v2456_v33 = vor.u32 1.1754944e-38, %v2455_v27  ;;  %vm2454_vm13 = vcmp.eq.f32.partialorder %v2453_v30, 8.507059e+37 }
0x23f3   :  { %v3573_v22 = vpop.eup %3572 }
0x23f4   :  { %v2445_v23 = vmul.f32 %v3573_v22, %v2443_v54  ;;  %vm2450_vm10 = vweird.f32 %v3573_v22 }
0x23f5   :  { %vm2451_vm12 = vmor %vm2449_vm11, %vm2450_vm10 }
0x23f6   :  { %v2446_v24 = vsub.f32 1.0, %v2445_v23 }
0x23f8   :  { %v2447_v25 = vmul.f32 %v3573_v22, %v2446_v24 }
0x23fa   :  { %v2448_v26 = vadd.f32 %v3573_v22, %v2447_v25 }
0x23fc   :  { %v2452_v31 = vsel %vm2451_vm12, %v3573_v22, %v2448_v26 }
0x23fd   :  { %v2457_v34 = vsel %vm2454_vm13, %v2456_v33, %v2452_v31 }
0x23fe   :  { %v2460_v37 = vmul.f32 %v2457_v34, %v2405_v9 }
0x245b   :  { %v2463_v41 = vpop.permute.xlu0 %2462 }
0x245c   :  { %v2465_v36 = vmul.f32 %v2463_v41, %v2457_v34 }
0x245e   :  { %2467 = vrot.lane.b32.xlu1 %v2465_v36, %s3628_s29  ;;  %v2608_v36 = vld [vmem:[#allocation2 + $0x24] sm:$0x3] }
0x24d0   :  { %v2468_v28 = vpop.permute.xlu1 %2467 }
0x24d1   :  { %v2470_v40 = vadd.f32 %v2468_v28, %v2460_v37 }
0x24d3   :  { %3574 = vtanh.f32 %v2470_v40 }
0x24d9   :  { %v3575_v60 = vpop.eup %3574 }
0x24da   :  { %2473 = vrot.lane.b32.xlu2 %v3575_v60, %s3627_s0 }
0x2534   :  { %v2474_v19 = vpop.permute.xlu2 %2473 }
0x2535   :  { %v2476_v47 = vmul.f32 %v2474_v19, %v2457_v34 }
0x2537   :  { %2480 = vrot.lane.b32.xlu0 %v2476_v47, %s3628_s29 }
0x25a9   :  { %v2481_v3 = vpop.permute.xlu0 %2480 }
0x25aa   :  { %3294 = vmatmul.msk.f32.vlgmr.msra.gmra.mxu2 %vm1440_vm9, %v2481_v3 }
0x262d   :  { %v2501_v42 = vpop.f32.mrf.mxu2 }
0x262e   :  { %v2504_v35 = vadd.f32 %v2501_v42, %v2478_v32 }
0x2630   :  { %3576 = vtanh.f32 %v2504_v35  ;;  %v3295_v38 = vmul.f32 -1.442695, %v2504_v35 }
0x2632   :  { %3578 = vpow2.f32 %v3295_v38 }
0x2636   :  { %v3577_v43 = vpop.eup %3576 }
0x2637   :  { %2527 = vrot.lane.b32.xlu1 %v3577_v43, %s3627_s0 }
0x2638   :  { %v3579_v44 = vpop.eup %3578 }
0x2639   :  { %v2508_v45 = vadd.f32 1.0, %v3579_v44 }
0x263b   :  { %3580 = vrcp.f32 %v2508_v45  ;;  %v2520_v52 = vand.u32 2147483648, %v2508_v45  ;;  %vm2514_vm15 = vweird.f32 %v2508_v45  ;;  %v2518_v39 = vand.u32 2147483647, %v2508_v45 }
0x263d   :  { %v2521_v29 = vor.u32 1.1754944e-38, %v2520_v52  ;;  %vm2519_vm1 = vcmp.eq.f32.partialorder %v2518_v39, 8.507059e+37 }
0x2641   :  { %v3581_v46 = vpop.eup %3580 }
0x2642   :  { %v2510_v48 = vmul.f32 %v3581_v46, %v2508_v45  ;;  %vm2515_vm14 = vweird.f32 %v3581_v46 }
0x2643   :  { %vm2516_vm0 = vmor %vm2514_vm15, %vm2515_vm14 }
0x2644   :  { %v2511_v49 = vsub.f32 1.0, %v2510_v48 }
0x2646   :  { %v2512_v50 = vmul.f32 %v3581_v46, %v2511_v49 }
0x2648   :  { %v2513_v51 = vadd.f32 %v3581_v46, %v2512_v50 }
0x264a   :  { %v2517_v53 = vsel %vm2516_vm0, %v3581_v46, %v2513_v51 }
0x264b   :  { %v2522_v56 = vsel %vm2519_vm1, %v2521_v29, %v2517_v53  ;;  %v3439_v29 = vld [vmem:[%s4546_s9] ss:$0 sm:$0xff] }
0x264c   :  { %v2525_v57 = vmul.f32 %v2522_v56, %v2470_v40 }
0x26a9   :  { %v2528_v55 = vpop.permute.xlu1 %2527 }
0x26aa   :  { %v2530_v58 = vmul.f32 %v2528_v55, %v2522_v56 }
0x26ac   :  { %2532 = vrot.lane.b32.xlu2 %v2530_v58, %s3628_s29 }
0x2706   :  { %v2533_v59 = vpop.permute.xlu2 %2532 }
0x2707   :  { %v2535_v61 = vadd.f32 %v2533_v59, %v2525_v57 }
0x2709   :  { %3582 = vtanh.f32 %v2535_v61 }
0x270f   :  { %v3583_v12 = vpop.eup %3582 }
0x2710   :  { %2538 = vrot.lane.b32.xlu0 %v3583_v12, %s3627_s0 }
0x2782   :  { %v2539_v63 = vpop.permute.xlu0 %2538 }
0x2783   :  { %v2541_v0 = vmul.f32 %v2539_v63, %v2522_v56 }
0x2785   :  { %2545 = vrot.lane.b32.xlu1 %v2541_v0, %s3628_s29 }
0x27f7   :  { %v2546_v1 = vpop.permute.xlu1 %2545 }
0x27f8   :  { %3296 = vmatmul.msk.f32.vlgmr.msra.gmra.mxu3 %vm1440_vm9, %v2546_v1 }
0x2800   :  { %3306 = vmatmul.msk.bf16.vlgmr.msrb.gmra.mxu3 %vm1347_vm4, %v2737_v2 }
0x287b   :  { %v2566_v5 = vpop.f32.mrf.mxu3 }
0x287c   :  { %v2569_v7 = vadd.f32 %v2566_v5, %v2543_v4 }
0x287e   :  { %3584 = vtanh.f32 %v2569_v7  ;;  %v3297_v6 = vmul.f32 -1.442695, %v2569_v7 }
0x2880   :  { %3586 = vpow2.f32 %v3297_v6 }
0x2883   :  { %v4385_v8 = vpop.f32.mrf.mxu3 }
0x2884   :  { %v3585_v9 = vpop.eup %3584  ;;  %v2763_v55 = vadd.f32 %v3439_v29, %v4385_v8 }
0x2885   :  { %2592 = vrot.lane.b32.xlu2 %v3585_v9, %s3627_s0 }
0x2886   :  { %v3587_v11 = vpop.eup %3586  ;;  %v3307_v16 = vmul.f32 -1.442695, %v2763_v55 }
0x2887   :  { %v2573_v13 = vadd.f32 1.0, %v3587_v11 }
0x2889   :  { %3588 = vrcp.f32 %v2573_v13  ;;  %v2585_v20 = vand.u32 2147483648, %v2573_v13  ;;  %vm2579_vm3 = vweird.f32 %v2573_v13  ;;  %v2583_v21 = vand.u32 2147483647, %v2573_v13 }
0x288b   :  { %v2764_v10 = vpop.f32.mrf.mxu3  ;;  %v2586_v22 = vor.u32 1.1754944e-38, %v2585_v20  ;;  %vm2584_vm6 = vcmp.eq.f32.partialorder %v2583_v21, 8.507059e+37 }
0x288f   :  { %v3589_v14 = vpop.eup %3588 }
0x2890   :  { %v2575_v15 = vmul.f32 %v3589_v14, %v2573_v13  ;;  %vm2580_vm2 = vweird.f32 %v3589_v14 }
0x2891   :  { %vm2581_vm5 = vmor %vm2579_vm3, %vm2580_vm2 }
0x2892   :  { %v2576_v62 = vsub.f32 1.0, %v2575_v15 }
0x2894   :  { %v2577_v17 = vmul.f32 %v3589_v14, %v2576_v62 }
0x2896   :  { %v2578_v18 = vadd.f32 %v3589_v14, %v2577_v17 }
0x2898   :  { %v2582_v54 = vsel %vm2581_vm5, %v3589_v14, %v2578_v18  ;;  %vm2843_vm5 = vcmask 523264  }
0x2899   :  { %v2587_v24 = vsel %vm2584_vm6, %v2586_v22, %v2582_v54  ;;  %vm2996_vm6 = vcmask 105472  }
0x289a   :  { %v2590_v26 = vmul.f32 %v2587_v24, %v2535_v61  ;;  %v2673_v61 = vld [vmem:[#allocation2 + $0x26] sm:$0x3] }
0x28df   :  { %v2593_v23 = vpop.permute.xlu2 %2592 }
0x28e0   :  { %v2595_v25 = vmul.f32 %v2593_v23, %v2587_v24 }
0x28e2   :  { %2597 = vrot.lane.b32.xlu0 %v2595_v25, %s3628_s29 }
0x2954   :  { %v2598_v27 = vpop.permute.xlu0 %2597 }
0x2955   :  { %v2600_v30 = vadd.f32 %v2598_v27, %v2590_v26 }
0x2957   :  { %3590 = vtanh.f32 %v2600_v30 }
0x295d   :  { %v3591_v31 = vpop.eup %3590 }
0x295e   :  { %2603 = vrot.lane.b32.xlu1 %v3591_v31, %s3627_s0 }
0x29d0   :  { %v2604_v33 = vpop.permute.xlu1 %2603 }
0x29d1   :  { %v2606_v41 = vmul.f32 %v2604_v33, %v2587_v24 }
0x29d3   :  { %2610 = vrot.lane.b32.xlu2 %v2606_v41, %s3628_s29 }
0x2a2d   :  { %v2611_v34 = vpop.permute.xlu2 %2610 }
0x2a2e   :  { %3298 = vmatmul.msk.f32.vlgmr.msra.gmra.mxu1 %vm1440_vm9, %v2611_v34 }
0x2aab   :  { %v2631_v37 = vpop.f32.mrf.mxu1 }
0x2aac   :  { %v2634_v28 = vadd.f32 %v2631_v37, %v2608_v36 }
0x2aae   :  { %3592 = vtanh.f32 %v2634_v28  ;;  %v3299_v60 = vmul.f32 -1.442695, %v2634_v28 }
0x2ab0   :  { %3594 = vpow2.f32 %v3299_v60 }
0x2ab4   :  { %v3593_v40 = vpop.eup %3592 }
0x2ab5   :  { %2657 = vrot.lane.b32.xlu0 %v3593_v40, %s3627_s0 }
0x2ab6   :  { %v3595_v19 = vpop.eup %3594 }
0x2ab7   :  { %v2638_v47 = vadd.f32 1.0, %v3595_v19 }
0x2ab9   :  { %3596 = vrcp.f32 %v2638_v47  ;;  %v2650_v38 = vand.u32 2147483648, %v2638_v47  ;;  %vm2644_vm8 = vweird.f32 %v2638_v47  ;;  %v2648_v44 = vand.u32 2147483647, %v2638_v47 }
0x2abb   :  { %v2651_v46 = vor.u32 1.1754944e-38, %v2650_v38  ;;  %vm2649_vm11 = vcmp.eq.f32.partialorder %v2648_v44, 8.507059e+37  ;;  %v3416_v38 = vld [vmem:[%s4508_s11 + $0x18] sm:$0xff]  ;;  %v3415_v44 = vld [vmem:[%s4508_s11 + $0x10] sm:$0xff] }
0x2abc   :  { %2905 = vmatpush.bf16.msra.mxu2 %v3416_v38 }
0x2abf   :  { %v3597_v3 = vpop.eup %3596 }
0x2ac0   :  { %v2640_v32 = vmul.f32 %v3597_v3, %v2638_v47  ;;  %vm2645_vm7 = vweird.f32 %v3597_v3  ;;  %v3412_v47 = vld [vmem:[%s4547_s27 + $0x18] sm:$0xff]  ;;  %2906 = vmatpush.bf16.msra.mxu2 %v3415_v44 }
0x2ac1   :  { %vm2646_vm10 = vmor %vm2644_vm8, %vm2645_vm7  ;;  %2851 = vmatpush.bf16.msrb.mxu1 %v3412_v47 }
0x2ac2   :  { %v2641_v42 = vsub.f32 1.0, %v2640_v32  ;;  %v3410_v32 = vld [vmem:[%s4547_s27 + $0x8] sm:$0xff] }
0x2ac4   :  { %v2642_v35 = vmul.f32 %v3597_v3, %v2641_v42 }
0x2ac6   :  { %v2643_v43 = vadd.f32 %v3597_v3, %v2642_v35 }
0x2ac8   :  { %v2647_v45 = vsel %vm2646_vm10, %v3597_v3, %v2643_v43  ;;  %v3411_v3 = vld [vmem:[%s4547_s27 + $0x10] sm:$0xff]  ;;  %v3409_v43 = vld [vmem:[%s4547_s27] sm:$0xff] }
0x2ac9   :  { %v2652_v49 = vsel %vm2649_vm11, %v2651_v46, %v2647_v45  ;;  %2852 = vmatpush.bf16.msrb.mxu1 %v3411_v3 }
0x2aca   :  { %v2655_v51 = vmul.f32 %v2652_v49, %v2600_v30 }
0x2acd   :  { %2853 = vmatpush.bf16.msrb.mxu1 %v3410_v32 }
0x2ad1   :  { %2854 = vmatpush.bf16.msrb.mxu1 %v3409_v43 }
0x2b27   :  { %v2658_v48 = vpop.permute.xlu0 %2657 }
0x2b28   :  { %v2660_v50 = vmul.f32 %v2658_v48, %v2652_v49 }
0x2b2a   :  { %2662 = vrot.lane.b32.xlu1 %v2660_v50, %s3628_s29  ;;  %v3414_v50 = vld [vmem:[%s4508_s11 + $0x8] sm:$0xff] }
0x2b2b   :  { %2907 = vmatpush.bf16.msra.mxu2 %v3414_v50 }
0x2b9c   :  { %v2663_v52 = vpop.permute.xlu1 %2662 }
0x2b9d   :  { %v4394_v39 = vadd.f32 %v2663_v52, %v2655_v51  ;;  %v3413_v51 = vld [vmem:[%s4508_s11] sm:$0xff]  ;;  %v3418_v52 = vld [vmem:[%s4510_s13 + $0x8] sm:$0xff] }
0x2b9e   :  { %2908 = vmatpush.bf16.msra.mxu2 %v3413_v51  ;;  %2945 = vmatpush.bf16.msra.mxu3 %v3418_v52 }
0x2b9f   :  { %3598 = vtanh.f32 %v4394_v39 }
0x2ba0   :  { %3600 = vtanh.f32 %v2763_v55 }
0x2ba5   :  { %v3599_v53 = vpop.eup %3598 }
0x2ba6   :  { %2668 = vrot.lane.b32.xlu2 %v3599_v53, %s3627_s0  ;;  %v3601_v57 = vpop.eup %3600  ;;  %v3440_v53 = vld [vmem:[%s4548_s8] ss:$0 sm:$0xff] }
0x2c00   :  { %v2669_v56 = vpop.permute.xlu2 %2668 }
0x2c01   :  { %v2671_v58 = vmul.f32 %v2669_v56, %v2652_v49 }
0x2c03   :  { %2675 = vrot.lane.b32.xlu0 %v2671_v58, %s3628_s29 }
0x2c0b   :  { %2787 = vrot.lane.b32.xlu0 %v3601_v57, %s3627_s0 }
0x2c75   :  { %v2676_v59 = vpop.permute.xlu0 %2675 }
0x2c76   :  { %3300 = vmatmul.msk.f32.vlgmr.msrb.gmra.mxu2 %vm1440_vm9, %v2676_v59  ;;  %v3420_v59 = vld [vmem:[%s4512_s15 + $0x8] sm:$0xff] }
0x2c77   :  { %2983 = vmatpush.bf16.msra.mxu1 %v3420_v59 }
0x2c7d   :  { %v2788_v24 = vpop.permute.xlu0 %2787 }
0x2cf9   :  { %v2696_v12 = vpop.f32.mrf.mxu2 }
0x2cfa   :  { %v2699_v63 = vadd.f32 %v2696_v12, %v2673_v61  ;;  %v3419_v61 = vld [vmem:[%s4512_s15] sm:$0xff]  ;;  %s3630_s15 = smov 13  }
0x2cfb   :  { %2984 = vmatpush.bf16.msra.mxu1 %v3419_v61  ;;  %v3441_v12 = vld [vmem:[%s4509_s12] ss:$0 sm:$0xff] }
0x2cfc   :  { %3602 = vtanh.f32 %v2699_v63  ;;  %v3301_v1 = vmul.f32 -1.442695, %v2699_v63 }
0x2cfd   :  { %3604 = vpow2.f32 %v3307_v16 }
0x2cfe   :  { %3606 = vpow2.f32 %v3301_v1 }
0x2d02   :  { %v3603_v0 = vpop.eup %3602 }
0x2d03   :  { %2722 = vrot.lane.b32.xlu1 %v3603_v0, %s3627_s0  ;;  %v3605_v2 = vpop.eup %3604 }
0x2d04   :  { %v3607_v4 = vpop.eup %3606  ;;  %v2769_v5 = vadd.f32 1.0, %v3605_v2 }
0x2d05   :  { %v2703_v7 = vadd.f32 1.0, %v3607_v4  ;;  %v2991_v4 = vld [vmem:[%s4514_s1] sm:$0x3] }
0x2d06   :  { %3608 = vrcp.f32 %v2769_v5  ;;  %v2781_v17 = vand.u32 2147483648, %v2769_v5  ;;  %vm2775_vm14 = vweird.f32 %v2769_v5  ;;  %v2779_v20 = vand.u32 2147483647, %v2769_v5 }
0x2d07   :  { %3610 = vrcp.f32 %v2703_v7  ;;  %v2715_v21 = vand.u32 2147483648, %v2703_v7  ;;  %vm2709_vm0 = vweird.f32 %v2703_v7  ;;  %v2713_v54 = vand.u32 2147483647, %v2703_v7 }
0x2d08   :  { %v2782_v23 = vor.u32 1.1754944e-38, %v2781_v17  ;;  %vm2780_vm2 = vcmp.eq.f32.partialorder %v2779_v20, 8.507059e+37 }
0x2d09   :  { %v2716_v26 = vor.u32 1.1754944e-38, %v2715_v21  ;;  %vm2714_vm3 = vcmp.eq.f32.partialorder %v2713_v54, 8.507059e+37 }
0x2d0c   :  { %v3609_v8 = vpop.eup %3608 }
0x2d0d   :  { %v3611_v9 = vpop.eup %3610  ;;  %v2771_v10 = vmul.f32 %v3609_v8, %v2769_v5  ;;  %vm2776_vm12 = vweird.f32 %v3609_v8  ;;  %v3421_v5 = vld [vmem:[%s4515_s17] sm:$0xff] }
0x2d0e   :  { %v2705_v6 = vmul.f32 %v3611_v9, %v2703_v7  ;;  %vm2710_vm13 = vweird.f32 %v3611_v9  ;;  %vm2777_vm15 = vmor %vm2775_vm14, %vm2776_vm12  ;;  %3021 = vmatpush.bf16.msrb.mxu2 %v3421_v5  ;;  %v3442_v7 = vld [vmem:[%s4511_s14] ss:$0 sm:$0xff] }
0x2d0f   :  { %v2772_v11 = vsub.f32 1.0, %v2771_v10  ;;  %vm2711_vm1 = vmor %vm2709_vm0, %vm2710_vm13 }
0x2d10   :  { %v2706_v13 = vsub.f32 1.0, %v2705_v6 }
0x2d11   :  { %v2773_v14 = vmul.f32 %v3609_v8, %v2772_v11 }
0x2d12   :  { %v2707_v15 = vmul.f32 %v3611_v9, %v2706_v13  ;;  %v3422_v13 = vld [vmem:[%s4517_s19] sm:$0xff] }
0x2d13   :  { %v2774_v62 = vadd.f32 %v3609_v8, %v2773_v14  ;;  %v3443_v14 = vld [vmem:[%s4513_s16] ss:$0 sm:$0xff] }
0x2d14   :  { %v2708_v18 = vadd.f32 %v3611_v9, %v2707_v15 }
0x2d15   :  { %v2778_v22 = vsel %vm2777_vm15, %v3609_v8, %v2774_v62 }
0x2d16   :  { %v2712_v25 = vsel %vm2711_vm1, %v3611_v9, %v2708_v18  ;;  %v2783_v27 = vsel %vm2780_vm2, %v2782_v23, %v2778_v22  ;;  %v3423_v22 = vld [vmem:[%s4519_s21] sm:$0xff] }
0x2d17   :  { %v2790_v30 = vmul.f32 %v2788_v24, %v2783_v27  ;;  %v2717_v33 = vsel %vm2714_vm3, %v2716_v26, %v2712_v25  ;;  %v3444_v23 = vld [vmem:[%s4516_s18] ss:$0 sm:$0xff] }
0x2d18   :  { %v2720_v36 = vmul.f32 %v2717_v33, %v4394_v39  ;;  %v3417_v39 = vld [vmem:[%s4510_s13] sm:$0xff] }
0x2d19   :  { %3612 = vtanh.f32 %v2790_v30  ;;  %2946 = vmatpush.bf16.msra.mxu3 %v3417_v39 }
0x2d1d   :  { %3051 = vmatpush.bf16.msrb.mxu3 %v3422_v13 }
0x2d1f   :  { %v3613_v34 = vpop.eup %3612 }
0x2d75   :  { %v2723_v31 = vpop.permute.xlu1 %2722 }
0x2d76   :  { %v2725_v41 = vmul.f32 %v2723_v31, %v2717_v33  ;;  %v3424_v31 = vld [vmem:[%s4521_s23] sm:$0xff] }
0x2d78   :  { %2727 = vrot.lane.b32.xlu2 %v2725_v41, %s3628_s29 }
0x2d80   :  { %2793 = vrot.lane.b32.xlu2 %v3613_v34, %s3629_s5 }
0x2d88   :  { %2993 = vrot.lane.b32.xlu2 %v2991_v4, %s3630_s15 }
0x2dd2   :  { %v2728_v37 = vpop.permute.xlu2 %2727 }
0x2dd3   :  { %v2730_v28 = vadd.f32 %v2728_v37, %v2720_v36 }
0x2dd5   :  { %3614 = vtanh.f32 %v2730_v28 }
0x2dda   :  { %v2794_v60 = vpop.permute.xlu2 %2793 }
0x2ddb   :  { %v3615_v40 = vpop.eup %3614  ;;  %v2796_v19 = vmul.f32 %v2794_v60, %v2783_v27  ;;  %v3446_v60 = vld [vmem:[%s4520_s22] ss:$0 sm:$0xff] }
0x2ddc   :  { %2733 = vrot.lane.b32.xlu1 %v3615_v40, %s3627_s0  ;;  %v30_v40 = vstv %s4522_s24 }
0x2ddd   :  { %31 = vst [vmem:[#allocation3] sm:$0x1] %v30_v40 }
0x2de2   :  { %v2994_v17 = vpop.permute.xlu2 %2993 }
0x2de4   :  { %2802 = vrot.lane.b32.xlu1 %v2796_v19, %s3627_s0 }
0x2e4e   :  { %v2734_v42 = vpop.permute.xlu1 %2733 }
0x2e4f   :  { %v2736_v35 = vmul.f32 %v2734_v42, %v2717_v33  ;;  %v3445_v33 = vld [vmem:[%s4518_s20] ss:$0 sm:$0xff] }
0x2e51   :  { %2798 = vrot.lane.b32.xlu0 %v2736_v35, %s3628_s29  ;;  %v3447_v35 = vld [vmem:[#allocation3] ss:$0 sm:$0xff] }
0x2e56   :  { %v2803_v45 = vpop.permute.xlu1 %2802 }
0x2ec3   :  { %v2799_v46 = vpop.permute.xlu0 %2798 }
0x2ec4   :  { %v2805_v48 = vsel %vm1440_vm9, %v2799_v46, %v2803_v45 }
0x2ec5   :  { %v2806_v49 = vpack.c.bf16 %v2805_v48, %v2805_v48 }
0x2ec7   :  { %3324 = vmatmul.msk.bf16.vlgmr.msrb.gmra.mxu1 %vm2843_vm5, %v2806_v49 }
0x2ec8   :  { %3081 = vmatpush.bf16.msrb.mxu1 %v3423_v22 }
0x2f44   :  { %v2856_v29 = vpop.f32.mrf.mxu1 }
0x2f45   :  { %v2857_v55 = vadd.f32 %v3440_v53, %v2856_v29 }
0x2f47   :  { %v2860_v56 = vmax.f32 %v2857_v55, 0.0 }
0x2f49   :  { %v2861_v58 = vpack.c.bf16 %v2860_v56, %v2860_v56 }
0x2f4b   :  { %3341 = vmatmul.msk.bf16.vlgmr.msra.gmra.mxu2 %vm2843_vm5, %v2861_v58 }
0x2f4c   :  { %v2858_v57 = vpop.f32.mrf.mxu1  ;;  %3111 = vmatpush.bf16.msra.mxu2 %v3424_v31 }
0x2fce   :  { %v2910_v63 = vpop.f32.mrf.mxu2 }
0x2fcf   :  { %v2911_v0 = vadd.f32 %v3441_v12, %v2910_v63 }
0x2fd1   :  { %v2914_v16 = vmax.f32 %v2911_v0, 0.0 }
0x2fd3   :  { %v2915_v1 = vpack.c.bf16 %v2914_v16, %v2914_v16 }
0x2fd5   :  { %3350 = vmatmul.msk.bf16.vlgmr.msra.gmra.mxu3 %vm1440_vm9, %v2915_v1 }
0x2fd6   :  { %v2912_v2 = vpop.f32.mrf.mxu2 }
0x3058   :  { %v2948_v8 = vpop.f32.mrf.mxu3 }
0x3059   :  { %v2949_v9 = vadd.f32 %v3442_v7, %v2948_v8 }
0x305b   :  { %v2952_v10 = vmax.f32 %v2949_v9, 0.0 }
0x305d   :  { %v2953_v6 = vpack.c.bf16 %v2952_v10, %v2952_v10 }
0x305f   :  { %3359 = vmatmul.msk.bf16.vlgmr.msra.gmra.mxu1 %vm1440_vm9, %v2953_v6  ;;  %vm3117_vm9 = vcmask 1024  }
0x3060   :  { %v2950_v11 = vpop.f32.mrf.mxu3 }
0x30dc   :  { %v2986_v15 = vpop.f32.mrf.mxu1 }
0x30dd   :  { %v2987_v62 = vadd.f32 %v3443_v14, %v2986_v15 }
0x30df   :  { %v2990_v18 = vmax.f32 %v2987_v62, 0.0 }
0x30e1   :  { %v2997_v20 = vsel %vm2996_vm6, %v2990_v18, %v2994_v17 }
0x30e2   :  { %v2998_v21 = vpack.c.bf16 %v2997_v20, %v2997_v20 }
0x30e4   :  { %v2988_v54 = vpop.f32.mrf.mxu1  ;;  %3364 = vmatmul.msk.bf16.vlgmr.msrb.gmra.mxu2 %vm1347_vm4, %v2998_v21 }
0x3167   :  { %v3023_v24 = vpop.f32.mrf.mxu2 }
0x3168   :  { %v3024_v25 = vadd.f32 %v3444_v23, %v3023_v24 }
0x316a   :  { %v3027_v26 = vmax.f32 %v3024_v25, 0.0 }
0x316c   :  { %v3028_v27 = vpack.c.bf16 %v3027_v26, %v3027_v26 }
0x316e   :  { %3369 = vmatmul.msk.bf16.vlgmr.msrb.gmra.mxu3 %vm1347_vm4, %v3028_v27 }
0x316f   :  { %v3025_v30 = vpop.f32.mrf.mxu2 }
0x31f1   :  { %v3053_v41 = vpop.f32.mrf.mxu3 }
0x31f2   :  { %v3054_v34 = vadd.f32 %v3445_v33, %v3053_v41 }
0x31f4   :  { %v3057_v36 = vmax.f32 %v3054_v34, 0.0 }
0x31f6   :  { %v3058_v37 = vpack.c.bf16 %v3057_v36, %v3057_v36 }
0x31f8   :  { %3374 = vmatmul.msk.bf16.vlgmr.msrb.gmra.mxu1 %vm1347_vm4, %v3058_v37 }
0x31f9   :  { %v3055_v28 = vpop.f32.mrf.mxu3 }
0x3275   :  { %v3083_v19 = vpop.f32.mrf.mxu1 }
0x3276   :  { %v3084_v47 = vadd.f32 %v3446_v60, %v3083_v19 }
0x3278   :  { %v3087_v3 = vmax.f32 %v3084_v47, 0.0 }
0x327a   :  { %v3088_v32 = vpack.c.bf16 %v3087_v3, %v3087_v3 }
0x327c   :  { %3379 = vmatmul.msk.bf16.vlgmr.msra.gmra.mxu2 %vm1347_vm4, %v3088_v32 }
0x327d   :  { %v3085_v42 = vpop.f32.mrf.mxu1 }
0x32ff   :  { %v3113_v43 = vpop.f32.mrf.mxu2 }
0x3300   :  { %v3114_v38 = vadd.f32 %v3447_v35, %v3113_v43 }
0x3302   :  { %3118 = vst.msk [vmem:[%s4523_s25] sm:$0x3] %vm3117_vm9, %v3114_v38 }
0x3307   :  { %v3115_v44 = vpop.f32.mrf.mxu2 }

</bundles_post_ra>
